<compile_context>
chip_gen: v7x
topology: tpu7x:2x2x1
jax: 0.10.0
libtpu: 0.0.40
codegen_flags: <defaults>
</compile_context>

<pallas_src>
import math
from functools import partial

import jax
import jax.numpy as jnp
from jax.experimental import pallas as pl
from jax.experimental.pallas import tpu as pltpu

EPS = 1e-5
LANE = 128          # channel padding granule (lane width)
ROW_TILE = 512      # preferred rows per grid step (multiple of 16 for bf16 tiles)


# ---------------------------------------------------------------------------
# helpers
# ---------------------------------------------------------------------------
def _rup(n, m):
    return ((n + m - 1) // m) * m


def _row_tile(m, target=ROW_TILE):
    """Power-of-two divisor of m (>=16), preferring >=2 grid steps for pipelining."""
    t = math.gcd(m, target)
    if t == m and m >= 32:
        t = math.gcd(m, target // 2)
    return t if t >= 16 else m


def _pad_to(a, shape):
    pads = [(0, t - s) for s, t in zip(a.shape, shape)]
    if not any(p[1] for p in pads):
        return a
    return jnp.pad(a, pads)


def _cparams():
    return pltpu.CompilerParams(
        dimension_semantics=("parallel",),
        vmem_limit_bytes=32 * 1024 * 1024)


def _finalize_stats(st, n_rows, gamma, beta, rows=(0, 1)):
    """Per-tile (sum, sumsq) partials -> per-channel BN affine (scale, shift)."""
    s = jnp.sum(st[:, rows[0], :], axis=0)
    q = jnp.sum(st[:, rows[1], :], axis=0)
    mean = s / n_rows
    var = jnp.maximum(q / n_rows - mean * mean, 0.0)   # clamp: E[y^2]-mean^2 can dip < 0
    inv = jax.lax.rsqrt(var + EPS)
    scale = gamma * inv
    shift = beta - mean * scale
    return scale.reshape(1, -1), shift.reshape(1, -1)


# ---------------------------------------------------------------------------
# Pallas kernels
# ---------------------------------------------------------------------------
def _matmul_stats_kernel(x_ref, w_ref, y_ref, st_ref):
    """y = x @ w (bf16 MXU, f32 accum) + per-tile channel sum / sum-of-squares."""
    y = jnp.dot(x_ref[...], w_ref[...], preferred_element_type=jnp.float32)
    y_ref[...] = y
    st_ref[0, 0:1, :] = jnp.sum(y, axis=0, keepdims=True)
    st_ref[0, 1:2, :] = jnp.sum(y * y, axis=0, keepdims=True)
    st_ref[0, 2:, :] = jnp.zeros((6, y.shape[1]), jnp.float32)


def _conv3x3_kernel(y1_ref, s1_ref, t1_ref, w2_ref, y2_ref, st_ref,
                    pad_ref, acc_ref, *, stride, hin, win, hout, wout):
    """Per-image 3x3 conv (pad=1) of relu(s1*y1+t1): nine in-kernel tap matmuls."""
    cp = y1_ref.shape[3]
    cq = w2_ref.shape[2]

    # Spatial zero-padding lives in VMEM scratch.  Only the 1-pixel border needs
    # zeroing each step: the interior is fully overwritten below, and per-step
    # border zeroing stays correct when the grid is sharded across megacore TCs.
    zrow = jnp.zeros((1, win + 2, cp), jnp.float32)
    zcol = jnp.zeros((hin + 2, 1, cp), jnp.float32)
    pad_ref[0:1, :, :] = zrow
    pad_ref[hin + 1:hin + 2, :, :] = zrow
    pad_ref[:, 0:1, :] = zcol
    pad_ref[:, win + 1:win + 2, :] = zcol

    # BN1 + ReLU fused on the input.
    a = y1_ref[0] * s1_ref[...].reshape(1, 1, cp) + t1_ref[...].reshape(1, 1, cp)
    pad_ref[1:hin + 1, 1:win + 1, :] = jnp.maximum(a, 0.0)

    if stride != 1:
        # stride 2: even/odd phase decomposition so each tap is a plain static slice.
        hp, wp = hin + 2, win + 2
        pr = pad_ref[...].reshape(hp // 2, 2, wp // 2, 2, cp)

    for t in range(9):
        di, dj = t // 3, t % 3
        if stride == 1:
            slab = pad_ref[di:di + hout, dj:dj + wout, :]
        else:
            slab = pr[di // 2:di // 2 + hout, di % 2,
                      dj // 2:dj // 2 + wout, dj % 2, :]
        tap = jnp.dot(slab.reshape(hout * wout, cp).astype(jnp.bfloat16),
                      w2_ref[t], preferred_element_type=jnp.float32)
        if t == 0:
            acc_ref[...] = tap          # first tap writes directly (no zero-init)
        else:
            acc_ref[...] += tap

    acc = acc_ref[...]
    y2_ref[0] = acc.reshape(hout, wout, cq)
    st_ref[0, 0:1, :] = jnp.sum(acc, axis=0, keepdims=True)
    st_ref[0, 1:2, :] = jnp.sum(acc * acc, axis=0, keepdims=True)
    st_ref[0, 2:, :] = jnp.zeros((6, cq), jnp.float32)


def _stage3_stats_kernel(*refs, proj):
    """BN stats partials for conv3(relu(BN2(y2))) and (optionally) the shortcut conv."""
    if proj:
        y2_ref, s2_ref, t2_ref, w3_ref, xs_ref, ws_ref, st_ref = refs
    else:
        y2_ref, s2_ref, t2_ref, w3_ref, st_ref = refs
    cq = w3_ref.shape[1]
    a2 = jnp.maximum(y2_ref[...] * s2_ref[...] + t2_ref[...], 0.0)
    z3 = jnp.dot(a2.astype(jnp.bfloat16), w3_ref[...],
                 preferred_element_type=jnp.float32)
    st_ref[0, 0:1, :] = jnp.sum(z3, axis=0, keepdims=True)
    st_ref[0, 1:2, :] = jnp.sum(z3 * z3, axis=0, keepdims=True)
    if proj:
        zs = jnp.dot(xs_ref[...], ws_ref[...], preferred_element_type=jnp.float32)
        st_ref[0, 2:3, :] = jnp.sum(zs, axis=0, keepdims=True)
        st_ref[0, 3:4, :] = jnp.sum(zs * zs, axis=0, keepdims=True)
        st_ref[0, 4:, :] = jnp.zeros((4, cq), jnp.float32)
    else:
        st_ref[0, 2:, :] = jnp.zeros((6, cq), jnp.float32)


def _stage3_out_kernel(*refs, proj):
    """out = relu(BN3(conv3(relu(BN2(y2)))) + shortcut); convs recomputed (far cheaper
    than round-tripping the 4x-wide z tensors through HBM: ~p/4 flops per byte saved,
    well under the v5e/v6e/v7x roofline balance point)."""
    if proj:
        (y2_ref, s2_ref, t2_ref, w3_ref, s3_ref, t3_ref,
         xs_ref, ws_ref, ss_ref, ts_ref, o_ref) = refs
    else:
        (y2_ref, s2_ref, t2_ref, w3_ref, s3_ref, t3_ref, xid_ref, o_ref) = refs
    a2 = jnp.maximum(y2_ref[...] * s2_ref[...] + t2_ref[...], 0.0)
    z3 = jnp.dot(a2.astype(jnp.bfloat16), w3_ref[...],
                 preferred_element_type=jnp.float32)
    main = z3 * s3_ref[...] + t3_ref[...]
    if proj:
        zs = jnp.dot(xs_ref[...], ws_ref[...], preferred_element_type=jnp.float32)
        short = zs * ss_ref[...] + ts_ref[...]
    else:
        short = xid_ref[...]
    o_ref[...] = jnp.maximum(main + short, 0.0)


# ---------------------------------------------------------------------------
# pallas_call wrappers (row-tiled 1-D grids, lane-dense blocks)
# ---------------------------------------------------------------------------
def matmul_stats(x, w):
    m, k = x.shape
    c = w.shape[1]
    tm = _row_tile(m)
    grid = (m // tm,)
    cost = pl.CostEstimate(flops=2 * m * k * c, transcendentals=0,
                           bytes_accessed=int(m * k * 2 + k * c * 2 + m * c * 4))
    return pl.pallas_call(
        _matmul_stats_kernel,
        out_shape=(jax.ShapeDtypeStruct((m, c), jnp.float32),
                   jax.ShapeDtypeStruct((grid[0], 8, c), jnp.float32)),
        grid=grid,
        in_specs=[pl.BlockSpec((tm, k), lambda i: (i, 0)),
                  pl.BlockSpec((k, c), lambda i: (0, 0))],
        out_specs=(pl.BlockSpec((tm, c), lambda i: (i, 0)),
                   pl.BlockSpec((1, 8, c), lambda i: (i, 0, 0))),
        compiler_params=_cparams(),
        cost_estimate=cost,
    )(x, w)


def conv3x3_fused(y1_img, scale1, shift1, w2, stride):
    n, h, w, cp = y1_img.shape
    cq = w2.shape[2]
    ho = (h + 2 - 3) // stride + 1
    wo = (w + 2 - 3) // stride + 1
    if stride != 1:
        assert h % 2 == 0 and w % 2 == 0, "stride-2 path assumes even H, W"
    kern = partial(_conv3x3_kernel, stride=stride, hin=h, win=w, hout=ho, wout=wo)
    cost = pl.CostEstimate(
        flops=2 * n * ho * wo * 9 * cp * cq, transcendentals=0,
        bytes_accessed=int(n * h * w * cp * 4 + 9 * cp * cq * 2 + n * ho * wo * cq * 4))
    return pl.pallas_call(
        kern,
        out_shape=(jax.ShapeDtypeStruct((n, ho, wo, cq), jnp.float32),
                   jax.ShapeDtypeStruct((n, 8, cq), jnp.float32)),
        grid=(n,),
        in_specs=[pl.BlockSpec((1, h, w, cp), lambda i: (i, 0, 0, 0)),
                  pl.BlockSpec((1, cp), lambda i: (0, 0)),
                  pl.BlockSpec((1, cp), lambda i: (0, 0)),
                  pl.BlockSpec((9, cp, cq), lambda i: (0, 0, 0))],
        out_specs=(pl.BlockSpec((1, ho, wo, cq), lambda i: (i, 0, 0, 0)),
                   pl.BlockSpec((1, 8, cq), lambda i: (i, 0, 0))),
        scratch_shapes=[pltpu.VMEM((h + 2, w + 2, cp), jnp.float32),
                        pltpu.VMEM((ho * wo, cq), jnp.float32)],
        compiler_params=_cparams(),
        cost_estimate=cost,
    )(y1_img, scale1, shift1, w2)


def stage3_stats(y2, scale2, shift2, w3, xs=None, ws=None):
    m, cp = y2.shape
    cq = w3.shape[1]
    tm = _row_tile(m)
    grid = (m // tm,)
    proj = xs is not None
    args = [y2, scale2, shift2, w3]
    in_specs = [pl.BlockSpec((tm, cp), lambda i: (i, 0)),
                pl.BlockSpec((1, cp), lambda i: (0, 0)),
                pl.BlockSpec((1, cp), lambda i: (0, 0)),
                pl.BlockSpec((cp, cq), lambda i: (0, 0))]
    flops = 2 * m * cp * cq
    nbytes = m * cp * 4 + cp * cq * 2
    if proj:
        ci = xs.shape[1]
        args += [xs, ws]
        in_specs += [pl.BlockSpec((tm, ci), lambda i: (i, 0)),
                     pl.BlockSpec((ci, cq), lambda i: (0, 0))]
        flops += 2 * m * ci * cq
        nbytes += m * ci * 2 + ci * cq * 2
    return pl.pallas_call(
        partial(_stage3_stats_kernel, proj=proj),
        out_shape=jax.ShapeDtypeStruct((grid[0], 8, cq), jnp.float32),
        grid=grid,
        in_specs=in_specs,
        out_specs=pl.BlockSpec((1, 8, cq), lambda i: (i, 0, 0)),
        compiler_params=_cparams(),
        cost_estimate=pl.CostEstimate(flops=flops, transcendentals=0,
                                      bytes_accessed=int(nbytes)),
    )(*args)


def stage3_out(y2, scale2, shift2, w3, scale3, shift3,
               xs=None, ws=None, ss=None, ts=None, xid=None):
    m, cp = y2.shape
    cq = w3.shape[1]
    tm = _row_tile(m)
    grid = (m // tm,)
    proj = xs is not None
    args = [y2, scale2, shift2, w3, scale3, shift3]
    in_specs = [pl.BlockSpec((tm, cp), lambda i: (i, 0)),
                pl.BlockSpec((1, cp), lambda i: (0, 0)),
                pl.BlockSpec((1, cp), lambda i: (0, 0)),
                pl.BlockSpec((cp, cq), lambda i: (0, 0)),
                pl.BlockSpec((1, cq), lambda i: (0, 0)),
                pl.BlockSpec((1, cq), lambda i: (0, 0))]
    flops = 2 * m * cp * cq
    nbytes = m * cp * 4 + cp * cq * 2 + m * cq * 4
    if proj:
        ci = xs.shape[1]
        args += [xs, ws, ss, ts]
        in_specs += [pl.BlockSpec((tm, ci), lambda i: (i, 0)),
                     pl.BlockSpec((ci, cq), lambda i: (0, 0)),
                     pl.BlockSpec((1, cq), lambda i: (0, 0)),
                     pl.BlockSpec((1, cq), lambda i: (0, 0))]
        flops += 2 * m * ci * cq
        nbytes += m * ci * 2 + ci * cq * 2
    else:
        args += [xid]
        in_specs += [pl.BlockSpec((tm, cq), lambda i: (i, 0))]
        nbytes += m * cq * 4
    return pl.pallas_call(
        partial(_stage3_out_kernel, proj=proj),
        out_shape=jax.ShapeDtypeStruct((m, cq), jnp.float32),
        grid=grid,
        in_specs=in_specs,
        out_specs=pl.BlockSpec((tm, cq), lambda i: (i, 0)),
        compiler_params=_cparams(),
        cost_estimate=pl.CostEstimate(flops=flops, transcendentals=0,
                                      bytes_accessed=int(nbytes)),
    )(*args)


# ---------------------------------------------------------------------------
# Bottleneck forward (glue: layout, channel padding, BN-stat finalization)
# ---------------------------------------------------------------------------
def bottleneck_forward(x_nchw, params, stride=1):
    expansion = 4
    # NCHW -> NHWC (channels-last puts channels on the 128-lane axis).
    x = jnp.transpose(x_nchw, (0, 2, 3, 1)).astype(jnp.float32)
    n, h, w, cin = x.shape
    p = params["w1"].shape[-1]
    cout = expansion * p

    cin_p, p_p, cout_p = _rup(cin, LANE), _rup(p, LANE), _rup(cout, LANE)

    # Lane-dense channel padding; bf16 MXU operands.
    x_p = _pad_to(x, (n, h, w, cin_p))
    m1 = n * h * w
    x_bf = x_p.astype(jnp.bfloat16).reshape(m1, cin_p)

    w1 = _pad_to(params["w1"].reshape(cin, p), (cin_p, p_p)).astype(jnp.bfloat16)
    w2 = _pad_to(params["w2"].reshape(9, p, p), (9, p_p, p_p)).astype(jnp.bfloat16)
    w3 = _pad_to(params["w3"].reshape(p, cout), (p_p, cout_p)).astype(jnp.bfloat16)
    g1 = _pad_to(params["g1"], (p_p,)); b1 = _pad_to(params["b1"], (p_p,))
    g2 = _pad_to(params["g2"], (p_p,)); b2 = _pad_to(params["b2"], (p_p,))
    g3 = _pad_to(params["g3"], (cout_p,)); b3 = _pad_to(params["b3"], (cout_p,))

    # ---- stage 1: 1x1 conv + BN1 stats (BN1+ReLU applied inside stage 2) ----
    y1, st1 = matmul_stats(x_bf, w1)
    s1, t1 = _finalize_stats(st1, m1, g1, b1)

    # ---- stage 2: 3x3 conv (stride, pad=1) w/ fused BN1+ReLU input, BN2 stats
    ho = (h + 2 - 3) // stride + 1
    wo = (w + 2 - 3) // stride + 1
    y2, st2 = conv3x3_fused(y1.reshape(n, h, w, p_p), s1, t1, w2, stride)
    m2 = n * ho * wo
    s2, t2 = _finalize_stats(st2, m2, g2, b2)
    y2f = y2.reshape(m2, p_p)

    # ---- stage 3: 1x1 conv + BN3, shortcut, add, ReLU (stats + finalize) ----
    proj = (stride != 1) or (cin != cout)
    if proj:
        ws = _pad_to(params["ws"].reshape(cin, cout), (cin_p, cout_p)).astype(jnp.bfloat16)
        gs = _pad_to(params["gs"], (cout_p,)); bs = _pad_to(params["bs"], (cout_p,))
        # TODO(synk): for stride=2 stream the strided shortcut rows via a BlockSpec
        # index_map instead of materializing this slice.
        xs = x_p[:, ::stride, ::stride, :].reshape(m2, cin_p).astype(jnp.bfloat16)
        st3 = stage3_stats(y2f, s2, t2, w3, xs, ws)
        s3, t3 = _finalize_stats(st3, m2, g3, b3, rows=(0, 1))
        ss, ts = _finalize_stats(st3, m2, gs, bs, rows=(2, 3))
        out = stage3_out(y2f, s2, t2, w3, s3, t3, xs=xs, ws=ws, ss=ss, ts=ts)
    else:
        st3 = stage3_stats(y2f, s2, t2, w3)
        s3, t3 = _finalize_stats(st3, m2, g3, b3)
        xid = x_p.reshape(m1, cin_p)          # cin_p == cout_p in the identity case
        out = stage3_out(y2f, s2, t2, w3, s3, t3, xid=xid)

    out = out.reshape(n, ho, wo, cout_p)[..., :cout]
    return jnp.transpose(out, (0, 3, 1, 2))   # back to NCHW


# ---------------------------------------------------------------------------
# Pure-JAX reference (correctness harness; mirrors the bf16 MXU operands)
# ---------------------------------------------------------------------------
def _ref_bn(y, g, b):
    mean = jnp.mean(y, axis=(0, 1, 2), keepdims=True)
    var = jnp.mean(jnp.square(y - mean), axis=(0, 1, 2), keepdims=True)
    return (y - mean) * jax.lax.rsqrt(var + EPS) * g.reshape(1, 1, 1, -1) \
        + b.reshape(1, 1, 1, -1)


def _ref_conv(x, w_hwio, stride, padding):
    return jax.lax.conv_general_dilated(
        x.astype(jnp.bfloat16), w_hwio.astype(jnp.bfloat16),
        (stride, stride), padding,
        dimension_numbers=("NHWC", "HWIO", "NHWC"),
        preferred_element_type=jnp.float32)


def bottleneck_reference(x_nchw, params, stride=1):
    expansion = 4
    x = jnp.transpose(x_nchw, (0, 2, 3, 1)).astype(jnp.float32)
    p = params["w1"].shape[-1]
    cin = x.shape[-1]
    out = jax.nn.relu(_ref_bn(_ref_conv(x, params["w1"], 1, "VALID"),
                              params["g1"], params["b1"]))
    out = jax.nn.relu(_ref_bn(_ref_conv(out, params["w2"], stride, [(1, 1), (1, 1)]),
                              params["g2"], params["b2"]))
    out = _ref_bn(_ref_conv(out, params["w3"], 1, "VALID"), params["g3"], params["b3"])
    if stride != 1 or cin != expansion * p:
        sc = _ref_bn(_ref_conv(x, params["ws"], stride, "VALID"),
                     params["gs"], params["bs"])
    else:
        sc = x
    return jnp.transpose(jax.nn.relu(out + sc), (0, 3, 1, 2))


# ---------------------------------------------------------------------------
if __name__ == "__main__":
    expansion = 4

    def make_params(key, cin, planes):
        k1, k2, k3, ks = jax.random.split(key, 4)
        cout = expansion * planes
        return {
            "w1": 0.2 * jax.random.normal(k1, (1, 1, cin, planes), jnp.float32),
            "w2": 0.2 * jax.random.normal(k2, (3, 3, planes, planes), jnp.float32),
            "w3": 0.2 * jax.random.normal(k3, (1, 1, planes, cout), jnp.float32),
            "ws": 0.2 * jax.random.normal(ks, (1, 1, cin, cout), jnp.float32),
            "g1": jnp.ones((planes,), jnp.float32), "b1": jnp.zeros((planes,), jnp.float32),
            "g2": jnp.ones((planes,), jnp.float32), "b2": jnp.zeros((planes,), jnp.float32),
            "g3": jnp.ones((cout,), jnp.float32), "b3": jnp.zeros((cout,), jnp.float32),
            "gs": jnp.ones((cout,), jnp.float32), "bs": jnp.zeros((cout,), jnp.float32),
        }

    key = jax.random.PRNGKey(0)
    kx1, kp1, kx2, kp2 = jax.random.split(key, 4)

    # Config 1: projection shortcut (in_planes != expansion*planes), stride=1.
    n, cin, planes, hh, ww, stride = 2, 4, 4, 16, 16, 1
    x = jax.random.normal(kx1, (n, cin, hh, ww), dtype=jnp.float32)
    params = make_params(kp1, cin, planes)
    out = jax.block_until_ready(
        jax.jit(partial(bottleneck_forward, stride=stride))(x, params))
    ref = jax.block_until_ready(bottleneck_reference(x, params, stride=stride))
    assert out.shape == (n, expansion * planes, hh, ww), out.shape
    err = float(jnp.max(jnp.abs(out - ref)))
    assert err < 2e-2, f"projection-block max abs error {err}"

    # Config 2: identity shortcut (in_planes == expansion*planes), stride=1.
    cin2 = expansion * planes
    x2 = jax.random.normal(kx2, (n, cin2, hh, ww), dtype=jnp.float32)
    params2 = make_params(kp2, cin2, planes)
    out2 = jax.block_until_ready(
        jax.jit(partial(bottleneck_forward, stride=1))(x2, params2))
    ref2 = jax.block_until_ready(bottleneck_reference(x2, params2, stride=1))
    err2 = float(jnp.max(jnp.abs(out2 - ref2)))
    assert err2 < 2e-2, f"identity-block max abs error {err2}"

    print("KERNEL_OK")
</pallas_src>

<mosaic_0001>
module attributes {stable_mosaic.version = 11 : i64} {
  func.func @_matmul_stats_kernel(%arg0: i32, %arg1: memref<256x128xbf16, #tpu.memory_space<vmem>>, %arg2: memref<128x128xbf16, #tpu.memory_space<vmem>>, %arg3: memref<256x128xf32, #tpu.memory_space<vmem>>, %arg4: memref<1x8x128xf32, #tpu.memory_space<vmem>>) attributes {dimension_semantics = [#tpu.dimension_semantics<parallel>], iteration_bounds = array<i64: 2>, scalar_prefetch = 0 : i64, scratch_operands = 0 : i64, tpu.core_type = #tpu.core_type<tc>, window_params = [{transform_indices = @transform_0, window_bounds = array<i64: 256, 128>}, {pipeline_mode = #tpu.pipeline_mode<synchronous>, transform_indices = @transform_1, window_bounds = array<i64: 128, 128>}, {transform_indices = @transform_2, window_bounds = array<i64: 256, 128>}, {transform_indices = @transform_3, window_bounds = array<i64: 1, 8, 128>}]} {
    %c0 = arith.constant 0 : index
    %c0_0 = arith.constant 0 : index
    %0 = vector.load %arg1[%c0, %c0_0] : memref<256x128xbf16, #tpu.memory_space<vmem>>, vector<256x128xbf16>
    %c0_1 = arith.constant 0 : index
    %c0_2 = arith.constant 0 : index
    %1 = vector.load %arg2[%c0_1, %c0_2] : memref<128x128xbf16, #tpu.memory_space<vmem>>, vector<128x128xbf16>
    %cst = arith.constant dense<0.000000e+00> : vector<256x128xf32>
    %2 = tpu.matmul %0, %1, %cst {dimension_numbers = #tpu.dot_dimension_numbers<[1], [0], [0], [1], [0, 0, 1, 1], [], []>} : vector<256x128xbf16>, vector<128x128xbf16>, vector<256x128xf32> -> vector<256x128xf32>
    %c0_3 = arith.constant 0 : index
    %c0_4 = arith.constant 0 : index
    %3 = vector.load %arg3[%c0_3, %c0_4] : memref<256x128xf32, #tpu.memory_space<vmem>>, vector<256x128xf32>
    tpu.vector_store %arg3[%c0_3, %c0_4], %2 {strides = array<i32>} : memref<256x128xf32, #tpu.memory_space<vmem>>, vector<256x128xf32>,
    %cst_5 = arith.constant dense<0.000000e+00> : vector<128xf32>
    %4 = vector.multi_reduction <add>, %2, %cst_5 [0] : vector<256x128xf32> to vector<128xf32>
    %5 = vector.shape_cast %4 : vector<128xf32> to vector<1x128xf32>
    %c0_6 = arith.constant 0 : index
    %c0_7 = arith.constant 0 : index
    %c0_8 = arith.constant 0 : index
    %6 = vector.load %arg4[%c0_6, %c0_7, %c0_8] : memref<1x8x128xf32, #tpu.memory_space<vmem>>, vector<1x1x128xf32>
    %7 = vector.shape_cast %6 : vector<1x1x128xf32> to vector<1x128xf32>
    %8 = vector.shape_cast %5 : vector<1x128xf32> to vector<1x1x128xf32>
    tpu.vector_store %arg4[%c0_6, %c0_7, %c0_8], %8 {strides = array<i32>} : memref<1x8x128xf32, #tpu.memory_space<vmem>>, vector<1x1x128xf32>,
    %9 = arith.mulf %2, %2 : vector<256x128xf32>
    %cst_9 = arith.constant dense<0.000000e+00> : vector<128xf32>
    %10 = vector.multi_reduction <add>, %9, %cst_9 [0] : vector<256x128xf32> to vector<128xf32>
    %11 = vector.shape_cast %10 : vector<128xf32> to vector<1x128xf32>
    %c0_10 = arith.constant 0 : index
    %c1 = arith.constant 1 : index
    %c0_11 = arith.constant 0 : index
    %12 = vector.load %arg4[%c0_10, %c1, %c0_11] : memref<1x8x128xf32, #tpu.memory_space<vmem>>, vector<1x1x128xf32>
    %13 = vector.shape_cast %12 : vector<1x1x128xf32> to vector<1x128xf32>
    %14 = vector.shape_cast %11 : vector<1x128xf32> to vector<1x1x128xf32>
    tpu.vector_store %arg4[%c0_10, %c1, %c0_11], %14 {strides = array<i32>} : memref<1x8x128xf32, #tpu.memory_space<vmem>>, vector<1x1x128xf32>,
    %cst_12 = arith.constant 0.000000e+00 : f32
    %15 = vector.broadcast %cst_12 : f32 to vector<6x128xf32>
    %c0_13 = arith.constant 0 : index
    %c2 = arith.constant 2 : index
    %c0_14 = arith.constant 0 : index
    %16 = vector.load %arg4[%c0_13, %c2, %c0_14] : memref<1x8x128xf32, #tpu.memory_space<vmem>>, vector<1x6x128xf32>
    %17 = vector.shape_cast %16 : vector<1x6x128xf32> to vector<6x128xf32>
    %18 = vector.shape_cast %15 : vector<6x128xf32> to vector<1x6x128xf32>
    tpu.vector_store %arg4[%c0_13, %c2, %c0_14], %18 {strides = array<i32>} : memref<1x8x128xf32, #tpu.memory_space<vmem>>, vector<1x6x128xf32>,
    return
  }
  func.func @transform_0(%arg0: i32) -> (i32, i32) {
    %c0_i32 = arith.constant 0 : i32
    %c0_i32_0 = arith.constant 0 : i32
    return %arg0, %c0_i32 : i32, i32
  }
  func.func @transform_1(%arg0: i32) -> (i32, i32) {
    %c0_i32 = arith.constant 0 : i32
    %c0_i32_0 = arith.constant 0 : i32
    %c0_i32_1 = arith.constant 0 : i32
    return %c0_i32, %c0_i32_0 : i32, i32
  }
  func.func @transform_2(%arg0: i32) -> (i32, i32) {
    %c0_i32 = arith.constant 0 : i32
    %c0_i32_0 = arith.constant 0 : i32
    return %arg0, %c0_i32 : i32, i32
  }
  func.func @transform_3(%arg0: i32) -> (i32, i32, i32) {
    %c0_i32 = arith.constant 0 : i32
    %c0_i32_0 = arith.constant 0 : i32
    %c0_i32_1 = arith.constant 0 : i32
    return %arg0, %c0_i32, %c0_i32_0 : i32, i32, i32
  }
}

module attributes {stable_mosaic.version = 11 : i64} {
  func.func @_conv3x3_kernel(%arg0: i32, %arg1: memref<1x16x16x128xf32, #tpu.memory_space<vmem>>, %arg2: memref<1x128xf32, #tpu.memory_space<vmem>>, %arg3: memref<1x128xf32, #tpu.memory_space<vmem>>, %arg4: memref<9x128x128xbf16, #tpu.memory_space<vmem>>, %arg5: memref<1x16x16x128xf32, #tpu.memory_space<vmem>>, %arg6: memref<1x8x128xf32, #tpu.memory_space<vmem>>, %arg7: memref<18x18x128xf32, #tpu.memory_space<vmem>>, %arg8: memref<256x128xf32, #tpu.memory_space<vmem>>) attributes {dimension_semantics = [#tpu.dimension_semantics<parallel>], iteration_bounds = array<i64: 2>, scalar_prefetch = 0 : i64, scratch_operands = 2 : i64, tpu.core_type = #tpu.core_type<tc>, window_params = [{transform_indices = @transform_0, window_bounds = array<i64: 1, 16, 16, 128>}, {pipeline_mode = #tpu.pipeline_mode<synchronous>, transform_indices = @transform_1, window_bounds = array<i64: 1, 128>}, {pipeline_mode = #tpu.pipeline_mode<synchronous>, transform_indices = @transform_2, window_bounds = array<i64: 1, 128>}, {pipeline_mode = #tpu.pipeline_mode<synchronous>, transform_indices = @transform_3, window_bounds = array<i64: 9, 128, 128>}, {transform_indices = @transform_4, window_bounds = array<i64: 1, 16, 16, 128>}, {transform_indices = @transform_5, window_bounds = array<i64: 1, 8, 128>}]} {
    %cst = arith.constant 0.000000e+00 : f32
    %0 = vector.broadcast %cst : f32 to vector<1x18x128xf32>
    %cst_0 = arith.constant 0.000000e+00 : f32
    %1 = vector.broadcast %cst_0 : f32 to vector<18x1x128xf32>
    %c0 = arith.constant 0 : index
    %c0_1 = arith.constant 0 : index
    %c0_2 = arith.constant 0 : index
    %2 = vector.load %arg7[%c0, %c0_1, %c0_2] : memref<18x18x128xf32, #tpu.memory_space<vmem>>, vector<1x18x128xf32>
    tpu.vector_store %arg7[%c0, %c0_1, %c0_2], %0 {strides = array<i32>} : memref<18x18x128xf32, #tpu.memory_space<vmem>>, vector<1x18x128xf32>,
    %c17 = arith.constant 17 : index
    %c0_3 = arith.constant 0 : index
    %c0_4 = arith.constant 0 : index
    %3 = vector.load %arg7[%c17, %c0_3, %c0_4] : memref<18x18x128xf32, #tpu.memory_space<vmem>>, vector<1x18x128xf32>
    tpu.vector_store %arg7[%c17, %c0_3, %c0_4], %0 {strides = array<i32>} : memref<18x18x128xf32, #tpu.memory_space<vmem>>, vector<1x18x128xf32>,
    %c0_5 = arith.constant 0 : index
    %c0_6 = arith.constant 0 : index
    %c0_7 = arith.constant 0 : index
    %4 = vector.load %arg7[%c0_5, %c0_6, %c0_7] : memref<18x18x128xf32, #tpu.memory_space<vmem>>, vector<18x1x128xf32>
    tpu.vector_store %arg7[%c0_5, %c0_6, %c0_7], %1 {strides = array<i32>} : memref<18x18x128xf32, #tpu.memory_space<vmem>>, vector<18x1x128xf32>,
    %c0_8 = arith.constant 0 : index
    %c17_9 = arith.constant 17 : index
    %c0_10 = arith.constant 0 : index
    %5 = vector.load %arg7[%c0_8, %c17_9, %c0_10] : memref<18x18x128xf32, #tpu.memory_space<vmem>>, vector<18x1x128xf32>
    tpu.vector_store %arg7[%c0_8, %c17_9, %c0_10], %1 {strides = array<i32>} : memref<18x18x128xf32, #tpu.memory_space<vmem>>, vector<18x1x128xf32>,
    %c0_11 = arith.constant 0 : index
    %c0_12 = arith.constant 0 : index
    %c0_13 = arith.constant 0 : index
    %c0_14 = arith.constant 0 : index
    %6 = vector.load %arg1[%c0_11, %c0_12, %c0_13, %c0_14] : memref<1x16x16x128xf32, #tpu.memory_space<vmem>>, vector<1x16x16x128xf32>
    %7 = vector.shape_cast %6 : vector<1x16x16x128xf32> to vector<16x16x128xf32>
    %c0_15 = arith.constant 0 : index
    %c0_16 = arith.constant 0 : index
    %8 = vector.load %arg2[%c0_15, %c0_16] : memref<1x128xf32, #tpu.memory_space<vmem>>, vector<1x128xf32>
    %9 = vector.shape_cast %8 : vector<1x128xf32> to vector<1x1x128xf32>
    %10 = vector.broadcast %9 : vector<1x1x128xf32> to vector<16x16x128xf32>
    %11 = arith.mulf %7, %10 : vector<16x16x128xf32>
    %c0_17 = arith.constant 0 : index
    %c0_18 = arith.constant 0 : index
    %12 = vector.load %arg3[%c0_17, %c0_18] : memref<1x128xf32, #tpu.memory_space<vmem>>, vector<1x128xf32>
    %13 = vector.shape_cast %12 : vector<1x128xf32> to vector<1x1x128xf32>
    %14 = vector.broadcast %13 : vector<1x1x128xf32> to vector<16x16x128xf32>
    %15 = arith.addf %11, %14 : vector<16x16x128xf32>
    %cst_19 = arith.constant 0.000000e+00 : f32
    %16 = vector.broadcast %cst_19 : f32 to vector<16x16x128xf32>
    %17 = arith.maximumf %15, %16 : vector<16x16x128xf32>
    %c1 = arith.constant 1 : index
    %c1_20 = arith.constant 1 : index
    %c0_21 = arith.constant 0 : index
    %18 = vector.load %arg7[%c1, %c1_20, %c0_21] : memref<18x18x128xf32, #tpu.memory_space<vmem>>, vector<16x16x128xf32>
    tpu.vector_store %arg7[%c1, %c1_20, %c0_21], %17 {strides = array<i32>} : memref<18x18x128xf32, #tpu.memory_space<vmem>>, vector<16x16x128xf32>,
    %c0_22 = arith.constant 0 : index
    %c0_23 = arith.constant 0 : index
    %c0_24 = arith.constant 0 : index
    %19 = vector.load %arg7[%c0_22, %c0_23, %c0_24] : memref<18x18x128xf32, #tpu.memory_space<vmem>>, vector<16x16x128xf32>
    %20 = vector.shape_cast %19 : vector<16x16x128xf32> to vector<256x128xf32>
    %21 = arith.truncf %20 : vector<256x128xf32> to vector<256x128xbf16>
    %c0_25 = arith.constant 0 : index
    %c0_26 = arith.constant 0 : index
    %c0_27 = arith.constant 0 : index
    %22 = vector.load %arg4[%c0_25, %c0_26, %c0_27] : memref<9x128x128xbf16, #tpu.memory_space<vmem>>, vector<1x128x128xbf16>
    %23 = vector.shape_cast %22 : vector<1x128x128xbf16> to vector<128x128xbf16>
    %cst_28 = arith.constant dense<0.000000e+00> : vector<256x128xf32>
    %24 = tpu.matmul %21, %23, %cst_28 {dimension_numbers = #tpu.dot_dimension_numbers<[1], [0], [0], [1], [0, 0, 1, 1], [], []>} : vector<256x128xbf16>, vector<128x128xbf16>, vector<256x128xf32> -> vector<256x128xf32>
    %c0_29 = arith.constant 0 : index
    %c0_30 = arith.constant 0 : index
    %25 = vector.load %arg8[%c0_29, %c0_30] : memref<256x128xf32, #tpu.memory_space<vmem>>, vector<256x128xf32>
    tpu.vector_store %arg8[%c0_29, %c0_30], %24 {strides = array<i32>} : memref<256x128xf32, #tpu.memory_space<vmem>>, vector<256x128xf32>,
    %c0_31 = arith.constant 0 : index
    %c1_32 = arith.constant 1 : index
    %c0_33 = arith.constant 0 : index
    %26 = vector.load %arg7[%c0_31, %c1_32, %c0_33] : memref<18x18x128xf32, #tpu.memory_space<vmem>>, vector<16x16x128xf32>
    %27 = vector.shape_cast %26 : vector<16x16x128xf32> to vector<256x128xf32>
    %28 = arith.truncf %27 : vector<256x128xf32> to vector<256x128xbf16>
    %c1_34 = arith.constant 1 : index
    %c0_35 = arith.constant 0 : index
    %c0_36 = arith.constant 0 : index
    %29 = vector.load %arg4[%c1_34, %c0_35, %c0_36] : memref<9x128x128xbf16, #tpu.memory_space<vmem>>, vector<1x128x128xbf16>
    %30 = vector.shape_cast %29 : vector<1x128x128xbf16> to vector<128x128xbf16>
    %cst_37 = arith.constant dense<0.000000e+00> : vector<256x128xf32>
    %31 = tpu.matmul %28, %30, %cst_37 {dimension_numbers = #tpu.dot_dimension_numbers<[1], [0], [0], [1], [0, 0, 1, 1], [], []>} : vector<256x128xbf16>, vector<128x128xbf16>, vector<256x128xf32> -> vector<256x128xf32>
    %c0_38 = arith.constant 0 : index
    %c0_39 = arith.constant 0 : index
    %32 = vector.load %arg8[%c0_38, %c0_39] : memref<256x128xf32, #tpu.memory_space<vmem>>, vector<256x128xf32>
    %33 = arith.addf %32, %31 : vector<256x128xf32>
    %c0_40 = arith.constant 0 : index
    %c0_41 = arith.constant 0 : index
    %34 = vector.load %arg8[%c0_40, %c0_41] : memref<256x128xf32, #tpu.memory_space<vmem>>, vector<256x128xf32>
    tpu.vector_store %arg8[%c0_40, %c0_41], %33 {strides = array<i32>} : memref<256x128xf32, #tpu.memory_space<vmem>>, vector<256x128xf32>,
    %c0_42 = arith.constant 0 : index
    %c2 = arith.constant 2 : index
    %c0_43 = arith.constant 0 : index
    %35 = vector.load %arg7[%c0_42, %c2, %c0_43] : memref<18x18x128xf32, #tpu.memory_space<vmem>>, vector<16x16x128xf32>
    %36 = vector.shape_cast %35 : vector<16x16x128xf32> to vector<256x128xf32>
    %37 = arith.truncf %36 : vector<256x128xf32> to vector<256x128xbf16>
    %c2_44 = arith.constant 2 : index
    %c0_45 = arith.constant 0 : index
    %c0_46 = arith.constant 0 : index
    %38 = vector.load %arg4[%c2_44, %c0_45, %c0_46] : memref<9x128x128xbf16, #tpu.memory_space<vmem>>, vector<1x128x128xbf16>
    %39 = vector.shape_cast %38 : vector<1x128x128xbf16> to vector<128x128xbf16>
    %cst_47 = arith.constant dense<0.000000e+00> : vector<256x128xf32>
    %40 = tpu.matmul %37, %39, %cst_47 {dimension_numbers = #tpu.dot_dimension_numbers<[1], [0], [0], [1], [0, 0, 1, 1], [], []>} : vector<256x128xbf16>, vector<128x128xbf16>, vector<256x128xf32> -> vector<256x128xf32>
    %c0_48 = arith.constant 0 : index
    %c0_49 = arith.constant 0 : index
    %41 = vector.load %arg8[%c0_48, %c0_49] : memref<256x128xf32, #tpu.memory_space<vmem>>, vector<256x128xf32>
    %42 = arith.addf %41, %40 : vector<256x128xf32>
    %c0_50 = arith.constant 0 : index
    %c0_51 = arith.constant 0 : index
    %43 = vector.load %arg8[%c0_50, %c0_51] : memref<256x128xf32, #tpu.memory_space<vmem>>, vector<256x128xf32>
    tpu.vector_store %arg8[%c0_50, %c0_51], %42 {strides = array<i32>} : memref<256x128xf32, #tpu.memory_space<vmem>>, vector<256x128xf32>,
    %c1_52 = arith.constant 1 : index
    %c0_53 = arith.constant 0 : index
    %c0_54 = arith.constant 0 : index
    %44 = vector.load %arg7[%c1_52, %c0_53, %c0_54] : memref<18x18x128xf32, #tpu.memory_space<vmem>>, vector<16x16x128xf32>
    %45 = vector.shape_cast %44 : vector<16x16x128xf32> to vector<256x128xf32>
    %46 = arith.truncf %45 : vector<256x128xf32> to vector<256x128xbf16>
    %c3 = arith.constant 3 : index
    %c0_55 = arith.constant 0 : index
    %c0_56 = arith.constant 0 : index
    %47 = vector.load %arg4[%c3, %c0_55, %c0_56] : memref<9x128x128xbf16, #tpu.memory_space<vmem>>, vector<1x128x128xbf16>
    %48 = vector.shape_cast %47 : vector<1x128x128xbf16> to vector<128x128xbf16>
    %cst_57 = arith.constant dense<0.000000e+00> : vector<256x128xf32>
    %49 = tpu.matmul %46, %48, %cst_57 {dimension_numbers = #tpu.dot_dimension_numbers<[1], [0], [0], [1], [0, 0, 1, 1], [], []>} : vector<256x128xbf16>, vector<128x128xbf16>, vector<256x128xf32> -> vector<256x128xf32>
    %c0_58 = arith.constant 0 : index
    %c0_59 = arith.constant 0 : index
    %50 = vector.load %arg8[%c0_58, %c0_59] : memref<256x128xf32, #tpu.memory_space<vmem>>, vector<256x128xf32>
    %51 = arith.addf %50, %49 : vector<256x128xf32>
    %c0_60 = arith.constant 0 : index
    %c0_61 = arith.constant 0 : index
    %52 = vector.load %arg8[%c0_60, %c0_61] : memref<256x128xf32, #tpu.memory_space<vmem>>, vector<256x128xf32>
    tpu.vector_store %arg8[%c0_60, %c0_61], %51 {strides = array<i32>} : memref<256x128xf32, #tpu.memory_space<vmem>>, vector<256x128xf32>,
    %c1_62 = arith.constant 1 : index
    %c1_63 = arith.constant 1 : index
    %c0_64 = arith.constant 0 : index
    %53 = vector.load %arg7[%c1_62, %c1_63, %c0_64] : memref<18x18x128xf32, #tpu.memory_space<vmem>>, vector<16x16x128xf32>
    %54 = vector.shape_cast %53 : vector<16x16x128xf32> to vector<256x128xf32>
    %55 = arith.truncf %54 : vector<256x128xf32> to vector<256x128xbf16>
    %c4 = arith.constant 4 : index
    %c0_65 = arith.constant 0 : index
    %c0_66 = arith.constant 0 : index
    %56 = vector.load %arg4[%c4, %c0_65, %c0_66] : memref<9x128x128xbf16, #tpu.memory_space<vmem>>, vector<1x128x128xbf16>
    %57 = vector.shape_cast %56 : vector<1x128x128xbf16> to vector<128x128xbf16>
    %cst_67 = arith.constant dense<0.000000e+00> : vector<256x128xf32>
    %58 = tpu.matmul %55, %57, %cst_67 {dimension_numbers = #tpu.dot_dimension_numbers<[1], [0], [0], [1], [0, 0, 1, 1], [], []>} : vector<256x128xbf16>, vector<128x128xbf16>, vector<256x128xf32> -> vector<256x128xf32>
    %c0_68 = arith.constant 0 : index
    %c0_69 = arith.constant 0 : index
    %59 = vector.load %arg8[%c0_68, %c0_69] : memref<256x128xf32, #tpu.memory_space<vmem>>, vector<256x128xf32>
    %60 = arith.addf %59, %58 : vector<256x128xf32>
    %c0_70 = arith.constant 0 : index
    %c0_71 = arith.constant 0 : index
    %61 = vector.load %arg8[%c0_70, %c0_71] : memref<256x128xf32, #tpu.memory_space<vmem>>, vector<256x128xf32>
    tpu.vector_store %arg8[%c0_70, %c0_71], %60 {strides = array<i32>} : memref<256x128xf32, #tpu.memory_space<vmem>>, vector<256x128xf32>,
    %c1_72 = arith.constant 1 : index
    %c2_73 = arith.constant 2 : index
    %c0_74 = arith.constant 0 : index
    %62 = vector.load %arg7[%c1_72, %c2_73, %c0_74] : memref<18x18x128xf32, #tpu.memory_space<vmem>>, vector<16x16x128xf32>
    %63 = vector.shape_cast %62 : vector<16x16x128xf32> to vector<256x128xf32>
    %64 = arith.truncf %63 : vector<256x128xf32> to vector<256x128xbf16>
    %c5 = arith.constant 5 : index
    %c0_75 = arith.constant 0 : index
    %c0_76 = arith.constant 0 : index
    %65 = vector.load %arg4[%c5, %c0_75, %c0_76] : memref<9x128x128xbf16, #tpu.memory_space<vmem>>, vector<1x128x128xbf16>
    %66 = vector.shape_cast %65 : vector<1x128x128xbf16> to vector<128x128xbf16>
    %cst_77 = arith.constant dense<0.000000e+00> : vector<256x128xf32>
    %67 = tpu.matmul %64, %66, %cst_77 {dimension_numbers = #tpu.dot_dimension_numbers<[1], [0], [0], [1], [0, 0, 1, 1], [], []>} : vector<256x128xbf16>, vector<128x128xbf16>, vector<256x128xf32> -> vector<256x128xf32>
    %c0_78 = arith.constant 0 : index
    %c0_79 = arith.constant 0 : index
    %68 = vector.load %arg8[%c0_78, %c0_79] : memref<256x128xf32, #tpu.memory_space<vmem>>, vector<256x128xf32>
    %69 = arith.addf %68, %67 : vector<256x128xf32>
    %c0_80 = arith.constant 0 : index
    %c0_81 = arith.constant 0 : index
    %70 = vector.load %arg8[%c0_80, %c0_81] : memref<256x128xf32, #tpu.memory_space<vmem>>, vector<256x128xf32>
    tpu.vector_store %arg8[%c0_80, %c0_81], %69 {strides = array<i32>} : memref<256x128xf32, #tpu.memory_space<vmem>>, vector<256x128xf32>,
    %c2_82 = arith.constant 2 : index
    %c0_83 = arith.constant 0 : index
    %c0_84 = arith.constant 0 : index
    %71 = vector.load %arg7[%c2_82, %c0_83, %c0_84] : memref<18x18x128xf32, #tpu.memory_space<vmem>>, vector<16x16x128xf32>
    %72 = vector.shape_cast %71 : vector<16x16x128xf32> to vector<256x128xf32>
    %73 = arith.truncf %72 : vector<256x128xf32> to vector<256x128xbf16>
    %c6 = arith.constant 6 : index
    %c0_85 = arith.constant 0 : index
    %c0_86 = arith.constant 0 : index
    %74 = vector.load %arg4[%c6, %c0_85, %c0_86] : memref<9x128x128xbf16, #tpu.memory_space<vmem>>, vector<1x128x128xbf16>
    %75 = vector.shape_cast %74 : vector<1x128x128xbf16> to vector<128x128xbf16>
    %cst_87 = arith.constant dense<0.000000e+00> : vector<256x128xf32>
    %76 = tpu.matmul %73, %75, %cst_87 {dimension_numbers = #tpu.dot_dimension_numbers<[1], [0], [0], [1], [0, 0, 1, 1], [], []>} : vector<256x128xbf16>, vector<128x128xbf16>, vector<256x128xf32> -> vector<256x128xf32>
    %c0_88 = arith.constant 0 : index
    %c0_89 = arith.constant 0 : index
    %77 = vector.load %arg8[%c0_88, %c0_89] : memref<256x128xf32, #tpu.memory_space<vmem>>, vector<256x128xf32>
    %78 = arith.addf %77, %76 : vector<256x128xf32>
    %c0_90 = arith.constant 0 : index
    %c0_91 = arith.constant 0 : index
    %79 = vector.load %arg8[%c0_90, %c0_91] : memref<256x128xf32, #tpu.memory_space<vmem>>, vector<256x128xf32>
    tpu.vector_store %arg8[%c0_90, %c0_91], %78 {strides = array<i32>} : memref<256x128xf32, #tpu.memory_space<vmem>>, vector<256x128xf32>,
    %c2_92 = arith.constant 2 : index
    %c1_93 = arith.constant 1 : index
    %c0_94 = arith.constant 0 : index
    %80 = vector.load %arg7[%c2_92, %c1_93, %c0_94] : memref<18x18x128xf32, #tpu.memory_space<vmem>>, vector<16x16x128xf32>
    %81 = vector.shape_cast %80 : vector<16x16x128xf32> to vector<256x128xf32>
    %82 = arith.truncf %81 : vector<256x128xf32> to vector<256x128xbf16>
    %c7 = arith.constant 7 : index
    %c0_95 = arith.constant 0 : index
    %c0_96 = arith.constant 0 : index
    %83 = vector.load %arg4[%c7, %c0_95, %c0_96] : memref<9x128x128xbf16, #tpu.memory_space<vmem>>, vector<1x128x128xbf16>
    %84 = vector.shape_cast %83 : vector<1x128x128xbf16> to vector<128x128xbf16>
    %cst_97 = arith.constant dense<0.000000e+00> : vector<256x128xf32>
    %85 = tpu.matmul %82, %84, %cst_97 {dimension_numbers = #tpu.dot_dimension_numbers<[1], [0], [0], [1], [0, 0, 1, 1], [], []>} : vector<256x128xbf16>, vector<128x128xbf16>, vector<256x128xf32> -> vector<256x128xf32>
    %c0_98 = arith.constant 0 : index
    %c0_99 = arith.constant 0 : index
    %86 = vector.load %arg8[%c0_98, %c0_99] : memref<256x128xf32, #tpu.memory_space<vmem>>, vector<256x128xf32>
    %87 = arith.addf %86, %85 : vector<256x128xf32>
    %c0_100 = arith.constant 0 : index
    %c0_101 = arith.constant 0 : index
    %88 = vector.load %arg8[%c0_100, %c0_101] : memref<256x128xf32, #tpu.memory_space<vmem>>, vector<256x128xf32>
    tpu.vector_store %arg8[%c0_100, %c0_101], %87 {strides = array<i32>} : memref<256x128xf32, #tpu.memory_space<vmem>>, vector<256x128xf32>,
    %c2_102 = arith.constant 2 : index
    %c2_103 = arith.constant 2 : index
    %c0_104 = arith.constant 0 : index
    %89 = vector.load %arg7[%c2_102, %c2_103, %c0_104] : memref<18x18x128xf32, #tpu.memory_space<vmem>>, vector<16x16x128xf32>
    %90 = vector.shape_cast %89 : vector<16x16x128xf32> to vector<256x128xf32>
    %91 = arith.truncf %90 : vector<256x128xf32> to vector<256x128xbf16>
    %c8 = arith.constant 8 : index
    %c0_105 = arith.constant 0 : index
    %c0_106 = arith.constant 0 : index
    %92 = vector.load %arg4[%c8, %c0_105, %c0_106] : memref<9x128x128xbf16, #tpu.memory_space<vmem>>, vector<1x128x128xbf16>
    %93 = vector.shape_cast %92 : vector<1x128x128xbf16> to vector<128x128xbf16>
    %cst_107 = arith.constant dense<0.000000e+00> : vector<256x128xf32>
    %94 = tpu.matmul %91, %93, %cst_107 {dimension_numbers = #tpu.dot_dimension_numbers<[1], [0], [0], [1], [0, 0, 1, 1], [], []>} : vector<256x128xbf16>, vector<128x128xbf16>, vector<256x128xf32> -> vector<256x128xf32>
    %c0_108 = arith.constant 0 : index
    %c0_109 = arith.constant 0 : index
    %95 = vector.load %arg8[%c0_108, %c0_109] : memref<256x128xf32, #tpu.memory_space<vmem>>, vector<256x128xf32>
    %96 = arith.addf %95, %94 : vector<256x128xf32>
    %c0_110 = arith.constant 0 : index
    %c0_111 = arith.constant 0 : index
    %97 = vector.load %arg8[%c0_110, %c0_111] : memref<256x128xf32, #tpu.memory_space<vmem>>, vector<256x128xf32>
    tpu.vector_store %arg8[%c0_110, %c0_111], %96 {strides = array<i32>} : memref<256x128xf32, #tpu.memory_space<vmem>>, vector<256x128xf32>,
    %c0_112 = arith.constant 0 : index
    %c0_113 = arith.constant 0 : index
    %98 = vector.load %arg8[%c0_112, %c0_113] : memref<256x128xf32, #tpu.memory_space<vmem>>, vector<256x128xf32>
    %99 = vector.shape_cast %98 : vector<256x128xf32> to vector<16x16x128xf32>
    %c0_114 = arith.constant 0 : index
    %c0_115 = arith.constant 0 : index
    %c0_116 = arith.constant 0 : index
    %c0_117 = arith.constant 0 : index
    %100 = vector.load %arg5[%c0_114, %c0_115, %c0_116, %c0_117] : memref<1x16x16x128xf32, #tpu.memory_space<vmem>>, vector<1x16x16x128xf32>
    %101 = vector.shape_cast %100 : vector<1x16x16x128xf32> to vector<16x16x128xf32>
    %102 = vector.shape_cast %99 : vector<16x16x128xf32> to vector<1x16x16x128xf32>
    tpu.vector_store %arg5[%c0_114, %c0_115, %c0_116, %c0_117], %102 {strides = array<i32>} : memref<1x16x16x128xf32, #tpu.memory_space<vmem>>, vector<1x16x16x128xf32>,
    %cst_118 = arith.constant dense<0.000000e+00> : vector<128xf32>
    %103 = vector.multi_reduction <add>, %98, %cst_118 [0] : vector<256x128xf32> to vector<128xf32>
    %104 = vector.shape_cast %103 : vector<128xf32> to vector<1x128xf32>
    %c0_119 = arith.constant 0 : index
    %c0_120 = arith.constant 0 : index
    %c0_121 = arith.constant 0 : index
    %105 = vector.load %arg6[%c0_119, %c0_120, %c0_121] : memref<1x8x128xf32, #tpu.memory_space<vmem>>, vector<1x1x128xf32>
    %106 = vector.shape_cast %105 : vector<1x1x128xf32> to vector<1x128xf32>
    %107 = vector.shape_cast %104 : vector<1x128xf32> to vector<1x1x128xf32>
    tpu.vector_store %arg6[%c0_119, %c0_120, %c0_121], %107 {strides = array<i32>} : memref<1x8x128xf32, #tpu.memory_space<vmem>>, vector<1x1x128xf32>,
    %108 = arith.mulf %98, %98 : vector<256x128xf32>
    %cst_122 = arith.constant dense<0.000000e+00> : vector<128xf32>
    %109 = vector.multi_reduction <add>, %108, %cst_122 [0] : vector<256x128xf32> to vector<128xf32>
    %110 = vector.shape_cast %109 : vector<128xf32> to vector<1x128xf32>
    %c0_123 = arith.constant 0 : index
    %c1_124 = arith.constant 1 : index
    %c0_125 = arith.constant 0 : index
    %111 = vector.load %arg6[%c0_123, %c1_124, %c0_125] : memref<1x8x128xf32, #tpu.memory_space<vmem>>, vector<1x1x128xf32>
    %112 = vector.shape_cast %111 : vector<1x1x128xf32> to vector<1x128xf32>
    %113 = vector.shape_cast %110 : vector<1x128xf32> to vector<1x1x128xf32>
    tpu.vector_store %arg6[%c0_123, %c1_124, %c0_125], %113 {strides = array<i32>} : memref<1x8x128xf32, #tpu.memory_space<vmem>>, vector<1x1x128xf32>,
    %cst_126 = arith.constant 0.000000e+00 : f32
    %114 = vector.broadcast %cst_126 : f32 to vector<6x128xf32>
    %c0_127 = arith.constant 0 : index
    %c2_128 = arith.constant 2 : index
    %c0_129 = arith.constant 0 : index
    %115 = vector.load %arg6[%c0_127, %c2_128, %c0_129] : memref<1x8x128xf32, #tpu.memory_space<vmem>>, vector<1x6x128xf32>
    %116 = vector.shape_cast %115 : vector<1x6x128xf32> to vector<6x128xf32>
    %117 = vector.shape_cast %114 : vector<6x128xf32> to vector<1x6x128xf32>
    tpu.vector_store %arg6[%c0_127, %c2_128, %c0_129], %117 {strides = array<i32>} : memref<1x8x128xf32, #tpu.memory_space<vmem>>, vector<1x6x128xf32>,
    return
  }
  func.func @transform_0(%arg0: i32) -> (i32, i32, i32, i32) {
    %c0_i32 = arith.constant 0 : i32
    %c0_i32_0 = arith.constant 0 : i32
    %c0_i32_1 = arith.constant 0 : i32
    %c0_i32_2 = arith.constant 0 : i32
    return %arg0, %c0_i32, %c0_i32_0, %c0_i32_1 : i32, i32, i32, i32
  }
  func.func @transform_1(%arg0: i32) -> (i32, i32) {
    %c0_i32 = arith.constant 0 : i32
    %c0_i32_0 = arith.constant 0 : i32
    %c0_i32_1 = arith.constant 0 : i32
    return %c0_i32, %c0_i32_0 : i32, i32
  }
  func.func @transform_2(%arg0: i32) -> (i32, i32) {
    %c0_i32 = arith.constant 0 : i32
    %c0_i32_0 = arith.constant 0 : i32
    %c0_i32_1 = arith.constant 0 : i32
    return %c0_i32, %c0_i32_0 : i32, i32
  }
  func.func @transform_3(%arg0: i32) -> (i32, i32, i32) {
    %c0_i32 = arith.constant 0 : i32
    %c0_i32_0 = arith.constant 0 : i32
    %c0_i32_1 = arith.constant 0 : i32
    %c0_i32_2 = arith.constant 0 : i32
    return %c0_i32, %c0_i32_0, %c0_i32_1 : i32, i32, i32
  }
  func.func @transform_4(%arg0: i32) -> (i32, i32, i32, i32) {
    %c0_i32 = arith.constant 0 : i32
    %c0_i32_0 = arith.constant 0 : i32
    %c0_i32_1 = arith.constant 0 : i32
    %c0_i32_2 = arith.constant 0 : i32
    return %arg0, %c0_i32, %c0_i32_0, %c0_i32_1 : i32, i32, i32, i32
  }
  func.func @transform_5(%arg0: i32) -> (i32, i32, i32) {
    %c0_i32 = arith.constant 0 : i32
    %c0_i32_0 = arith.constant 0 : i32
    %c0_i32_1 = arith.constant 0 : i32
    return %arg0, %c0_i32, %c0_i32_0 : i32, i32, i32
  }
}

module attributes {stable_mosaic.version = 11 : i64} {
  func.func @_stage3_stats_kernel(%arg0: i32, %arg1: memref<256x128xf32, #tpu.memory_space<vmem>>, %arg2: memref<1x128xf32, #tpu.memory_space<vmem>>, %arg3: memref<1x128xf32, #tpu.memory_space<vmem>>, %arg4: memref<128x128xbf16, #tpu.memory_space<vmem>>, %arg5: memref<256x128xbf16, #tpu.memory_space<vmem>>, %arg6: memref<128x128xbf16, #tpu.memory_space<vmem>>, %arg7: memref<1x8x128xf32, #tpu.memory_space<vmem>>) attributes {dimension_semantics = [#tpu.dimension_semantics<parallel>], iteration_bounds = array<i64: 2>, scalar_prefetch = 0 : i64, scratch_operands = 0 : i64, tpu.core_type = #tpu.core_type<tc>, window_params = [{transform_indices = @transform_0, window_bounds = array<i64: 256, 128>}, {pipeline_mode = #tpu.pipeline_mode<synchronous>, transform_indices = @transform_1, window_bounds = array<i64: 1, 128>}, {pipeline_mode = #tpu.pipeline_mode<synchronous>, transform_indices = @transform_2, window_bounds = array<i64: 1, 128>}, {pipeline_mode = #tpu.pipeline_mode<synchronous>, transform_indices = @transform_3, window_bounds = array<i64: 128, 128>}, {transform_indices = @transform_4, window_bounds = array<i64: 256, 128>}, {pipeline_mode = #tpu.pipeline_mode<synchronous>, transform_indices = @transform_5, window_bounds = array<i64: 128, 128>}, {transform_indices = @transform_6, window_bounds = array<i64: 1, 8, 128>}]} {
    %c0 = arith.constant 0 : index
    %c0_0 = arith.constant 0 : index
    %0 = vector.load %arg1[%c0, %c0_0] : memref<256x128xf32, #tpu.memory_space<vmem>>, vector<256x128xf32>
    %c0_1 = arith.constant 0 : index
    %c0_2 = arith.constant 0 : index
    %1 = vector.load %arg2[%c0_1, %c0_2] : memref<1x128xf32, #tpu.memory_space<vmem>>, vector<1x128xf32>
    %2 = vector.broadcast %1 : vector<1x128xf32> to vector<256x128xf32>
    %3 = arith.mulf %0, %2 : vector<256x128xf32>
    %c0_3 = arith.constant 0 : index
    %c0_4 = arith.constant 0 : index
    %4 = vector.load %arg3[%c0_3, %c0_4] : memref<1x128xf32, #tpu.memory_space<vmem>>, vector<1x128xf32>
    %5 = vector.broadcast %4 : vector<1x128xf32> to vector<256x128xf32>
    %6 = arith.addf %3, %5 : vector<256x128xf32>
    %cst = arith.constant 0.000000e+00 : f32
    %7 = vector.broadcast %cst : f32 to vector<256x128xf32>
    %8 = arith.maximumf %6, %7 : vector<256x128xf32>
    %9 = arith.truncf %8 : vector<256x128xf32> to vector<256x128xbf16>
    %c0_5 = arith.constant 0 : index
    %c0_6 = arith.constant 0 : index
    %10 = vector.load %arg4[%c0_5, %c0_6] : memref<128x128xbf16, #tpu.memory_space<vmem>>, vector<128x128xbf16>
    %cst_7 = arith.constant dense<0.000000e+00> : vector<256x128xf32>
    %11 = tpu.matmul %9, %10, %cst_7 {dimension_numbers = #tpu.dot_dimension_numbers<[1], [0], [0], [1], [0, 0, 1, 1], [], []>} : vector<256x128xbf16>, vector<128x128xbf16>, vector<256x128xf32> -> vector<256x128xf32>
    %cst_8 = arith.constant dense<0.000000e+00> : vector<128xf32>
    %12 = vector.multi_reduction <add>, %11, %cst_8 [0] : vector<256x128xf32> to vector<128xf32>
    %13 = vector.shape_cast %12 : vector<128xf32> to vector<1x128xf32>
    %c0_9 = arith.constant 0 : index
    %c0_10 = arith.constant 0 : index
    %c0_11 = arith.constant 0 : index
    %14 = vector.load %arg7[%c0_9, %c0_10, %c0_11] : memref<1x8x128xf32, #tpu.memory_space<vmem>>, vector<1x1x128xf32>
    %15 = vector.shape_cast %14 : vector<1x1x128xf32> to vector<1x128xf32>
    %16 = vector.shape_cast %13 : vector<1x128xf32> to vector<1x1x128xf32>
    tpu.vector_store %arg7[%c0_9, %c0_10, %c0_11], %16 {strides = array<i32>} : memref<1x8x128xf32, #tpu.memory_space<vmem>>, vector<1x1x128xf32>,
    %17 = arith.mulf %11, %11 : vector<256x128xf32>
    %cst_12 = arith.constant dense<0.000000e+00> : vector<128xf32>
    %18 = vector.multi_reduction <add>, %17, %cst_12 [0] : vector<256x128xf32> to vector<128xf32>
    %19 = vector.shape_cast %18 : vector<128xf32> to vector<1x128xf32>
    %c0_13 = arith.constant 0 : index
    %c1 = arith.constant 1 : index
    %c0_14 = arith.constant 0 : index
    %20 = vector.load %arg7[%c0_13, %c1, %c0_14] : memref<1x8x128xf32, #tpu.memory_space<vmem>>, vector<1x1x128xf32>
    %21 = vector.shape_cast %20 : vector<1x1x128xf32> to vector<1x128xf32>
    %22 = vector.shape_cast %19 : vector<1x128xf32> to vector<1x1x128xf32>
    tpu.vector_store %arg7[%c0_13, %c1, %c0_14], %22 {strides = array<i32>} : memref<1x8x128xf32, #tpu.memory_space<vmem>>, vector<1x1x128xf32>,
    %c0_15 = arith.constant 0 : index
    %c0_16 = arith.constant 0 : index
    %23 = vector.load %arg5[%c0_15, %c0_16] : memref<256x128xbf16, #tpu.memory_space<vmem>>, vector<256x128xbf16>
    %c0_17 = arith.constant 0 : index
    %c0_18 = arith.constant 0 : index
    %24 = vector.load %arg6[%c0_17, %c0_18] : memref<128x128xbf16, #tpu.memory_space<vmem>>, vector<128x128xbf16>
    %cst_19 = arith.constant dense<0.000000e+00> : vector<256x128xf32>
    %25 = tpu.matmul %23, %24, %cst_19 {dimension_numbers = #tpu.dot_dimension_numbers<[1], [0], [0], [1], [0, 0, 1, 1], [], []>} : vector<256x128xbf16>, vector<128x128xbf16>, vector<256x128xf32> -> vector<256x128xf32>
    %cst_20 = arith.constant dense<0.000000e+00> : vector<128xf32>
    %26 = vector.multi_reduction <add>, %25, %cst_20 [0] : vector<256x128xf32> to vector<128xf32>
    %27 = vector.shape_cast %26 : vector<128xf32> to vector<1x128xf32>
    %c0_21 = arith.constant 0 : index
    %c2 = arith.constant 2 : index
    %c0_22 = arith.constant 0 : index
    %28 = vector.load %arg7[%c0_21, %c2, %c0_22] : memref<1x8x128xf32, #tpu.memory_space<vmem>>, vector<1x1x128xf32>
    %29 = vector.shape_cast %28 : vector<1x1x128xf32> to vector<1x128xf32>
    %30 = vector.shape_cast %27 : vector<1x128xf32> to vector<1x1x128xf32>
    tpu.vector_store %arg7[%c0_21, %c2, %c0_22], %30 {strides = array<i32>} : memref<1x8x128xf32, #tpu.memory_space<vmem>>, vector<1x1x128xf32>,
    %31 = arith.mulf %25, %25 : vector<256x128xf32>
    %cst_23 = arith.constant dense<0.000000e+00> : vector<128xf32>
    %32 = vector.multi_reduction <add>, %31, %cst_23 [0] : vector<256x128xf32> to vector<128xf32>
    %33 = vector.shape_cast %32 : vector<128xf32> to vector<1x128xf32>
    %c0_24 = arith.constant 0 : index
    %c3 = arith.constant 3 : index
    %c0_25 = arith.constant 0 : index
    %34 = vector.load %arg7[%c0_24, %c3, %c0_25] : memref<1x8x128xf32, #tpu.memory_space<vmem>>, vector<1x1x128xf32>
    %35 = vector.shape_cast %34 : vector<1x1x128xf32> to vector<1x128xf32>
    %36 = vector.shape_cast %33 : vector<1x128xf32> to vector<1x1x128xf32>
    tpu.vector_store %arg7[%c0_24, %c3, %c0_25], %36 {strides = array<i32>} : memref<1x8x128xf32, #tpu.memory_space<vmem>>, vector<1x1x128xf32>,
    %cst_26 = arith.constant 0.000000e+00 : f32
    %37 = vector.broadcast %cst_26 : f32 to vector<4x128xf32>
    %c0_27 = arith.constant 0 : index
    %c4 = arith.constant 4 : index
    %c0_28 = arith.constant 0 : index
    %38 = vector.load %arg7[%c0_27, %c4, %c0_28] : memref<1x8x128xf32, #tpu.memory_space<vmem>>, vector<1x4x128xf32>
    %39 = vector.shape_cast %38 : vector<1x4x128xf32> to vector<4x128xf32>
    %40 = vector.shape_cast %37 : vector<4x128xf32> to vector<1x4x128xf32>
    tpu.vector_store %arg7[%c0_27, %c4, %c0_28], %40 {strides = array<i32>} : memref<1x8x128xf32, #tpu.memory_space<vmem>>, vector<1x4x128xf32>,
    return
  }
  func.func @transform_0(%arg0: i32) -> (i32, i32) {
    %c0_i32 = arith.constant 0 : i32
    %c0_i32_0 = arith.constant 0 : i32
    return %arg0, %c0_i32 : i32, i32
  }
  func.func @transform_1(%arg0: i32) -> (i32, i32) {
    %c0_i32 = arith.constant 0 : i32
    %c0_i32_0 = arith.constant 0 : i32
    %c0_i32_1 = arith.constant 0 : i32
    return %c0_i32, %c0_i32_0 : i32, i32
  }
  func.func @transform_2(%arg0: i32) -> (i32, i32) {
    %c0_i32 = arith.constant 0 : i32
    %c0_i32_0 = arith.constant 0 : i32
    %c0_i32_1 = arith.constant 0 : i32
    return %c0_i32, %c0_i32_0 : i32, i32
  }
  func.func @transform_3(%arg0: i32) -> (i32, i32) {
    %c0_i32 = arith.constant 0 : i32
    %c0_i32_0 = arith.constant 0 : i32
    %c0_i32_1 = arith.constant 0 : i32
    return %c0_i32, %c0_i32_0 : i32, i32
  }
  func.func @transform_4(%arg0: i32) -> (i32, i32) {
    %c0_i32 = arith.constant 0 : i32
    %c0_i32_0 = arith.constant 0 : i32
    return %arg0, %c0_i32 : i32, i32
  }
  func.func @transform_5(%arg0: i32) -> (i32, i32) {
    %c0_i32 = arith.constant 0 : i32
    %c0_i32_0 = arith.constant 0 : i32
    %c0_i32_1 = arith.constant 0 : i32
    return %c0_i32, %c0_i32_0 : i32, i32
  }
  func.func @transform_6(%arg0: i32) -> (i32, i32, i32) {
    %c0_i32 = arith.constant 0 : i32
    %c0_i32_0 = arith.constant 0 : i32
    %c0_i32_1 = arith.constant 0 : i32
    return %arg0, %c0_i32, %c0_i32_0 : i32, i32, i32
  }
}

module attributes {stable_mosaic.version = 11 : i64} {
  func.func @_stage3_out_kernel(%arg0: i32, %arg1: memref<256x128xf32, #tpu.memory_space<vmem>>, %arg2: memref<1x128xf32, #tpu.memory_space<vmem>>, %arg3: memref<1x128xf32, #tpu.memory_space<vmem>>, %arg4: memref<128x128xbf16, #tpu.memory_space<vmem>>, %arg5: memref<1x128xf32, #tpu.memory_space<vmem>>, %arg6: memref<1x128xf32, #tpu.memory_space<vmem>>, %arg7: memref<256x128xbf16, #tpu.memory_space<vmem>>, %arg8: memref<128x128xbf16, #tpu.memory_space<vmem>>, %arg9: memref<1x128xf32, #tpu.memory_space<vmem>>, %arg10: memref<1x128xf32, #tpu.memory_space<vmem>>, %arg11: memref<256x128xf32, #tpu.memory_space<vmem>>) attributes {dimension_semantics = [#tpu.dimension_semantics<parallel>], iteration_bounds = array<i64: 2>, scalar_prefetch = 0 : i64, scratch_operands = 0 : i64, tpu.core_type = #tpu.core_type<tc>, window_params = [{transform_indices = @transform_0, window_bounds = array<i64: 256, 128>}, {pipeline_mode = #tpu.pipeline_mode<synchronous>, transform_indices = @transform_1, window_bounds = array<i64: 1, 128>}, {pipeline_mode = #tpu.pipeline_mode<synchronous>, transform_indices = @transform_2, window_bounds = array<i64: 1, 128>}, {pipeline_mode = #tpu.pipeline_mode<synchronous>, transform_indices = @transform_3, window_bounds = array<i64: 128, 128>}, {pipeline_mode = #tpu.pipeline_mode<synchronous>, transform_indices = @transform_4, window_bounds = array<i64: 1, 128>}, {pipeline_mode = #tpu.pipeline_mode<synchronous>, transform_indices = @transform_5, window_bounds = array<i64: 1, 128>}, {transform_indices = @transform_6, window_bounds = array<i64: 256, 128>}, {pipeline_mode = #tpu.pipeline_mode<synchronous>, transform_indices = @transform_7, window_bounds = array<i64: 128, 128>}, {pipeline_mode = #tpu.pipeline_mode<synchronous>, transform_indices = @transform_8, window_bounds = array<i64: 1, 128>}, {pipeline_mode = #tpu.pipeline_mode<synchronous>, transform_indices = @transform_9, window_bounds = array<i64: 1, 128>}, {transform_indices = @transform_10, window_bounds = array<i64: 256, 128>}]} {
    %c0 = arith.constant 0 : index
    %c0_0 = arith.constant 0 : index
    %0 = vector.load %arg1[%c0, %c0_0] : memref<256x128xf32, #tpu.memory_space<vmem>>, vector<256x128xf32>
    %c0_1 = arith.constant 0 : index
    %c0_2 = arith.constant 0 : index
    %1 = vector.load %arg2[%c0_1, %c0_2] : memref<1x128xf32, #tpu.memory_space<vmem>>, vector<1x128xf32>
    %2 = vector.broadcast %1 : vector<1x128xf32> to vector<256x128xf32>
    %3 = arith.mulf %0, %2 : vector<256x128xf32>
    %c0_3 = arith.constant 0 : index
    %c0_4 = arith.constant 0 : index
    %4 = vector.load %arg3[%c0_3, %c0_4] : memref<1x128xf32, #tpu.memory_space<vmem>>, vector<1x128xf32>
    %5 = vector.broadcast %4 : vector<1x128xf32> to vector<256x128xf32>
    %6 = arith.addf %3, %5 : vector<256x128xf32>
    %cst = arith.constant 0.000000e+00 : f32
    %7 = vector.broadcast %cst : f32 to vector<256x128xf32>
    %8 = arith.maximumf %6, %7 : vector<256x128xf32>
    %9 = arith.truncf %8 : vector<256x128xf32> to vector<256x128xbf16>
    %c0_5 = arith.constant 0 : index
    %c0_6 = arith.constant 0 : index
    %10 = vector.load %arg4[%c0_5, %c0_6] : memref<128x128xbf16, #tpu.memory_space<vmem>>, vector<128x128xbf16>
    %cst_7 = arith.constant dense<0.000000e+00> : vector<256x128xf32>
    %11 = tpu.matmul %9, %10, %cst_7 {dimension_numbers = #tpu.dot_dimension_numbers<[1], [0], [0], [1], [0, 0, 1, 1], [], []>} : vector<256x128xbf16>, vector<128x128xbf16>, vector<256x128xf32> -> vector<256x128xf32>
    %c0_8 = arith.constant 0 : index
    %c0_9 = arith.constant 0 : index
    %12 = vector.load %arg5[%c0_8, %c0_9] : memref<1x128xf32, #tpu.memory_space<vmem>>, vector<1x128xf32>
    %13 = vector.broadcast %12 : vector<1x128xf32> to vector<256x128xf32>
    %14 = arith.mulf %11, %13 : vector<256x128xf32>
    %c0_10 = arith.constant 0 : index
    %c0_11 = arith.constant 0 : index
    %15 = vector.load %arg6[%c0_10, %c0_11] : memref<1x128xf32, #tpu.memory_space<vmem>>, vector<1x128xf32>
    %16 = vector.broadcast %15 : vector<1x128xf32> to vector<256x128xf32>
    %17 = arith.addf %14, %16 : vector<256x128xf32>
    %c0_12 = arith.constant 0 : index
    %c0_13 = arith.constant 0 : index
    %18 = vector.load %arg7[%c0_12, %c0_13] : memref<256x128xbf16, #tpu.memory_space<vmem>>, vector<256x128xbf16>
    %c0_14 = arith.constant 0 : index
    %c0_15 = arith.constant 0 : index
    %19 = vector.load %arg8[%c0_14, %c0_15] : memref<128x128xbf16, #tpu.memory_space<vmem>>, vector<128x128xbf16>
    %cst_16 = arith.constant dense<0.000000e+00> : vector<256x128xf32>
    %20 = tpu.matmul %18, %19, %cst_16 {dimension_numbers = #tpu.dot_dimension_numbers<[1], [0], [0], [1], [0, 0, 1, 1], [], []>} : vector<256x128xbf16>, vector<128x128xbf16>, vector<256x128xf32> -> vector<256x128xf32>
    %c0_17 = arith.constant 0 : index
    %c0_18 = arith.constant 0 : index
    %21 = vector.load %arg9[%c0_17, %c0_18] : memref<1x128xf32, #tpu.memory_space<vmem>>, vector<1x128xf32>
    %22 = vector.broadcast %21 : vector<1x128xf32> to vector<256x128xf32>
    %23 = arith.mulf %20, %22 : vector<256x128xf32>
    %c0_19 = arith.constant 0 : index
    %c0_20 = arith.constant 0 : index
    %24 = vector.load %arg10[%c0_19, %c0_20] : memref<1x128xf32, #tpu.memory_space<vmem>>, vector<1x128xf32>
    %25 = vector.broadcast %24 : vector<1x128xf32> to vector<256x128xf32>
    %26 = arith.addf %23, %25 : vector<256x128xf32>
    %27 = arith.addf %17, %26 : vector<256x128xf32>
    %cst_21 = arith.constant 0.000000e+00 : f32
    %28 = vector.broadcast %cst_21 : f32 to vector<256x128xf32>
    %29 = arith.maximumf %27, %28 : vector<256x128xf32>
    %c0_22 = arith.constant 0 : index
    %c0_23 = arith.constant 0 : index
    %30 = vector.load %arg11[%c0_22, %c0_23] : memref<256x128xf32, #tpu.memory_space<vmem>>, vector<256x128xf32>
    tpu.vector_store %arg11[%c0_22, %c0_23], %29 {strides = array<i32>} : memref<256x128xf32, #tpu.memory_space<vmem>>, vector<256x128xf32>,
    return
  }
  func.func @transform_0(%arg0: i32) -> (i32, i32) {
    %c0_i32 = arith.constant 0 : i32
    %c0_i32_0 = arith.constant 0 : i32
    return %arg0, %c0_i32 : i32, i32
  }
  func.func @transform_1(%arg0: i32) -> (i32, i32) {
    %c0_i32 = arith.constant 0 : i32
    %c0_i32_0 = arith.constant 0 : i32
    %c0_i32_1 = arith.constant 0 : i32
    return %c0_i32, %c0_i32_0 : i32, i32
  }
  func.func @transform_2(%arg0: i32) -> (i32, i32) {
    %c0_i32 = arith.constant 0 : i32
    %c0_i32_0 = arith.constant 0 : i32
    %c0_i32_1 = arith.constant 0 : i32
    return %c0_i32, %c0_i32_0 : i32, i32
  }
  func.func @transform_3(%arg0: i32) -> (i32, i32) {
    %c0_i32 = arith.constant 0 : i32
    %c0_i32_0 = arith.constant 0 : i32
    %c0_i32_1 = arith.constant 0 : i32
    return %c0_i32, %c0_i32_0 : i32, i32
  }
  func.func @transform_4(%arg0: i32) -> (i32, i32) {
    %c0_i32 = arith.constant 0 : i32
    %c0_i32_0 = arith.constant 0 : i32
    %c0_i32_1 = arith.constant 0 : i32
    return %c0_i32, %c0_i32_0 : i32, i32
  }
  func.func @transform_5(%arg0: i32) -> (i32, i32) {
    %c0_i32 = arith.constant 0 : i32
    %c0_i32_0 = arith.constant 0 : i32
    %c0_i32_1 = arith.constant 0 : i32
    return %c0_i32, %c0_i32_0 : i32, i32
  }
  func.func @transform_6(%arg0: i32) -> (i32, i32) {
    %c0_i32 = arith.constant 0 : i32
    %c0_i32_0 = arith.constant 0 : i32
    return %arg0, %c0_i32 : i32, i32
  }
  func.func @transform_7(%arg0: i32) -> (i32, i32) {
    %c0_i32 = arith.constant 0 : i32
    %c0_i32_0 = arith.constant 0 : i32
    %c0_i32_1 = arith.constant 0 : i32
    return %c0_i32, %c0_i32_0 : i32, i32
  }
  func.func @transform_8(%arg0: i32) -> (i32, i32) {
    %c0_i32 = arith.constant 0 : i32
    %c0_i32_0 = arith.constant 0 : i32
    %c0_i32_1 = arith.constant 0 : i32
    return %c0_i32, %c0_i32_0 : i32, i32
  }
  func.func @transform_9(%arg0: i32) -> (i32, i32) {
    %c0_i32 = arith.constant 0 : i32
    %c0_i32_0 = arith.constant 0 : i32
    %c0_i32_1 = arith.constant 0 : i32
    return %c0_i32, %c0_i32_0 : i32, i32
  }
  func.func @transform_10(%arg0: i32) -> (i32, i32) {
    %c0_i32 = arith.constant 0 : i32
    %c0_i32_0 = arith.constant 0 : i32
    return %arg0, %c0_i32 : i32, i32
  }
}

</mosaic_0001>

<bundles_post_ra>
// kernel: bottleneck_forward.4
= control target key start
LH: loop header
LB: loop body
LE: loop exit
PB: predicated region body
PF: predicated region fallthrough
CT: control target
= control target key end

     0   :  { %s953_s12 = smov 0   ;;  %s1141_s0 = inlined_call_operand.vmem [shape: bf16[512,128], index: 0, kind: input, shape index: {}]   ;;  %s1142_s1 = inlined_call_operand.vmem [shape: bf16[128,128], index: 1, kind: input, shape index: {}]   ;;  %s1143_s2 = inlined_call_operand.vmem [shape: f32[512,128], index: 2, kind: output, shape index: {0}]   ;;  %s1144_s3 = inlined_call_operand.vmem [shape: f32[2,8,128], index: 3, kind: output, shape index: {1}]  }
   0x1 LB: > { %s959_s13 = sadd.s32 4294967295, %s930_s12   ;;  %p771_p0 = scmp.ge.s32.totalorder %s930_s12, 1  ;;  %s930_s12 = sphi %s953_s12, %s14_s12  }
   0x2   : > { %p141_p1 = scmp.lt.s32.totalorder %s930_s12, 3 }
   0x4   : > { %p142_p2 = pnand %p771_p0, %p141_p1 }
   0x5   : > { %v900_v0 = vld [vmem:[%s1142_s1] sm:$0xff] (!%p142_p2)   ;;  %s772_s16 = sshll.u32 (!%p142_p2), %s959_s13, 5  ;;  %v901_v1 = vld [vmem:[%s1142_s1 + $0x8] sm:$0xff] (!%p142_p2)   ;;  %v902_v2 = vld [vmem:[%s1142_s1 + $0x10] sm:$0xff] (!%p142_p2)   ;;  %p181_p4 = scmp.lt.s32.totalorder (!%p142_p2), %s959_s13, 1  ;;  %v932_v24 = vmov (!%p142_p2), 0.0  }
   0x6   : > { %145 = sbr.rel (%p142_p2) target bundleno = 330 (0x14a), region = 28  ;;  %p170_p3 = scmp.lt.s32.totalorder (!%p142_p2), %s772_s16, 63  ;;  %827 = vmatprep.subr.bf16.mxu0 (!%p142_p2), %v900_v0  ;;  %875 = vmatprep.subr.bf16.mxu1 (!%p142_p2), %v900_v0  ;;  %v903_v3 = vld [vmem:[%s1142_s1 + $0x18] sm:$0xff] (!%p142_p2)   ;;  %v904_v5 = vld [vmem:[%s1142_s1 + $0x20] sm:$0xff] (!%p142_p2)   ;;  %v905_v6 = vld [vmem:[%s1142_s1 + $0x28] sm:$0xff] (!%p142_p2)  }
   0x7   : > { %828 = vmatpush3.bf16.msra.mxu0 (!%p142_p2), %v900_v0  ;;  %883 = vmatpush3.bf16.msra.mxu1 (!%p142_p2), %v900_v0  ;;  %v906_v8 = vld [vmem:[%s1142_s1 + $0x30] sm:$0xff] (!%p142_p2)   ;;  %v907_v9 = vld [vmem:[%s1142_s1 + $0x38] sm:$0xff] (!%p142_p2)  }
   0x8   : > { %829 = vmatprep.subr.bf16.mxu0 (!%p142_p2), %v901_v1  ;;  %876 = vmatprep.subr.bf16.mxu1 (!%p142_p2), %v901_v1 }
   0xb   : > { %830 = vmatpush3.bf16.msra.mxu0 (!%p142_p2), %v901_v1  ;;  %884 = vmatpush3.bf16.msra.mxu1 (!%p142_p2), %v901_v1 }
   0xc   : > { %831 = vmatprep.subr.bf16.mxu0 (!%p142_p2), %v902_v2  ;;  %877 = vmatprep.subr.bf16.mxu1 (!%p142_p2), %v902_v2 }
   0xd   : > { %s1146_s16 = smov (!%p170_p3, %s772_s16), 63  ;;  %s1148_s13 = smov (!%p181_p4, %s959_s13), 1 }
   0xe   : > { %s773_s21 = sshll.u32 %s1146_s16, 2  ;;  %s776_s8 = sshll.u32 %s1148_s13, 3 }
   0xf   : > { %s979_s24 = scalar_lea.vmem %s1141_s0, %s773_s21  ;;  %832 = vmatpush3.bf16.msra.mxu0 %v902_v2  ;;  %885 = vmatpush3.bf16.msra.mxu1 %v902_v2  ;;  %s1017_s11 = scalar_lea.vmem %s1144_s3, %s776_s8 }
  0x10   : > { %v908_v4 = vld [vmem:[%s979_s24] sm:$0xff]   ;;  %833 = vmatprep.subr.bf16.mxu0 %v903_v3  ;;  %878 = vmatprep.subr.bf16.mxu1 %v903_v3  ;;  %v909_v10 = vld [vmem:[%s979_s24 + $0x8] sm:$0xff]   ;;  %v910_v12 = vld [vmem:[%s979_s24 + $0x10] sm:$0xff]   ;;  %679 = vst [vmem:[%s1017_s11 + $0x2] sm:$0x3f] %v932_v24  ;;  %s775_s14 = sshll.u32 %s1146_s16, 3 }
  0x11   : > { %843 = vmatprep.mubr.bf16.mxu0 %v908_v4  ;;  %v916_v7 = vld [vmem:[%s979_s24 + $0x40] sm:$0xff]   ;;  %v917_v11 = vld [vmem:[%s979_s24 + $0x48] sm:$0xff]   ;;  %v918_v13 = vld [vmem:[%s979_s24 + $0x50] sm:$0xff]   ;;  %s1024_s18 = scalar_lea.vmem %s1143_s2, %s775_s14 }
  0x12   : > { %859 = vmatprep.mubr.bf16.mxu1 %v916_v7  ;;  %v911_v14 = vld [vmem:[%s979_s24 + $0x18] sm:$0xff]   ;;  %v912_v16 = vld [vmem:[%s979_s24 + $0x20] sm:$0xff]   ;;  %v913_v18 = vld [vmem:[%s979_s24 + $0x28] sm:$0xff]  }
  0x13   : > { %834 = vmatpush3.bf16.msra.mxu0 %v903_v3  ;;  %886 = vmatpush3.bf16.msra.mxu1 %v903_v3  ;;  %v919_v15 = vld [vmem:[%s979_s24 + $0x58] sm:$0xff]   ;;  %v920_v17 = vld [vmem:[%s979_s24 + $0x60] sm:$0xff]   ;;  %v921_v19 = vld [vmem:[%s979_s24 + $0x68] sm:$0xff]  }
  0x14   : > { %835 = vmatprep.subr.bf16.mxu0 %v904_v5  ;;  %879 = vmatprep.subr.bf16.mxu1 %v904_v5  ;;  %v914_v20 = vld [vmem:[%s979_s24 + $0x30] sm:$0xff]   ;;  %v915_v22 = vld [vmem:[%s979_s24 + $0x38] sm:$0xff]  }
  0x15   : > { %v922_v21 = vld [vmem:[%s979_s24 + $0x70] sm:$0xff]   ;;  %v923_v23 = vld [vmem:[%s979_s24 + $0x78] sm:$0xff]  }
  0x17   : > { %836 = vmatpush3.bf16.msra.mxu0 %v904_v5  ;;  %887 = vmatpush3.bf16.msra.mxu1 %v904_v5 }
  0x18   : > { %837 = vmatprep.subr.bf16.mxu0 %v905_v6  ;;  %880 = vmatprep.subr.bf16.mxu1 %v905_v6 }
  0x1b   : > { %838 = vmatpush3.bf16.msra.mxu0 %v905_v6  ;;  %888 = vmatpush3.bf16.msra.mxu1 %v905_v6 }
  0x1c   : > { %839 = vmatprep.subr.bf16.mxu0 %v906_v8  ;;  %881 = vmatprep.subr.bf16.mxu1 %v906_v8 }
  0x1f   : > { %840 = vmatpush3.bf16.msra.mxu0 %v906_v8  ;;  %889 = vmatpush3.bf16.msra.mxu1 %v906_v8 }
  0x20   : > { %841 = vmatprep.subr.bf16.mxu0 %v907_v9  ;;  %882 = vmatprep.subr.bf16.mxu1 %v907_v9 }
  0x23   : > { %842 = vmatpush3.bf16.msra.mxu0 %v907_v9  ;;  %890 = vmatpush3.bf16.msra.mxu1 %v907_v9 }
  0x26   : > { %844 = vmatmul.mubr.bf16.vlgmr.msra.gmra.mrb[0].mxu0 %v909_v10  ;;  %860 = vmatmul.mubr.bf16.vlgmr.msra.gmra.mrb[0].mxu1 %v917_v11 }
  0x27   : > { %847 = vmatprep.mubr.bf16.mxu0 %v910_v12  ;;  %863 = vmatprep.mubr.bf16.mxu1 %v918_v13 }
  0x2e   : > { %848 = vmatmul.mubr.bf16.gmra.mrb[4].mxu0 %v911_v14  ;;  %864 = vmatmul.mubr.bf16.gmra.mrb[4].mxu1 %v919_v15 }
  0x2f   : > { %851 = vmatprep.mubr.bf16.mxu0 %v912_v16  ;;  %867 = vmatprep.mubr.bf16.mxu1 %v920_v17 }
  0x36   : > { %852 = vmatmul.mubr.bf16.gmra.mrb[8].mxu0 %v913_v18  ;;  %868 = vmatmul.mubr.bf16.gmra.mrb[8].mxu1 %v921_v19 }
  0x37   : > { %855 = vmatprep.mubr.bf16.mxu0 %v914_v20  ;;  %871 = vmatprep.mubr.bf16.mxu1 %v922_v21 }
  0x3e   : > { %856 = vmatmul.mubr.bf16.gmra.mrb[12].mxu0 %v915_v22  ;;  %872 = vmatmul.mubr.bf16.gmra.mrb[12].mxu1 %v923_v23 }
  0xf9   : > { %v845_v25 = vpop.f32.mrb[0].mxu0  ;;  %v1026_v26 = vpop.f32.mrb[0].mxu1 }
  0xfa   : > { %541 = vst [vmem:[%s1024_s18 + $0x10] sm:$0xff] %v845_v25  ;;  %v412_v27 = vpop.f32.mrb[1].mxu0  ;;  %557 = vst [vmem:[%s1024_s18 + $0x90] sm:$0xff] %v1026_v26  ;;  %v1031_v28 = vpop.f32.mrb[1].mxu1  ;;  %v611_v36 = vmul.f32 %v845_v25, %v845_v25 }
  0xfb   : > { %539 = vst [vmem:[%s1024_s18] sm:$0xff] %v412_v27  ;;  %v846_v29 = vpop.f32.mrb[2].mxu0  ;;  %555 = vst [vmem:[%s1024_s18 + $0x80] sm:$0xff] %v1031_v28  ;;  %v1036_v30 = vpop.f32.mrb[2].mxu1  ;;  %v609_v33 = vmul.f32 %v412_v27, %v412_v27 }
  0xfc   : > { %542 = vst [vmem:[%s1024_s18 + $0x18] sm:$0xff] %v846_v29  ;;  %v415_v31 = vpop.f32.mrb[3].mxu0  ;;  %558 = vst [vmem:[%s1024_s18 + $0x98] sm:$0xff] %v1036_v30  ;;  %v1041_v32 = vpop.f32.mrb[3].mxu1  ;;  %v612_v39 = vmul.f32 %v846_v29, %v846_v29 }
  0xfd   : > { %540 = vst [vmem:[%s1024_s18 + $0x8] sm:$0xff] %v415_v31  ;;  %v571_v34 = vadd.f32 %v415_v31, %v412_v27  ;;  %v610_v35 = vmul.f32 %v415_v31, %v415_v31  ;;  %556 = vst [vmem:[%s1024_s18 + $0x88] sm:$0xff] %v1041_v32 }
  0xff   : > { %v572_v37 = vadd.f32 %v845_v25, %v571_v34  ;;  %v641_v38 = vadd.f32 %v610_v35, %v609_v33 }
 0x101   : > { %v642_v40 = vadd.f32 %v641_v38, %v611_v36  ;;  %v849_v41 = vpop.f32.mrb[4].mxu0  ;;  %v573_v42 = vadd.f32 %v846_v29, %v572_v37  ;;  %v1046_v43 = vpop.f32.mrb[4].mxu1 }
 0x102   : > { %545 = vst [vmem:[%s1024_s18 + $0x30] sm:$0xff] %v849_v41  ;;  %v428_v44 = vpop.f32.mrb[5].mxu0  ;;  %561 = vst [vmem:[%s1024_s18 + $0xb0] sm:$0xff] %v1046_v43  ;;  %v1051_v45 = vpop.f32.mrb[5].mxu1  ;;  %v615_v56 = vmul.f32 %v849_v41, %v849_v41 }
 0x103   : > { %543 = vst [vmem:[%s1024_s18 + $0x20] sm:$0xff] %v428_v44  ;;  %v574_v46 = vadd.f32 %v573_v42, %v428_v44  ;;  %v613_v47 = vmul.f32 %v428_v44, %v428_v44  ;;  %v643_v48 = vadd.f32 %v642_v40, %v612_v39  ;;  %v850_v49 = vpop.f32.mrb[6].mxu0  ;;  %559 = vst [vmem:[%s1024_s18 + $0xa0] sm:$0xff] %v1051_v45  ;;  %v1056_v50 = vpop.f32.mrb[6].mxu1 }
 0x104   : > { %546 = vst [vmem:[%s1024_s18 + $0x38] sm:$0xff] %v850_v49  ;;  %v431_v51 = vpop.f32.mrb[7].mxu0  ;;  %562 = vst [vmem:[%s1024_s18 + $0xb8] sm:$0xff] %v1056_v50  ;;  %v1061_v52 = vpop.f32.mrb[7].mxu1  ;;  %v616_v59 = vmul.f32 %v850_v49, %v850_v49  ;;  %v625_v42 = vmul.f32 %v1031_v28, %v1031_v28 }
 0x105   : > { %v644_v53 = vadd.f32 %v643_v48, %v613_v47  ;;  %544 = vst [vmem:[%s1024_s18 + $0x28] sm:$0xff] %v431_v51  ;;  %v575_v54 = vadd.f32 %v574_v46, %v431_v51  ;;  %v614_v55 = vmul.f32 %v431_v51, %v431_v51  ;;  %560 = vst [vmem:[%s1024_s18 + $0xa8] sm:$0xff] %v1061_v52 }
 0x106   : > { %v627_v51 = vmul.f32 %v1026_v26, %v1026_v26 }
 0x107   : > { %v576_v57 = vadd.f32 %v849_v41, %v575_v54  ;;  %v645_v58 = vadd.f32 %v644_v53, %v614_v55  ;;  %v628_v55 = vmul.f32 %v1036_v30, %v1036_v30 }
 0x109   : > { %v646_v60 = vadd.f32 %v645_v58, %v615_v56  ;;  %v853_v61 = vpop.f32.mrb[8].mxu0  ;;  %v577_v62 = vadd.f32 %v850_v49, %v576_v57  ;;  %v1066_v63 = vpop.f32.mrb[8].mxu1  ;;  %v626_v49 = vmul.f32 %v1041_v32, %v1041_v32 }
 0x10a   : > { %549 = vst [vmem:[%s1024_s18 + $0x50] sm:$0xff] %v853_v61  ;;  %v444_v0 = vpop.f32.mrb[9].mxu0  ;;  %565 = vst [vmem:[%s1024_s18 + $0xd0] sm:$0xff] %v1066_v63  ;;  %v1071_v1 = vpop.f32.mrb[9].mxu1  ;;  %v619_v12 = vmul.f32 %v853_v61, %v853_v61 }
 0x10b   : > { %547 = vst [vmem:[%s1024_s18 + $0x40] sm:$0xff] %v444_v0  ;;  %v578_v2 = vadd.f32 %v577_v62, %v444_v0  ;;  %v617_v3 = vmul.f32 %v444_v0, %v444_v0  ;;  %v647_v4 = vadd.f32 %v646_v60, %v616_v59  ;;  %v854_v5 = vpop.f32.mrb[10].mxu0  ;;  %563 = vst [vmem:[%s1024_s18 + $0xc0] sm:$0xff] %v1071_v1  ;;  %v1076_v6 = vpop.f32.mrb[10].mxu1 }
 0x10c   : > { %550 = vst [vmem:[%s1024_s18 + $0x58] sm:$0xff] %v854_v5  ;;  %v447_v7 = vpop.f32.mrb[11].mxu0  ;;  %566 = vst [vmem:[%s1024_s18 + $0xd8] sm:$0xff] %v1076_v6  ;;  %v1081_v8 = vpop.f32.mrb[11].mxu1  ;;  %v620_v15 = vmul.f32 %v854_v5, %v854_v5 }
 0x10d   : > { %v648_v9 = vadd.f32 %v647_v4, %v617_v3  ;;  %548 = vst [vmem:[%s1024_s18 + $0x48] sm:$0xff] %v447_v7  ;;  %v579_v10 = vadd.f32 %v578_v2, %v447_v7  ;;  %v618_v11 = vmul.f32 %v447_v7, %v447_v7  ;;  %564 = vst [vmem:[%s1024_s18 + $0xc8] sm:$0xff] %v1081_v8 }
 0x10f   : > { %v580_v13 = vadd.f32 %v853_v61, %v579_v10  ;;  %v649_v14 = vadd.f32 %v648_v9, %v618_v11  ;;  %v630_v61 = vmul.f32 %v1061_v52, %v1061_v52  ;;  %v634_v9 = vmul.f32 %v1081_v8, %v1081_v8 }
 0x111   : > { %v650_v16 = vadd.f32 %v649_v14, %v619_v12  ;;  %v857_v17 = vpop.f32.mrb[12].mxu0  ;;  %v581_v18 = vadd.f32 %v854_v5, %v580_v13  ;;  %v1086_v19 = vpop.f32.mrb[12].mxu1 }
 0x112   : > { %553 = vst [vmem:[%s1024_s18 + $0x70] sm:$0xff] %v857_v17  ;;  %v460_v20 = vpop.f32.mrb[13].mxu0  ;;  %569 = vst [vmem:[%s1024_s18 + $0xf0] sm:$0xff] %v1086_v19  ;;  %v524_v21 = vpop.f32.mrb[13].mxu1  ;;  %v623_v36 = vmul.f32 %v857_v17, %v857_v17 }
 0x113   : > { %551 = vst [vmem:[%s1024_s18 + $0x60] sm:$0xff] %v460_v20  ;;  %v582_v22 = vadd.f32 %v581_v18, %v460_v20  ;;  %v621_v23 = vmul.f32 %v460_v20, %v460_v20  ;;  %v651_v24 = vadd.f32 %v650_v16, %v620_v15  ;;  %v858_v25 = vpop.f32.mrb[14].mxu0  ;;  %567 = vst [vmem:[%s1024_s18 + $0xe0] sm:$0xff] %v524_v21  ;;  %v874_v27 = vpop.f32.mrb[14].mxu1 }
 0x114   : > { %554 = vst [vmem:[%s1024_s18 + $0x78] sm:$0xff] %v858_v25  ;;  %v463_v29 = vpop.f32.mrb[15].mxu0  ;;  %570 = vst [vmem:[%s1024_s18 + $0xf8] sm:$0xff] %v874_v27  ;;  %v527_v31 = vpop.f32.mrb[15].mxu1  ;;  %v624_v39 = vmul.f32 %v858_v25, %v858_v25 }
 0x115   : > { %v652_v33 = vadd.f32 %v651_v24, %v621_v23  ;;  %552 = vst [vmem:[%s1024_s18 + $0x68] sm:$0xff] %v463_v29  ;;  %v583_v34 = vadd.f32 %v582_v22, %v463_v29  ;;  %v622_v35 = vmul.f32 %v463_v29, %v463_v29  ;;  %568 = vst [vmem:[%s1024_s18 + $0xe8] sm:$0xff] %v527_v31 }
 0x116   : > { %v638_v18 = vmul.f32 %v527_v31, %v527_v31 }
 0x117   : > { %v584_v37 = vadd.f32 %v857_v17, %v583_v34  ;;  %v653_v38 = vadd.f32 %v652_v33, %v622_v35 }
 0x119   : > { %v654_v40 = vadd.f32 %v653_v38, %v623_v36  ;;  %v585_v41 = vadd.f32 %v858_v25, %v584_v37 }
 0x11b   : > { %v586_v44 = vadd.f32 %v585_v41, %v1031_v28  ;;  %v655_v46 = vadd.f32 %v654_v40, %v624_v39  ;;  %v629_v28 = vmul.f32 %v1051_v45, %v1051_v45 }
 0x11d   : > { %v656_v47 = vadd.f32 %v655_v46, %v625_v42  ;;  %v587_v48 = vadd.f32 %v586_v44, %v1041_v32 }
 0x11f   : > { %v588_v53 = vadd.f32 %v1026_v26, %v587_v48  ;;  %v657_v54 = vadd.f32 %v656_v47, %v626_v49  ;;  %v631_v26 = vmul.f32 %v1046_v43, %v1046_v43 }
 0x121   : > { %v658_v56 = vadd.f32 %v657_v54, %v627_v51  ;;  %v589_v57 = vadd.f32 %v1036_v30, %v588_v53  ;;  %v632_v30 = vmul.f32 %v1056_v50, %v1056_v50 }
 0x123   : > { %v590_v58 = vadd.f32 %v589_v57, %v1051_v45  ;;  %v659_v59 = vadd.f32 %v658_v56, %v628_v55  ;;  %v633_v45 = vmul.f32 %v1071_v1, %v1071_v1 }
 0x125   : > { %v660_v60 = vadd.f32 %v659_v59, %v629_v28  ;;  %v591_v32 = vadd.f32 %v590_v58, %v1061_v52 }
 0x127   : > { %v592_v62 = vadd.f32 %v1046_v43, %v591_v32  ;;  %v661_v0 = vadd.f32 %v660_v60, %v630_v61  ;;  %v635_v43 = vmul.f32 %v1066_v63, %v1066_v63 }
 0x129   : > { %v662_v2 = vadd.f32 %v661_v0, %v631_v26  ;;  %v593_v3 = vadd.f32 %v1056_v50, %v592_v62  ;;  %v636_v50 = vmul.f32 %v1076_v6, %v1076_v6 }
 0x12b   : > { %v594_v4 = vadd.f32 %v593_v3, %v1071_v1  ;;  %v663_v5 = vadd.f32 %v662_v2, %v632_v30  ;;  %v637_v1 = vmul.f32 %v524_v21, %v524_v21 }
 0x12d   : > { %v664_v7 = vadd.f32 %v663_v5, %v633_v45  ;;  %v595_v52 = vadd.f32 %v594_v4, %v1081_v8  ;;  %v639_v8 = vmul.f32 %v1086_v19, %v1086_v19 }
 0x12f   : > { %v596_v10 = vadd.f32 %v1066_v63, %v595_v52  ;;  %v665_v11 = vadd.f32 %v664_v7, %v634_v9  ;;  %v640_v63 = vmul.f32 %v874_v27, %v874_v27 }
 0x131   : > { %v666_v12 = vadd.f32 %v665_v11, %v635_v43  ;;  %v597_v13 = vadd.f32 %v1076_v6, %v596_v10 }
 0x133   : > { %v598_v14 = vadd.f32 %v597_v13, %v524_v21  ;;  %v667_v15 = vadd.f32 %v666_v12, %v636_v50 }
 0x135   : > { %v668_v16 = vadd.f32 %v667_v15, %v637_v1  ;;  %v599_v17 = vadd.f32 %v598_v14, %v527_v31 }
 0x137   : > { %v600_v20 = vadd.f32 %v1086_v19, %v599_v17  ;;  %v669_v22 = vadd.f32 %v668_v16, %v638_v18 }
 0x139   : > { %v601_v23 = vadd.f32 %v874_v27, %v600_v20  ;;  %v670_v24 = vadd.f32 %v669_v22, %v639_v8 }
 0x13b   : > { %v602_v25 = vrot.slane %v601_v23, 4  ;;  %v671_v29 = vadd.f32 %v670_v24, %v640_v63 }
 0x13d   : > { %v603_v6 = vadd.f32 %v602_v25, %v601_v23  ;;  %v672_v33 = vrot.slane %v671_v29, 4 }
 0x13f   : > { %v604_v21 = vrot.slane %v603_v6, 2  ;;  %v673_v34 = vadd.f32 %v672_v33, %v671_v29 }
 0x141   : > { %v605_v35 = vadd.f32 %v604_v21, %v603_v6  ;;  %v674_v36 = vrot.slane %v673_v34, 2 }
 0x143   : > { %v606_v31 = vrot.slane %v605_v35, 1  ;;  %v675_v37 = vadd.f32 %v674_v36, %v673_v34 }
 0x145   : > { %v607_v38 = vadd.f32 %v606_v31, %v605_v35  ;;  %v676_v39 = vrot.slane %v675_v37, 1 }
 0x147   : > { %608 = vst [vmem:[%s1017_s11] sm:$0x1] %v607_v38  ;;  %v677_v19 = vadd.f32 %v676_v39, %v675_v37 }
 0x149   : > { %678 = vst [vmem:[%s1017_s11 + $0x1] sm:$0x1] %v677_v19 }
 0x14a PF: > { %s14_s12 = sadd.s32 1, %s930_s12  }
 0x14b   : > { %p11_p5 = scmp.ge.s32.totalorder %s14_s12, 4  }
 0x14d   :  { %13 = sbr.rel (!%p11_p5) target bundleno = 1 (0x1), region = 70 }

// kernel: bottleneck_forward.6
= control target key start
LH: loop header
LB: loop body
LE: loop exit
PB: predicated region body
PF: predicated region fallthrough
CT: control target
= control target key end

     0   :  { %s1568_s21 = smov 0   ;;  %s1777_s0 = inlined_call_operand.vmem [shape: f32[512,128], index: 0, kind: input, shape index: {}]   ;;  %s1778_s1 = inlined_call_operand.vmem [shape: f32[1,128], index: 1, kind: input, shape index: {}]   ;;  %s1779_s2 = inlined_call_operand.vmem [shape: f32[1,128], index: 2, kind: input, shape index: {}]   ;;  %s1780_s3 = inlined_call_operand.vmem [shape: bf16[128,128], index: 3, kind: input, shape index: {}]   ;;  %s1781_s4 = inlined_call_operand.vmem [shape: bf16[512,128], index: 4, kind: input, shape index: {}]   ;;  %s1782_s5 = inlined_call_operand.vmem [shape: bf16[128,128], index: 5, kind: input, shape index: {}]   ;;  %s1783_s6 = inlined_call_operand.vmem [shape: f32[2,8,128], index: 6, kind: output, shape index: {}]  }
   0x1 LB: > { %s1574_s22 = sadd.s32 4294967295, %s1530_s21   ;;  %p1297_p0 = scmp.ge.s32.totalorder %s1530_s21, 1  ;;  %s1530_s21 = sphi %s1568_s21, %s16_s21  }
   0x2   : > { %p224_p1 = scmp.lt.s32.totalorder %s1530_s21, 3 }
   0x4   : > { %p225_p2 = pnand %p1297_p0, %p224_p1 }
   0x5   : > { %v1492_v0 = vld [vmem:[%s1780_s3] sm:$0xff] (!%p225_p2)   ;;  %s1298_s25 = sshll.u32 (!%p225_p2), %s1574_s22, 5  ;;  %v1494_v2 = vld [vmem:[%s1780_s3 + $0x8] sm:$0xff] (!%p225_p2)   ;;  %v1496_v4 = vld [vmem:[%s1780_s3 + $0x10] sm:$0xff] (!%p225_p2)   ;;  %p270_p4 = scmp.lt.s32.totalorder (!%p225_p2), %s1574_s22, 1 }
   0x6   : > { %228 = sbr.rel (%p225_p2) target bundleno = 331 (0x14b), region = 44  ;;  %v1493_v1 = vld [vmem:[%s1782_s5] sm:$0xff] (!%p225_p2)   ;;  %1387 = vmatprep.subr.bf16.mxu0 (!%p225_p2), %v1492_v0  ;;  %p259_p3 = scmp.lt.s32.totalorder (!%p225_p2), %s1298_s25, 63  ;;  %v1495_v3 = vld [vmem:[%s1782_s5 + $0x8] sm:$0xff] (!%p225_p2)   ;;  %v1497_v5 = vld [vmem:[%s1782_s5 + $0x10] sm:$0xff] (!%p225_p2)  }
   0x7   : > { %1435 = vmatprep.subr.bf16.mxu1 (!%p225_p2), %v1493_v1  ;;  %1388 = vmatpush3.bf16.msra.mxu0 (!%p225_p2), %v1492_v0  ;;  %v1498_v6 = vld [vmem:[%s1780_s3 + $0x18] sm:$0xff] (!%p225_p2)   ;;  %v1500_v8 = vld [vmem:[%s1780_s3 + $0x20] sm:$0xff] (!%p225_p2)   ;;  %v1502_v10 = vld [vmem:[%s1780_s3 + $0x28] sm:$0xff] (!%p225_p2)  }
   0x8   : > { %1436 = vmatpush3.bf16.msra.mxu1 (!%p225_p2), %v1493_v1  ;;  %1389 = vmatprep.subr.bf16.mxu0 (!%p225_p2), %v1494_v2  ;;  %v1499_v7 = vld [vmem:[%s1782_s5 + $0x18] sm:$0xff] (!%p225_p2)   ;;  %v1501_v9 = vld [vmem:[%s1782_s5 + $0x20] sm:$0xff] (!%p225_p2)   ;;  %v1503_v11 = vld [vmem:[%s1782_s5 + $0x28] sm:$0xff] (!%p225_p2)  }
   0x9   : > { %1437 = vmatprep.subr.bf16.mxu1 (!%p225_p2), %v1495_v3  ;;  %v1630_v14 = vld [vmem:[%s1778_s1] ss:$0 sm:$0xff] (!%p225_p2)  ;;  %v1504_v21 = vld [vmem:[%s1780_s3 + $0x30] sm:$0xff] (!%p225_p2)   ;;  %v1506_v31 = vld [vmem:[%s1780_s3 + $0x38] sm:$0xff] (!%p225_p2)  }
   0xa   : > { %v1637_v17 = vld [vmem:[%s1779_s2] ss:$0 sm:$0xff] (!%p225_p2)  ;;  %v1505_v28 = vld [vmem:[%s1782_s5 + $0x30] sm:$0xff] (!%p225_p2)   ;;  %v1507_v43 = vld [vmem:[%s1782_s5 + $0x38] sm:$0xff] (!%p225_p2)  }
   0xb   : > { %1390 = vmatpush3.bf16.msra.mxu0 (!%p225_p2), %v1494_v2 }
   0xc   : > { %1438 = vmatpush3.bf16.msra.mxu1 (!%p225_p2), %v1495_v3  ;;  %1391 = vmatprep.subr.bf16.mxu0 (!%p225_p2), %v1496_v4 }
   0xd   : > { %s1785_s25 = smov (!%p259_p3, %s1298_s25), 63  ;;  %1439 = vmatprep.subr.bf16.mxu1 %v1497_v5  ;;  %s1787_s22 = smov (!%p270_p4, %s1574_s22), 1 }
   0xe   : > { %s1299_s16 = sshll.u32 %s1785_s25, 3  ;;  %s1301_s19 = sshll.u32 %s1785_s25, 2 }
   0xf   : > { %1392 = vmatpush3.bf16.msra.mxu0 %v1496_v4  ;;  %s1612_s27 = scalar_lea.vmem %s1777_s0, %s1299_s16  ;;  %s1623_s9 = scalar_lea.vmem %s1781_s4, %s1301_s19 }
  0x10   : > { %1440 = vmatpush3.bf16.msra.mxu1 %v1497_v5  ;;  %1393 = vmatprep.subr.bf16.mxu0 %v1498_v6  ;;  %v275_v12 = vld [vmem:[%s1612_s27] sm:$0xff]  ;;  %v276_v13 = vld [vmem:[%s1612_s27 + $0x8] sm:$0xff]  ;;  %v277_v19 = vld [vmem:[%s1612_s27 + $0x10] sm:$0xff]  ;;  %s1302_s24 = sshll.u32 %s1787_s22, 3 }
  0x11   : > { %1441 = vmatprep.subr.bf16.mxu1 %v1499_v7  ;;  %v314_v15 = vmul.f32 %v1630_v14, %v275_v12  ;;  %v315_v16 = vmul.f32 %v1630_v14, %v276_v13  ;;  %v1508_v18 = vld [vmem:[%s1623_s9] sm:$0xff]   ;;  %v278_v20 = vld [vmem:[%s1612_s27 + $0x18] sm:$0xff]  ;;  %v316_v24 = vmul.f32 %v1630_v14, %v277_v19  ;;  %v280_v27 = vld [vmem:[%s1612_s27 + $0x28] sm:$0xff]  ;;  %s1767_s28 = scalar_lea.vmem %s1783_s6, %s1302_s24 }
  0x12   : > { %v317_v25 = vmul.f32 %v1630_v14, %v278_v20  ;;  %v279_v26 = vld [vmem:[%s1612_s27 + $0x20] sm:$0xff]  ;;  %1451 = vmatprep.mubr.bf16.mxu1 %v1508_v18  ;;  %v319_v35 = vmul.f32 %v1630_v14, %v280_v27  ;;  %v281_v37 = vld [vmem:[%s1612_s27 + $0x30] sm:$0xff]  ;;  %v282_v38 = vld [vmem:[%s1612_s27 + $0x38] sm:$0xff] }
  0x13   : > { %1394 = vmatpush3.bf16.msra.mxu0 %v1498_v6  ;;  %v353_v22 = vadd.f32 %v1637_v17, %v314_v15  ;;  %v354_v23 = vadd.f32 %v1637_v17, %v315_v16  ;;  %v355_v32 = vadd.f32 %v1637_v17, %v316_v24  ;;  %v318_v34 = vmul.f32 %v1630_v14, %v279_v26  ;;  %v283_v39 = vld [vmem:[%s1612_s27 + $0x40] sm:$0xff]  ;;  %v284_v42 = vld [vmem:[%s1612_s27 + $0x48] sm:$0xff]  ;;  %v285_v56 = vld [vmem:[%s1612_s27 + $0x50] sm:$0xff] }
  0x14   : > { %1442 = vmatpush3.bf16.msra.mxu1 %v1499_v7  ;;  %1395 = vmatprep.subr.bf16.mxu0 %v1500_v8  ;;  %v356_v33 = vadd.f32 %v1637_v17, %v317_v25  ;;  %v358_v41 = vadd.f32 %v1637_v17, %v319_v35  ;;  %v320_v46 = vmul.f32 %v1630_v14, %v281_v37  ;;  %v1509_v53 = vld [vmem:[%s1623_s9 + $0x8] sm:$0xff]   ;;  %v286_v57 = vld [vmem:[%s1612_s27 + $0x58] sm:$0xff]  ;;  %v287_v61 = vld [vmem:[%s1612_s27 + $0x60] sm:$0xff] }
  0x15   : > { %1443 = vmatprep.subr.bf16.mxu1 %v1501_v9  ;;  %v385_v29 = vmax.f32 %v353_v22, 0.0  ;;  %v386_v30 = vmax.f32 %v354_v23, 0.0  ;;  %v357_v40 = vadd.f32 %v1637_v17, %v318_v34  ;;  %v387_v44 = vmax.f32 %v355_v32, 0.0  ;;  %v1510_v62 = vld [vmem:[%s1623_s9 + $0x10] sm:$0xff]   ;;  %v288_v63 = vld [vmem:[%s1612_s27 + $0x68] sm:$0xff]  ;;  %v1512_v16 = vld [vmem:[%s1623_s9 + $0x20] sm:$0xff]  }
  0x16   : > { %v388_v45 = vmax.f32 %v356_v33, 0.0  ;;  %v321_v47 = vmul.f32 %v1630_v14, %v282_v38  ;;  %v390_v49 = vmax.f32 %v358_v41, 0.0  ;;  %v322_v50 = vmul.f32 %v1630_v14, %v283_v39  ;;  %v289_v13 = vld [vmem:[%s1612_s27 + $0x70] sm:$0xff]  ;;  %v290_v19 = vld [vmem:[%s1612_s27 + $0x78] sm:$0xff]  ;;  %v291_v20 = vld [vmem:[%s1612_s27 + $0x80] sm:$0xff] }
  0x17   : > { %1396 = vmatpush3.bf16.msra.mxu0 %v1500_v8  ;;  %v417_v36 = vpack.c.bf16 %v386_v30, %v385_v29  ;;  %v389_v48 = vmax.f32 %v357_v40, 0.0  ;;  %v323_v51 = vmul.f32 %v1630_v14, %v284_v42  ;;  %v359_v54 = vadd.f32 %v1637_v17, %v320_v46  ;;  %v1511_v8 = vld [vmem:[%s1623_s9 + $0x18] sm:$0xff]   ;;  %v1513_v39 = vld [vmem:[%s1623_s9 + $0x28] sm:$0xff]   ;;  %v293_v42 = vld [vmem:[%s1612_s27 + $0x90] sm:$0xff] }
  0x18   : > { %1444 = vmatpush3.bf16.msra.mxu1 %v1501_v9  ;;  %1397 = vmatprep.subr.bf16.mxu0 %v1502_v10  ;;  %v418_v52 = vpack.c.bf16 %v388_v45, %v387_v44  ;;  %v360_v55 = vadd.f32 %v1637_v17, %v321_v47  ;;  %v361_v59 = vadd.f32 %v1637_v17, %v322_v50  ;;  %v1514_v45 = vld [vmem:[%s1623_s9 + $0x30] sm:$0xff]   ;;  %v295_v46 = vld [vmem:[%s1612_s27 + $0xa0] sm:$0xff]  ;;  %v296_v47 = vld [vmem:[%s1612_s27 + $0xa8] sm:$0xff] }
  0x19   : > { %1445 = vmatprep.subr.bf16.mxu1 %v1503_v11  ;;  %1403 = vmatprep.mubr.bf16.mxu0 %v417_v36  ;;  %v419_v58 = vpack.c.bf16 %v390_v49, %v389_v48  ;;  %v362_v60 = vadd.f32 %v1637_v17, %v323_v51  ;;  %v324_v0 = vmul.f32 %v1630_v14, %v285_v56  ;;  %v391_v1 = vmax.f32 %v359_v54, 0.0 }
  0x1a   : > { %v392_v2 = vmax.f32 %v360_v55, 0.0  ;;  %v325_v3 = vmul.f32 %v1630_v14, %v286_v57  ;;  %v326_v4 = vmul.f32 %v1630_v14, %v287_v61  ;;  %v393_v5 = vmax.f32 %v361_v59, 0.0 }
  0x1b   : > { %1398 = vmatpush3.bf16.msra.mxu0 %v1502_v10  ;;  %v394_v6 = vmax.f32 %v362_v60, 0.0  ;;  %v327_v7 = vmul.f32 %v1630_v14, %v288_v63  ;;  %v363_v9 = vadd.f32 %v1637_v17, %v324_v0  ;;  %v328_v23 = vmul.f32 %v1630_v14, %v289_v13 }
  0x1c   : > { %1446 = vmatpush3.bf16.msra.mxu1 %v1503_v11  ;;  %1399 = vmatprep.subr.bf16.mxu0 %v1504_v21  ;;  %v420_v10 = vpack.c.bf16 %v392_v2, %v391_v1  ;;  %v364_v11 = vadd.f32 %v1637_v17, %v325_v3  ;;  %v365_v12 = vadd.f32 %v1637_v17, %v326_v4  ;;  %v297_v2 = vld [vmem:[%s1612_s27 + $0xb0] sm:$0xff]  ;;  %v298_v3 = vld [vmem:[%s1612_s27 + $0xb8] sm:$0xff]  ;;  %v1516_v4 = vld [vmem:[%s1623_s9 + $0x40] sm:$0xff]  }
  0x1d   : > { %1447 = vmatprep.subr.bf16.mxu1 %v1505_v28  ;;  %v421_v15 = vpack.c.bf16 %v394_v6, %v393_v5  ;;  %v366_v18 = vadd.f32 %v1637_v17, %v327_v7  ;;  %v395_v22 = vmax.f32 %v363_v9, 0.0  ;;  %v329_v26 = vmul.f32 %v1630_v14, %v290_v19  ;;  %v299_v5 = vld [vmem:[%s1612_s27 + $0xc0] sm:$0xff]  ;;  %v300_v6 = vld [vmem:[%s1612_s27 + $0xc8] sm:$0xff] }
  0x1e   : > { %v396_v24 = vmax.f32 %v364_v11, 0.0  ;;  %v397_v25 = vmax.f32 %v365_v12, 0.0  ;;  %v330_v27 = vmul.f32 %v1630_v14, %v291_v20  ;;  %v367_v33 = vadd.f32 %v1637_v17, %v328_v23  ;;  %v1517_v20 = vld [vmem:[%s1623_s9 + $0x48] sm:$0xff]  }
  0x1f   : > { %1400 = vmatpush3.bf16.msra.mxu0 %v1504_v21  ;;  %v292_v21 = vld [vmem:[%s1612_s27 + $0x88] sm:$0xff]  ;;  %v398_v29 = vmax.f32 %v366_v18, 0.0  ;;  %v368_v36 = vadd.f32 %v1637_v17, %v329_v26  ;;  %v334_v56 = vmul.f32 %v1630_v14, %v295_v46  ;;  %v335_v57 = vmul.f32 %v1630_v14, %v296_v47  ;;  %v1518_v26 = vld [vmem:[%s1623_s9 + $0x50] sm:$0xff]  }
  0x20   : > { %1448 = vmatpush3.bf16.msra.mxu1 %v1505_v28  ;;  %1401 = vmatprep.subr.bf16.mxu0 %v1506_v31  ;;  %v305_v28 = vld [vmem:[%s1612_s27 + $0xf0] sm:$0xff]  ;;  %v331_v30 = vmul.f32 %v1630_v14, %v292_v21  ;;  %v422_v35 = vpack.c.bf16 %v396_v24, %v395_v22  ;;  %v369_v37 = vadd.f32 %v1637_v17, %v330_v27  ;;  %v399_v49 = vmax.f32 %v367_v33, 0.0  ;;  %v303_v27 = vld [vmem:[%s1612_s27 + $0xe0] sm:$0xff] }
  0x21   : > { %1449 = vmatprep.subr.bf16.mxu1 %v1507_v43  ;;  %v344_v32 = vmul.f32 %v1630_v14, %v305_v28  ;;  %v423_v40 = vpack.c.bf16 %v398_v29, %v397_v25  ;;  %v400_v51 = vmax.f32 %v368_v36, 0.0  ;;  %v373_v0 = vadd.f32 %v1637_v17, %v334_v56  ;;  %v301_v24 = vld [vmem:[%s1612_s27 + $0xd0] sm:$0xff]  ;;  %v302_v25 = vld [vmem:[%s1612_s27 + $0xd8] sm:$0xff]  ;;  %v304_v28 = vld [vmem:[%s1612_s27 + $0xe8] sm:$0xff] }
  0x22   : > { %v370_v41 = vadd.f32 %v1637_v17, %v331_v30  ;;  %v374_v1 = vadd.f32 %v1637_v17, %v335_v57  ;;  %v336_v9 = vmul.f32 %v1630_v14, %v297_v2  ;;  %v338_v13 = vmul.f32 %v1630_v14, %v299_v5 }
  0x23   : > { %1402 = vmatpush3.bf16.msra.mxu0 %v1506_v31  ;;  %v306_v31 = vld [vmem:[%s1612_s27 + $0xf8] sm:$0xff]  ;;  %v383_v38 = vadd.f32 %v1637_v17, %v344_v32  ;;  %v424_v59 = vpack.c.bf16 %v400_v51, %v399_v49  ;;  %v405_v11 = vmax.f32 %v373_v0, 0.0  ;;  %v341_v32 = vmul.f32 %v1630_v14, %v302_v25  ;;  %v1521_v49 = vld [vmem:[%s1623_s9 + $0x68] sm:$0xff]   ;;  %v1522_v51 = vld [vmem:[%s1623_s9 + $0x70] sm:$0xff]  }
  0x24   : > { %1450 = vmatpush3.bf16.msra.mxu1 %v1507_v43  ;;  %v345_v34 = vmul.f32 %v1630_v14, %v306_v31  ;;  %v294_v43 = vld [vmem:[%s1612_s27 + $0x98] sm:$0xff]  ;;  %v402_v55 = vmax.f32 %v370_v41, 0.0  ;;  %v406_v12 = vmax.f32 %v374_v1, 0.0  ;;  %v375_v18 = vadd.f32 %v1637_v17, %v336_v9 }
  0x25   : > { %v415_v48 = vmax.f32 %v383_v38, 0.0  ;;  %v333_v54 = vmul.f32 %v1630_v14, %v294_v43  ;;  %v377_v22 = vadd.f32 %v1637_v17, %v338_v13  ;;  %v340_v31 = vmul.f32 %v1630_v14, %v301_v24 }
  0x26   : > { %1404 = vmatmul.mubr.bf16.vlgmr.msra.gmra.mrb[0].mxu0 %v418_v52  ;;  %v384_v44 = vadd.f32 %v1637_v17, %v345_v34  ;;  %v401_v52 = vmax.f32 %v369_v37, 0.0  ;;  %v427_v21 = vpack.c.bf16 %v406_v12, %v405_v11  ;;  %v407_v29 = vmax.f32 %v375_v18, 0.0 }
  0x27   : > { %1452 = vmatmul.mubr.bf16.vlgmr.msra.gmra.mrb[0].mxu1 %v1509_v53  ;;  %1407 = vmatprep.mubr.bf16.mxu0 %v419_v58  ;;  %v332_v53 = vmul.f32 %v1630_v14, %v293_v42  ;;  %v372_v61 = vadd.f32 %v1637_v17, %v333_v54  ;;  %v409_v33 = vmax.f32 %v377_v22, 0.0  ;;  %v343_v36 = vmul.f32 %v1630_v14, %v304_v28 }
  0x28   : > { %1455 = vmatprep.mubr.bf16.mxu1 %v1510_v62  ;;  %v416_v50 = vmax.f32 %v384_v44, 0.0  ;;  %v1515_v62 = vld [vmem:[%s1623_s9 + $0x38] sm:$0xff]   ;;  %v425_v63 = vpack.c.bf16 %v402_v55, %v401_v52  ;;  %v379_v38 = vadd.f32 %v1637_v17, %v340_v31  ;;  %v1520_v44 = vld [vmem:[%s1623_s9 + $0x60] sm:$0xff]   ;;  %v1532_v52 = vmov 0.0  }
  0x29   : > { %v371_v60 = vadd.f32 %v1637_v17, %v332_v53  ;;  %v382_v43 = vadd.f32 %v1637_v17, %v343_v36  ;;  %1227 = vst [vmem:[%s1767_s28 + $0x4] sm:$0xf] %v1532_v52 }
  0x2a   : > { %v1722_v58 = vpack.c.bf16 %v416_v50, %v415_v48 }
  0x2b   : > { %v403_v7 = vmax.f32 %v371_v60, 0.0  ;;  %v414_v47 = vmax.f32 %v382_v43, 0.0 }
  0x2e   : > { %1408 = vmatmul.mubr.bf16.gmra.mrb[4].mxu0 %v420_v10  ;;  %v337_v10 = vmul.f32 %v1630_v14, %v298_v3 }
  0x2f   : > { %1456 = vmatmul.mubr.bf16.gmra.mrb[4].mxu1 %v1511_v8  ;;  %1411 = vmatprep.mubr.bf16.mxu0 %v421_v15  ;;  %v404_v8 = vmax.f32 %v372_v61, 0.0  ;;  %v339_v15 = vmul.f32 %v1630_v14, %v300_v6 }
  0x30   : > { %1459 = vmatprep.mubr.bf16.mxu1 %v1512_v16  ;;  %v376_v19 = vadd.f32 %v1637_v17, %v337_v10 }
  0x31   : > { %v426_v16 = vpack.c.bf16 %v404_v8, %v403_v7  ;;  %v378_v23 = vadd.f32 %v1637_v17, %v339_v15 }
  0x32   : > { %v408_v30 = vmax.f32 %v376_v19, 0.0 }
  0x33   : > { %v410_v34 = vmax.f32 %v378_v23, 0.0 }
  0x34   : > { %v428_v37 = vpack.c.bf16 %v408_v30, %v407_v29 }
  0x35   : > { %v429_v41 = vpack.c.bf16 %v410_v34, %v409_v33 }
  0x36   : > { %1412 = vmatmul.mubr.bf16.gmra.mrb[8].mxu0 %v422_v35  ;;  %v342_v35 = vmul.f32 %v1630_v14, %v303_v27 }
  0x37   : > { %1460 = vmatmul.mubr.bf16.gmra.mrb[8].mxu1 %v1513_v39  ;;  %1415 = vmatprep.mubr.bf16.mxu0 %v423_v40  ;;  %v380_v39 = vadd.f32 %v1637_v17, %v341_v32  ;;  %v1519_v40 = vld [vmem:[%s1623_s9 + $0x58] sm:$0xff]  }
  0x38   : > { %1463 = vmatprep.mubr.bf16.mxu1 %v1514_v45  ;;  %v381_v42 = vadd.f32 %v1637_v17, %v342_v35  ;;  %v411_v45 = vmax.f32 %v379_v38, 0.0  ;;  %v1523_v17 = vld [vmem:[%s1623_s9 + $0x78] sm:$0xff]  }
  0x39   : > { %v412_v46 = vmax.f32 %v380_v39, 0.0 }
  0x3a   : > { %v413_v14 = vmax.f32 %v381_v42, 0.0 }
  0x3b   : > { %v430_v48 = vpack.c.bf16 %v412_v46, %v411_v45 }
  0x3c   : > { %v431_v50 = vpack.c.bf16 %v414_v47, %v413_v14 }
  0x3e   : > { %1416 = vmatmul.mubr.bf16.gmra.mrb[12].mxu0 %v424_v59 }
  0x3f   : > { %1464 = vmatmul.mubr.bf16.gmra.mrb[12].mxu1 %v1515_v62  ;;  %1419 = vmatprep.mubr.bf16.mxu0 %v425_v63 }
  0x40   : > { %1467 = vmatprep.mubr.bf16.mxu1 %v1516_v4 }
  0x46   : > { %1420 = vmatmul.mubr.bf16.gmra.mrb[16].mxu0 %v426_v16 }
  0x47   : > { %1468 = vmatmul.mubr.bf16.gmra.mrb[16].mxu1 %v1517_v20  ;;  %1423 = vmatprep.mubr.bf16.mxu0 %v427_v21 }
  0x48   : > { %1471 = vmatprep.mubr.bf16.mxu1 %v1518_v26 }
  0x4e   : > { %1424 = vmatmul.mubr.bf16.gmra.mrb[20].mxu0 %v428_v37 }
  0x4f   : > { %1472 = vmatmul.mubr.bf16.gmra.mrb[20].mxu1 %v1519_v40  ;;  %1427 = vmatprep.mubr.bf16.mxu0 %v429_v41 }
  0x50   : > { %1475 = vmatprep.mubr.bf16.mxu1 %v1520_v44 }
  0x56   : > { %1428 = vmatmul.mubr.bf16.gmra.mrb[24].mxu0 %v430_v48 }
  0x57   : > { %1476 = vmatmul.mubr.bf16.gmra.mrb[24].mxu1 %v1521_v49  ;;  %1431 = vmatprep.mubr.bf16.mxu0 %v431_v50 }
  0x58   : > { %1479 = vmatprep.mubr.bf16.mxu1 %v1522_v51 }
  0x5e   : > { %1432 = vmatmul.mubr.bf16.gmra.mrb[28].mxu0 %v1722_v58 }
  0x5f   : > { %1480 = vmatmul.mubr.bf16.gmra.mrb[28].mxu1 %v1523_v17 }
  0xf9   : > { %v1405_v53 = vpop.f32.mrb[0].mxu0 }
  0xfa   : > { %v1453_v54 = vpop.f32.mrb[0].mxu1  ;;  %v531_v55 = vpop.f32.mrb[1].mxu0  ;;  %v698_v3 = vmul.f32 %v1405_v53, %v1405_v53 }
  0xfb   : > { %v992_v56 = vpop.f32.mrb[1].mxu1  ;;  %v1406_v57 = vpop.f32.mrb[2].mxu0  ;;  %v696_v58 = vmul.f32 %v531_v55, %v531_v55  ;;  %v1159_v6 = vmul.f32 %v1453_v54, %v1453_v54 }
  0xfc   : > { %v1454_v59 = vpop.f32.mrb[2].mxu1  ;;  %v534_v60 = vpop.f32.mrb[3].mxu0  ;;  %v1157_v0 = vmul.f32 %v992_v56, %v992_v56  ;;  %v699_v9 = vmul.f32 %v1406_v57, %v1406_v57 }
  0xfd   : > { %v658_v61 = vadd.f32 %v534_v60, %v531_v55  ;;  %v697_v62 = vmul.f32 %v534_v60, %v534_v60  ;;  %v995_v63 = vpop.f32.mrb[3].mxu1  ;;  %v1160_v13 = vmul.f32 %v1454_v59, %v1454_v59 }
  0xfe   : > { %v1119_v1 = vadd.f32 %v995_v63, %v992_v56  ;;  %v1158_v2 = vmul.f32 %v995_v63, %v995_v63 }
  0xff   : > { %v659_v4 = vadd.f32 %v1405_v53, %v658_v61  ;;  %v728_v5 = vadd.f32 %v697_v62, %v696_v58 }
 0x100   : > { %v1120_v7 = vadd.f32 %v1453_v54, %v1119_v1  ;;  %v1189_v8 = vadd.f32 %v1158_v2, %v1157_v0 }
 0x101   : > { %v729_v10 = vadd.f32 %v728_v5, %v698_v3  ;;  %v1409_v11 = vpop.f32.mrb[4].mxu0  ;;  %v660_v12 = vadd.f32 %v1406_v57, %v659_v4 }
 0x102   : > { %v1190_v15 = vadd.f32 %v1189_v8, %v1159_v6  ;;  %v1457_v16 = vpop.f32.mrb[4].mxu1  ;;  %v547_v18 = vpop.f32.mrb[5].mxu0  ;;  %v1121_v19 = vadd.f32 %v1454_v59, %v1120_v7  ;;  %v702_v37 = vmul.f32 %v1409_v11, %v1409_v11 }
 0x103   : > { %v661_v20 = vadd.f32 %v660_v12, %v547_v18  ;;  %v700_v21 = vmul.f32 %v547_v18, %v547_v18  ;;  %v730_v22 = vadd.f32 %v729_v10, %v699_v9  ;;  %v1008_v23 = vpop.f32.mrb[5].mxu1  ;;  %v1410_v24 = vpop.f32.mrb[6].mxu0  ;;  %v1163_v40 = vmul.f32 %v1457_v16, %v1457_v16 }
 0x104   : > { %v1122_v25 = vadd.f32 %v1121_v19, %v1008_v23  ;;  %v1161_v26 = vmul.f32 %v1008_v23, %v1008_v23  ;;  %v1191_v27 = vadd.f32 %v1190_v15, %v1160_v13  ;;  %v1458_v28 = vpop.f32.mrb[6].mxu1  ;;  %v550_v29 = vpop.f32.mrb[7].mxu0  ;;  %v703_v43 = vmul.f32 %v1410_v24, %v1410_v24 }
 0x105   : > { %v731_v30 = vadd.f32 %v730_v22, %v700_v21  ;;  %v662_v31 = vadd.f32 %v661_v20, %v550_v29  ;;  %v701_v32 = vmul.f32 %v550_v29, %v550_v29  ;;  %v1011_v33 = vpop.f32.mrb[7].mxu1  ;;  %v1164_v14 = vmul.f32 %v1458_v28, %v1458_v28 }
 0x106   : > { %v1192_v34 = vadd.f32 %v1191_v27, %v1161_v26  ;;  %v1123_v35 = vadd.f32 %v1122_v25, %v1011_v33  ;;  %v1162_v36 = vmul.f32 %v1011_v33, %v1011_v33 }
 0x107   : > { %v663_v38 = vadd.f32 %v1409_v11, %v662_v31  ;;  %v732_v39 = vadd.f32 %v731_v30, %v701_v32 }
 0x108   : > { %v1124_v41 = vadd.f32 %v1457_v16, %v1123_v35  ;;  %v1193_v42 = vadd.f32 %v1192_v34, %v1162_v36 }
 0x109   : > { %v733_v44 = vadd.f32 %v732_v39, %v702_v37  ;;  %v1413_v45 = vpop.f32.mrb[8].mxu0  ;;  %v664_v46 = vadd.f32 %v1410_v24, %v663_v38 }
 0x10a   : > { %v1194_v47 = vadd.f32 %v1193_v42, %v1163_v40  ;;  %v1461_v48 = vpop.f32.mrb[8].mxu1  ;;  %v563_v49 = vpop.f32.mrb[9].mxu0  ;;  %v1125_v50 = vadd.f32 %v1458_v28, %v1124_v41  ;;  %v706_v3 = vmul.f32 %v1413_v45, %v1413_v45 }
 0x10b   : > { %v665_v51 = vadd.f32 %v664_v46, %v563_v49  ;;  %v704_v17 = vmul.f32 %v563_v49, %v563_v49  ;;  %v734_v52 = vadd.f32 %v733_v44, %v703_v43  ;;  %v1024_v53 = vpop.f32.mrb[9].mxu1  ;;  %v1414_v54 = vpop.f32.mrb[10].mxu0  ;;  %v1167_v6 = vmul.f32 %v1461_v48, %v1461_v48 }
 0x10c   : > { %v1126_v55 = vadd.f32 %v1125_v50, %v1024_v53  ;;  %v1165_v56 = vmul.f32 %v1024_v53, %v1024_v53  ;;  %v1195_v57 = vadd.f32 %v1194_v47, %v1164_v14  ;;  %v1462_v59 = vpop.f32.mrb[10].mxu1  ;;  %v566_v60 = vpop.f32.mrb[11].mxu0  ;;  %v707_v9 = vmul.f32 %v1414_v54, %v1414_v54 }
 0x10d   : > { %v735_v58 = vadd.f32 %v734_v52, %v704_v17  ;;  %v666_v61 = vadd.f32 %v665_v51, %v566_v60  ;;  %v705_v62 = vmul.f32 %v566_v60, %v566_v60  ;;  %v1027_v63 = vpop.f32.mrb[11].mxu1  ;;  %v1168_v13 = vmul.f32 %v1462_v59, %v1462_v59 }
 0x10e   : > { %v1196_v0 = vadd.f32 %v1195_v57, %v1165_v56  ;;  %v1127_v1 = vadd.f32 %v1126_v55, %v1027_v63  ;;  %v1166_v2 = vmul.f32 %v1027_v63, %v1027_v63 }
 0x10f   : > { %v667_v4 = vadd.f32 %v1413_v45, %v666_v61  ;;  %v736_v5 = vadd.f32 %v735_v58, %v705_v62 }
 0x110   : > { %v1128_v7 = vadd.f32 %v1461_v48, %v1127_v1  ;;  %v1197_v8 = vadd.f32 %v1196_v0, %v1166_v2 }
 0x111   : > { %v737_v10 = vadd.f32 %v736_v5, %v706_v3  ;;  %v1417_v11 = vpop.f32.mrb[12].mxu0  ;;  %v668_v12 = vadd.f32 %v1414_v54, %v667_v4 }
 0x112   : > { %v1198_v15 = vadd.f32 %v1197_v8, %v1167_v6  ;;  %v1465_v16 = vpop.f32.mrb[12].mxu1  ;;  %v579_v18 = vpop.f32.mrb[13].mxu0  ;;  %v1129_v19 = vadd.f32 %v1462_v59, %v1128_v7  ;;  %v710_v37 = vmul.f32 %v1417_v11, %v1417_v11 }
 0x113   : > { %v669_v20 = vadd.f32 %v668_v12, %v579_v18  ;;  %v708_v21 = vmul.f32 %v579_v18, %v579_v18  ;;  %v738_v22 = vadd.f32 %v737_v10, %v707_v9  ;;  %v1040_v23 = vpop.f32.mrb[13].mxu1  ;;  %v1418_v24 = vpop.f32.mrb[14].mxu0  ;;  %v1171_v40 = vmul.f32 %v1465_v16, %v1465_v16 }
 0x114   : > { %v1130_v25 = vadd.f32 %v1129_v19, %v1040_v23  ;;  %v1169_v26 = vmul.f32 %v1040_v23, %v1040_v23  ;;  %v1199_v27 = vadd.f32 %v1198_v15, %v1168_v13  ;;  %v1466_v28 = vpop.f32.mrb[14].mxu1  ;;  %v582_v29 = vpop.f32.mrb[15].mxu0  ;;  %v711_v43 = vmul.f32 %v1418_v24, %v1418_v24 }
 0x115   : > { %v739_v30 = vadd.f32 %v738_v22, %v708_v21  ;;  %v670_v31 = vadd.f32 %v669_v20, %v582_v29  ;;  %v709_v32 = vmul.f32 %v582_v29, %v582_v29  ;;  %v1043_v33 = vpop.f32.mrb[15].mxu1  ;;  %v1172_v14 = vmul.f32 %v1466_v28, %v1466_v28 }
 0x116   : > { %v1200_v34 = vadd.f32 %v1199_v27, %v1169_v26  ;;  %v1131_v35 = vadd.f32 %v1130_v25, %v1043_v33  ;;  %v1170_v36 = vmul.f32 %v1043_v33, %v1043_v33 }
 0x117   : > { %v671_v38 = vadd.f32 %v1417_v11, %v670_v31  ;;  %v740_v39 = vadd.f32 %v739_v30, %v709_v32 }
 0x118   : > { %v1132_v41 = vadd.f32 %v1465_v16, %v1131_v35  ;;  %v1201_v42 = vadd.f32 %v1200_v34, %v1170_v36 }
 0x119   : > { %v741_v44 = vadd.f32 %v740_v39, %v710_v37  ;;  %v1421_v45 = vpop.f32.mrb[16].mxu0  ;;  %v672_v46 = vadd.f32 %v1418_v24, %v671_v38 }
 0x11a   : > { %v1202_v47 = vadd.f32 %v1201_v42, %v1171_v40  ;;  %v1469_v48 = vpop.f32.mrb[16].mxu1  ;;  %v595_v49 = vpop.f32.mrb[17].mxu0  ;;  %v1133_v50 = vadd.f32 %v1466_v28, %v1132_v41  ;;  %v714_v3 = vmul.f32 %v1421_v45, %v1421_v45 }
 0x11b   : > { %v673_v51 = vadd.f32 %v672_v46, %v595_v49  ;;  %v712_v17 = vmul.f32 %v595_v49, %v595_v49  ;;  %v742_v52 = vadd.f32 %v741_v44, %v711_v43  ;;  %v1056_v53 = vpop.f32.mrb[17].mxu1  ;;  %v1422_v54 = vpop.f32.mrb[18].mxu0  ;;  %v1175_v6 = vmul.f32 %v1469_v48, %v1469_v48 }
 0x11c   : > { %v1134_v55 = vadd.f32 %v1133_v50, %v1056_v53  ;;  %v1173_v56 = vmul.f32 %v1056_v53, %v1056_v53  ;;  %v1203_v57 = vadd.f32 %v1202_v47, %v1172_v14  ;;  %v1470_v59 = vpop.f32.mrb[18].mxu1  ;;  %v598_v60 = vpop.f32.mrb[19].mxu0  ;;  %v715_v9 = vmul.f32 %v1422_v54, %v1422_v54 }
 0x11d   : > { %v743_v58 = vadd.f32 %v742_v52, %v712_v17  ;;  %v674_v61 = vadd.f32 %v673_v51, %v598_v60  ;;  %v713_v62 = vmul.f32 %v598_v60, %v598_v60  ;;  %v1059_v63 = vpop.f32.mrb[19].mxu1  ;;  %v1176_v13 = vmul.f32 %v1470_v59, %v1470_v59 }
 0x11e   : > { %v1204_v0 = vadd.f32 %v1203_v57, %v1173_v56  ;;  %v1135_v1 = vadd.f32 %v1134_v55, %v1059_v63  ;;  %v1174_v2 = vmul.f32 %v1059_v63, %v1059_v63 }
 0x11f   : > { %v675_v4 = vadd.f32 %v1421_v45, %v674_v61  ;;  %v744_v5 = vadd.f32 %v743_v58, %v713_v62 }
 0x120   : > { %v1136_v7 = vadd.f32 %v1469_v48, %v1135_v1  ;;  %v1205_v8 = vadd.f32 %v1204_v0, %v1174_v2 }
 0x121   : > { %v745_v10 = vadd.f32 %v744_v5, %v714_v3  ;;  %v1425_v11 = vpop.f32.mrb[20].mxu0  ;;  %v676_v12 = vadd.f32 %v1422_v54, %v675_v4 }
 0x122   : > { %v1206_v15 = vadd.f32 %v1205_v8, %v1175_v6  ;;  %v1473_v16 = vpop.f32.mrb[20].mxu1  ;;  %v611_v18 = vpop.f32.mrb[21].mxu0  ;;  %v1137_v19 = vadd.f32 %v1470_v59, %v1136_v7  ;;  %v718_v37 = vmul.f32 %v1425_v11, %v1425_v11 }
 0x123   : > { %v677_v20 = vadd.f32 %v676_v12, %v611_v18  ;;  %v716_v21 = vmul.f32 %v611_v18, %v611_v18  ;;  %v746_v22 = vadd.f32 %v745_v10, %v715_v9  ;;  %v1072_v23 = vpop.f32.mrb[21].mxu1  ;;  %v1426_v24 = vpop.f32.mrb[22].mxu0  ;;  %v1179_v40 = vmul.f32 %v1473_v16, %v1473_v16 }
 0x124   : > { %v1138_v25 = vadd.f32 %v1137_v19, %v1072_v23  ;;  %v1177_v26 = vmul.f32 %v1072_v23, %v1072_v23  ;;  %v1207_v27 = vadd.f32 %v1206_v15, %v1176_v13  ;;  %v1474_v28 = vpop.f32.mrb[22].mxu1  ;;  %v614_v29 = vpop.f32.mrb[23].mxu0  ;;  %v719_v43 = vmul.f32 %v1426_v24, %v1426_v24 }
 0x125   : > { %v747_v30 = vadd.f32 %v746_v22, %v716_v21  ;;  %v678_v31 = vadd.f32 %v677_v20, %v614_v29  ;;  %v717_v32 = vmul.f32 %v614_v29, %v614_v29  ;;  %v1075_v33 = vpop.f32.mrb[23].mxu1  ;;  %v1180_v14 = vmul.f32 %v1474_v28, %v1474_v28 }
 0x126   : > { %v1208_v34 = vadd.f32 %v1207_v27, %v1177_v26  ;;  %v1139_v35 = vadd.f32 %v1138_v25, %v1075_v33  ;;  %v1178_v36 = vmul.f32 %v1075_v33, %v1075_v33 }
 0x127   : > { %v679_v38 = vadd.f32 %v1425_v11, %v678_v31  ;;  %v748_v39 = vadd.f32 %v747_v30, %v717_v32 }
 0x128   : > { %v1140_v41 = vadd.f32 %v1473_v16, %v1139_v35  ;;  %v1209_v42 = vadd.f32 %v1208_v34, %v1178_v36 }
 0x129   : > { %v749_v44 = vadd.f32 %v748_v39, %v718_v37  ;;  %v1429_v45 = vpop.f32.mrb[24].mxu0  ;;  %v680_v46 = vadd.f32 %v1426_v24, %v679_v38 }
 0x12a   : > { %v1210_v47 = vadd.f32 %v1209_v42, %v1179_v40  ;;  %v1477_v48 = vpop.f32.mrb[24].mxu1  ;;  %v627_v49 = vpop.f32.mrb[25].mxu0  ;;  %v1141_v50 = vadd.f32 %v1474_v28, %v1140_v41  ;;  %v722_v3 = vmul.f32 %v1429_v45, %v1429_v45 }
 0x12b   : > { %v681_v51 = vadd.f32 %v680_v46, %v627_v49  ;;  %v720_v17 = vmul.f32 %v627_v49, %v627_v49  ;;  %v750_v52 = vadd.f32 %v749_v44, %v719_v43  ;;  %v1088_v53 = vpop.f32.mrb[25].mxu1  ;;  %v1430_v54 = vpop.f32.mrb[26].mxu0  ;;  %v1183_v6 = vmul.f32 %v1477_v48, %v1477_v48 }
 0x12c   : > { %v1142_v55 = vadd.f32 %v1141_v50, %v1088_v53  ;;  %v1181_v56 = vmul.f32 %v1088_v53, %v1088_v53  ;;  %v1211_v57 = vadd.f32 %v1210_v47, %v1180_v14  ;;  %v1478_v59 = vpop.f32.mrb[26].mxu1  ;;  %v630_v60 = vpop.f32.mrb[27].mxu0  ;;  %v723_v9 = vmul.f32 %v1430_v54, %v1430_v54 }
 0x12d   : > { %v751_v58 = vadd.f32 %v750_v52, %v720_v17  ;;  %v682_v61 = vadd.f32 %v681_v51, %v630_v60  ;;  %v721_v62 = vmul.f32 %v630_v60, %v630_v60  ;;  %v1091_v63 = vpop.f32.mrb[27].mxu1  ;;  %v1184_v13 = vmul.f32 %v1478_v59, %v1478_v59 }
 0x12e   : > { %v1212_v0 = vadd.f32 %v1211_v57, %v1181_v56  ;;  %v1143_v1 = vadd.f32 %v1142_v55, %v1091_v63  ;;  %v1182_v2 = vmul.f32 %v1091_v63, %v1091_v63 }
 0x12f   : > { %v683_v4 = vadd.f32 %v1429_v45, %v682_v61  ;;  %v752_v5 = vadd.f32 %v751_v58, %v721_v62 }
 0x130   : > { %v1144_v7 = vadd.f32 %v1477_v48, %v1143_v1  ;;  %v1213_v8 = vadd.f32 %v1212_v0, %v1182_v2 }
 0x131   : > { %v753_v10 = vadd.f32 %v752_v5, %v722_v3  ;;  %v1433_v11 = vpop.f32.mrb[28].mxu0  ;;  %v684_v12 = vadd.f32 %v1430_v54, %v683_v4 }
 0x132   : > { %v1214_v15 = vadd.f32 %v1213_v8, %v1183_v6  ;;  %v1481_v16 = vpop.f32.mrb[28].mxu1  ;;  %v643_v18 = vpop.f32.mrb[29].mxu0  ;;  %v1145_v19 = vadd.f32 %v1478_v59, %v1144_v7  ;;  %v726_v37 = vmul.f32 %v1433_v11, %v1433_v11 }
 0x133   : > { %v685_v20 = vadd.f32 %v684_v12, %v643_v18  ;;  %v724_v21 = vmul.f32 %v643_v18, %v643_v18  ;;  %v754_v22 = vadd.f32 %v753_v10, %v723_v9  ;;  %v1104_v23 = vpop.f32.mrb[29].mxu1  ;;  %v1434_v24 = vpop.f32.mrb[30].mxu0  ;;  %v1187_v40 = vmul.f32 %v1481_v16, %v1481_v16 }
 0x134   : > { %v1146_v25 = vadd.f32 %v1145_v19, %v1104_v23  ;;  %v1185_v26 = vmul.f32 %v1104_v23, %v1104_v23  ;;  %v1215_v27 = vadd.f32 %v1214_v15, %v1184_v13  ;;  %v1482_v28 = vpop.f32.mrb[30].mxu1  ;;  %v646_v29 = vpop.f32.mrb[31].mxu0  ;;  %v727_v43 = vmul.f32 %v1434_v24, %v1434_v24 }
 0x135   : > { %v755_v30 = vadd.f32 %v754_v22, %v724_v21  ;;  %v686_v31 = vadd.f32 %v685_v20, %v646_v29  ;;  %v725_v32 = vmul.f32 %v646_v29, %v646_v29  ;;  %v1107_v33 = vpop.f32.mrb[31].mxu1  ;;  %v1188_v46 = vmul.f32 %v1482_v28, %v1482_v28 }
 0x136   : > { %v1216_v34 = vadd.f32 %v1215_v27, %v1185_v26  ;;  %v1147_v35 = vadd.f32 %v1146_v25, %v1107_v33  ;;  %v1186_v36 = vmul.f32 %v1107_v33, %v1107_v33 }
 0x137   : > { %v687_v38 = vadd.f32 %v1433_v11, %v686_v31  ;;  %v756_v39 = vadd.f32 %v755_v30, %v725_v32 }
 0x138   : > { %v1148_v41 = vadd.f32 %v1481_v16, %v1147_v35  ;;  %v1217_v42 = vadd.f32 %v1216_v34, %v1186_v36 }
 0x139   : > { %v688_v44 = vadd.f32 %v1434_v24, %v687_v38  ;;  %v757_v45 = vadd.f32 %v756_v39, %v726_v37 }
 0x13a   : > { %v1149_v14 = vadd.f32 %v1482_v28, %v1148_v41  ;;  %v1218_v47 = vadd.f32 %v1217_v42, %v1187_v40 }
 0x13b   : > { %v689_v48 = vrot.slane %v688_v44, 4  ;;  %v758_v49 = vadd.f32 %v757_v45, %v727_v43 }
 0x13c   : > { %v1150_v50 = vrot.slane %v1149_v14, 4  ;;  %v1219_v51 = vadd.f32 %v1218_v47, %v1188_v46 }
 0x13d   : > { %v690_v17 = vadd.f32 %v689_v48, %v688_v44  ;;  %v759_v52 = vrot.slane %v758_v49, 4 }
 0x13e   : > { %v1151_v53 = vadd.f32 %v1150_v50, %v1149_v14  ;;  %v1220_v54 = vrot.slane %v1219_v51, 4 }
 0x13f   : > { %v691_v55 = vrot.slane %v690_v17, 2  ;;  %v760_v56 = vadd.f32 %v759_v52, %v758_v49 }
 0x140   : > { %v1152_v57 = vrot.slane %v1151_v53, 2  ;;  %v1221_v59 = vadd.f32 %v1220_v54, %v1219_v51 }
 0x141   : > { %v692_v60 = vadd.f32 %v691_v55, %v690_v17  ;;  %v761_v58 = vrot.slane %v760_v56, 2 }
 0x142   : > { %v1153_v61 = vadd.f32 %v1152_v57, %v1151_v53  ;;  %v1222_v62 = vrot.slane %v1221_v59, 2 }
 0x143   : > { %v693_v63 = vrot.slane %v692_v60, 1  ;;  %v762_v0 = vadd.f32 %v761_v58, %v760_v56 }
 0x144   : > { %v1154_v1 = vrot.slane %v1153_v61, 1  ;;  %v1223_v2 = vadd.f32 %v1222_v62, %v1221_v59 }
 0x145   : > { %v694_v3 = vadd.f32 %v693_v63, %v692_v60  ;;  %v763_v4 = vrot.slane %v762_v0, 1 }
 0x146   : > { %v1155_v5 = vadd.f32 %v1154_v1, %v1153_v61  ;;  %v1224_v6 = vrot.slane %v1223_v2, 1 }
 0x147   : > { %695 = vst [vmem:[%s1767_s28] sm:$0x1] %v694_v3  ;;  %v764_v7 = vadd.f32 %v763_v4, %v762_v0 }
 0x148   : > { %1156 = vst [vmem:[%s1767_s28 + $0x2] sm:$0x1] %v1155_v5  ;;  %v1225_v8 = vadd.f32 %v1224_v6, %v1223_v2 }
 0x149   : > { %765 = vst [vmem:[%s1767_s28 + $0x1] sm:$0x1] %v764_v7 }
 0x14a   : > { %1226 = vst [vmem:[%s1767_s28 + $0x3] sm:$0x1] %v1225_v8 }
 0x14b PF: > { %s16_s21 = sadd.s32 1, %s1530_s21  }
 0x14c   : > { %p13_p5 = scmp.ge.s32.totalorder %s16_s21, 4  }
 0x14e   :  { %15 = sbr.rel (!%p13_p5) target bundleno = 1 (0x1), region = 77 }

// kernel: bottleneck_forward.7
= control target key start
LH: loop header
LB: loop body
LE: loop exit
PB: predicated region body
PF: predicated region fallthrough
CT: control target
= control target key end

     0   :  { %s1740_s13 = smov 0   ;;  %s2127_s0 = inlined_call_operand.vmem [shape: f32[512,128], index: 0, kind: input, shape index: {}]   ;;  %s2128_s1 = inlined_call_operand.vmem [shape: f32[1,128], index: 1, kind: input, shape index: {}]   ;;  %s2129_s2 = inlined_call_operand.vmem [shape: f32[1,128], index: 2, kind: input, shape index: {}]   ;;  %s2130_s3 = inlined_call_operand.vmem [shape: bf16[128,128], index: 3, kind: input, shape index: {}]   ;;  %s2131_s4 = inlined_call_operand.vmem [shape: f32[1,128], index: 4, kind: input, shape index: {}]   ;;  %s2132_s5 = inlined_call_operand.vmem [shape: f32[1,128], index: 5, kind: input, shape index: {}]   ;;  %s2133_s6 = inlined_call_operand.vmem [shape: bf16[512,128], index: 6, kind: input, shape index: {}]   ;;  %s2134_s7 = inlined_call_operand.vmem [shape: bf16[128,128], index: 7, kind: input, shape index: {}]   ;;  %s2135_s8 = inlined_call_operand.vmem [shape: f32[1,128], index: 8, kind: input, shape index: {}]   ;;  %s2136_s9 = inlined_call_operand.vmem [shape: f32[1,128], index: 9, kind: input, shape index: {}]   ;;  %s2137_s10 = inlined_call_operand.vmem [shape: f32[512,128], index: 10, kind: output, shape index: {}]  }
   0x1 LB: > { %s1442_s14 = sadd.s32 4294967295, %s1683_s13   ;;  %p1446_p0 = scmp.ge.s32.totalorder %s1683_s13, 1  ;;  %s1683_s13 = sphi %s1740_s13, %s20_s13  }
   0x2   : > { %p324_p1 = scmp.lt.s32.totalorder %s1683_s13, 3 }
   0x4   : > { %p325_p2 = pnand %p1446_p0, %p324_p1 }
   0x5   : > { %v1645_v0 = vld [vmem:[%s2130_s3] sm:$0xff] (!%p325_p2)   ;;  %s1447_s17 = sshll.u32 (!%p325_p2), %s1442_s14, 5  ;;  %v1647_v2 = vld [vmem:[%s2130_s3 + $0x8] sm:$0xff] (!%p325_p2)   ;;  %v1649_v4 = vld [vmem:[%s2130_s3 + $0x10] sm:$0xff] (!%p325_p2)  }
   0x6   : > { %328 = sbr.rel (%p325_p2) target bundleno = 319 (0x13f), region = 60  ;;  %v1646_v1 = vld [vmem:[%s2134_s7] sm:$0xff] (!%p325_p2)   ;;  %1541 = vmatprep.subr.bf16.mxu0 (!%p325_p2), %v1645_v0  ;;  %p368_p3 = scmp.lt.s32.totalorder (!%p325_p2), %s1447_s17, 63  ;;  %v1648_v3 = vld [vmem:[%s2134_s7 + $0x8] sm:$0xff] (!%p325_p2)   ;;  %v1650_v5 = vld [vmem:[%s2134_s7 + $0x10] sm:$0xff] (!%p325_p2)  }
   0x7   : > { %1589 = vmatprep.subr.bf16.mxu1 (!%p325_p2), %v1646_v1  ;;  %1542 = vmatpush3.bf16.msra.mxu0 (!%p325_p2), %v1645_v0  ;;  %v1651_v6 = vld [vmem:[%s2130_s3 + $0x18] sm:$0xff] (!%p325_p2)   ;;  %v1653_v8 = vld [vmem:[%s2130_s3 + $0x20] sm:$0xff] (!%p325_p2)   ;;  %v1655_v10 = vld [vmem:[%s2130_s3 + $0x28] sm:$0xff] (!%p325_p2)  }
   0x8   : > { %1590 = vmatpush3.bf16.msra.mxu1 (!%p325_p2), %v1646_v1  ;;  %1543 = vmatprep.subr.bf16.mxu0 (!%p325_p2), %v1647_v2  ;;  %v1652_v7 = vld [vmem:[%s2134_s7 + $0x18] sm:$0xff] (!%p325_p2)   ;;  %v1654_v9 = vld [vmem:[%s2134_s7 + $0x20] sm:$0xff] (!%p325_p2)   ;;  %v1656_v11 = vld [vmem:[%s2134_s7 + $0x28] sm:$0xff] (!%p325_p2)  }
   0x9   : > { %1591 = vmatprep.subr.bf16.mxu1 (!%p325_p2), %v1648_v3  ;;  %v1805_v14 = vld [vmem:[%s2128_s1] ss:$0 sm:$0xff] (!%p325_p2)  ;;  %v1657_v21 = vld [vmem:[%s2130_s3 + $0x30] sm:$0xff] (!%p325_p2)   ;;  %v1659_v31 = vld [vmem:[%s2130_s3 + $0x38] sm:$0xff] (!%p325_p2)  }
   0xa   : > { %v1812_v17 = vld [vmem:[%s2129_s2] ss:$0 sm:$0xff] (!%p325_p2)  ;;  %v1658_v28 = vld [vmem:[%s2134_s7 + $0x30] sm:$0xff] (!%p325_p2)   ;;  %v1660_v43 = vld [vmem:[%s2134_s7 + $0x38] sm:$0xff] (!%p325_p2)  }
   0xb   : > { %1544 = vmatpush3.bf16.msra.mxu0 (!%p325_p2), %v1647_v2 }
   0xc   : > { %1592 = vmatpush3.bf16.msra.mxu1 (!%p325_p2), %v1648_v3  ;;  %1545 = vmatprep.subr.bf16.mxu0 (!%p325_p2), %v1649_v4 }
   0xd   : > { %s2139_s17 = smov (!%p368_p3, %s1447_s17), 63  ;;  %1593 = vmatprep.subr.bf16.mxu1 %v1650_v5 }
   0xe   : > { %s1448_s12 = sshll.u32 %s2139_s17, 3  ;;  %s1450_s16 = sshll.u32 %s2139_s17, 2 }
   0xf   : > { %1546 = vmatpush3.bf16.msra.mxu0 %v1649_v4  ;;  %s1787_s22 = scalar_lea.vmem %s2127_s0, %s1448_s12  ;;  %s1798_s29 = scalar_lea.vmem %s2133_s6, %s1450_s16 }
  0x10   : > { %1594 = vmatpush3.bf16.msra.mxu1 %v1650_v5  ;;  %1547 = vmatprep.subr.bf16.mxu0 %v1651_v6  ;;  %v386_v12 = vld [vmem:[%s1787_s22] sm:$0xff]  ;;  %v387_v13 = vld [vmem:[%s1787_s22 + $0x8] sm:$0xff]  ;;  %v388_v19 = vld [vmem:[%s1787_s22 + $0x10] sm:$0xff]  ;;  %s1977_s18 = scalar_lea.vmem %s2137_s10, %s1448_s12 }
  0x11   : > { %1595 = vmatprep.subr.bf16.mxu1 %v1652_v7  ;;  %v425_v15 = vmul.f32 %v1805_v14, %v386_v12  ;;  %v426_v16 = vmul.f32 %v1805_v14, %v387_v13  ;;  %v1661_v18 = vld [vmem:[%s1798_s29] sm:$0xff]   ;;  %v389_v20 = vld [vmem:[%s1787_s22 + $0x18] sm:$0xff]  ;;  %v427_v24 = vmul.f32 %v1805_v14, %v388_v19  ;;  %v391_v27 = vld [vmem:[%s1787_s22 + $0x28] sm:$0xff] }
  0x12   : > { %v428_v25 = vmul.f32 %v1805_v14, %v389_v20  ;;  %v390_v26 = vld [vmem:[%s1787_s22 + $0x20] sm:$0xff]  ;;  %1605 = vmatprep.mubr.bf16.mxu1 %v1661_v18  ;;  %v430_v35 = vmul.f32 %v1805_v14, %v391_v27  ;;  %v392_v37 = vld [vmem:[%s1787_s22 + $0x30] sm:$0xff]  ;;  %v393_v38 = vld [vmem:[%s1787_s22 + $0x38] sm:$0xff] }
  0x13   : > { %1548 = vmatpush3.bf16.msra.mxu0 %v1651_v6  ;;  %v464_v22 = vadd.f32 %v1812_v17, %v425_v15  ;;  %v465_v23 = vadd.f32 %v1812_v17, %v426_v16  ;;  %v466_v32 = vadd.f32 %v1812_v17, %v427_v24  ;;  %v429_v34 = vmul.f32 %v1805_v14, %v390_v26  ;;  %v394_v39 = vld [vmem:[%s1787_s22 + $0x40] sm:$0xff]  ;;  %v395_v42 = vld [vmem:[%s1787_s22 + $0x48] sm:$0xff]  ;;  %v396_v56 = vld [vmem:[%s1787_s22 + $0x50] sm:$0xff] }
  0x14   : > { %1596 = vmatpush3.bf16.msra.mxu1 %v1652_v7  ;;  %1549 = vmatprep.subr.bf16.mxu0 %v1653_v8  ;;  %v467_v33 = vadd.f32 %v1812_v17, %v428_v25  ;;  %v469_v41 = vadd.f32 %v1812_v17, %v430_v35  ;;  %v431_v46 = vmul.f32 %v1805_v14, %v392_v37  ;;  %v1662_v53 = vld [vmem:[%s1798_s29 + $0x8] sm:$0xff]   ;;  %v397_v57 = vld [vmem:[%s1787_s22 + $0x58] sm:$0xff]  ;;  %v398_v61 = vld [vmem:[%s1787_s22 + $0x60] sm:$0xff] }
  0x15   : > { %1597 = vmatprep.subr.bf16.mxu1 %v1654_v9  ;;  %v496_v29 = vmax.f32 %v464_v22, 0.0  ;;  %v497_v30 = vmax.f32 %v465_v23, 0.0  ;;  %v468_v40 = vadd.f32 %v1812_v17, %v429_v34  ;;  %v498_v44 = vmax.f32 %v466_v32, 0.0  ;;  %v1663_v62 = vld [vmem:[%s1798_s29 + $0x10] sm:$0xff]   ;;  %v399_v63 = vld [vmem:[%s1787_s22 + $0x68] sm:$0xff]  ;;  %v1665_v16 = vld [vmem:[%s1798_s29 + $0x20] sm:$0xff]  }
  0x16   : > { %v499_v45 = vmax.f32 %v467_v33, 0.0  ;;  %v432_v47 = vmul.f32 %v1805_v14, %v393_v38  ;;  %v501_v49 = vmax.f32 %v469_v41, 0.0  ;;  %v433_v50 = vmul.f32 %v1805_v14, %v394_v39  ;;  %v400_v13 = vld [vmem:[%s1787_s22 + $0x70] sm:$0xff]  ;;  %v401_v19 = vld [vmem:[%s1787_s22 + $0x78] sm:$0xff]  ;;  %v402_v20 = vld [vmem:[%s1787_s22 + $0x80] sm:$0xff] }
  0x17   : > { %1550 = vmatpush3.bf16.msra.mxu0 %v1653_v8  ;;  %v528_v36 = vpack.c.bf16 %v497_v30, %v496_v29  ;;  %v500_v48 = vmax.f32 %v468_v40, 0.0  ;;  %v434_v51 = vmul.f32 %v1805_v14, %v395_v42  ;;  %v470_v54 = vadd.f32 %v1812_v17, %v431_v46  ;;  %v1664_v8 = vld [vmem:[%s1798_s29 + $0x18] sm:$0xff]   ;;  %v1666_v39 = vld [vmem:[%s1798_s29 + $0x28] sm:$0xff]   ;;  %v404_v42 = vld [vmem:[%s1787_s22 + $0x90] sm:$0xff] }
  0x18   : > { %1598 = vmatpush3.bf16.msra.mxu1 %v1654_v9  ;;  %1551 = vmatprep.subr.bf16.mxu0 %v1655_v10  ;;  %v529_v52 = vpack.c.bf16 %v499_v45, %v498_v44  ;;  %v471_v55 = vadd.f32 %v1812_v17, %v432_v47  ;;  %v472_v59 = vadd.f32 %v1812_v17, %v433_v50  ;;  %v1667_v45 = vld [vmem:[%s1798_s29 + $0x30] sm:$0xff]   ;;  %v406_v46 = vld [vmem:[%s1787_s22 + $0xa0] sm:$0xff]  ;;  %v407_v47 = vld [vmem:[%s1787_s22 + $0xa8] sm:$0xff] }
  0x19   : > { %1599 = vmatprep.subr.bf16.mxu1 %v1656_v11  ;;  %1557 = vmatprep.mubr.bf16.mxu0 %v528_v36  ;;  %v530_v58 = vpack.c.bf16 %v501_v49, %v500_v48  ;;  %v473_v60 = vadd.f32 %v1812_v17, %v434_v51  ;;  %v435_v0 = vmul.f32 %v1805_v14, %v396_v56  ;;  %v502_v1 = vmax.f32 %v470_v54, 0.0 }
  0x1a   : > { %v503_v2 = vmax.f32 %v471_v55, 0.0  ;;  %v436_v3 = vmul.f32 %v1805_v14, %v397_v57  ;;  %v437_v4 = vmul.f32 %v1805_v14, %v398_v61  ;;  %v504_v5 = vmax.f32 %v472_v59, 0.0 }
  0x1b   : > { %1552 = vmatpush3.bf16.msra.mxu0 %v1655_v10  ;;  %v505_v6 = vmax.f32 %v473_v60, 0.0  ;;  %v438_v7 = vmul.f32 %v1805_v14, %v399_v63  ;;  %v474_v9 = vadd.f32 %v1812_v17, %v435_v0  ;;  %v439_v23 = vmul.f32 %v1805_v14, %v400_v13 }
  0x1c   : > { %1600 = vmatpush3.bf16.msra.mxu1 %v1656_v11  ;;  %1553 = vmatprep.subr.bf16.mxu0 %v1657_v21  ;;  %v531_v10 = vpack.c.bf16 %v503_v2, %v502_v1  ;;  %v475_v11 = vadd.f32 %v1812_v17, %v436_v3  ;;  %v476_v12 = vadd.f32 %v1812_v17, %v437_v4  ;;  %v408_v2 = vld [vmem:[%s1787_s22 + $0xb0] sm:$0xff]  ;;  %v409_v3 = vld [vmem:[%s1787_s22 + $0xb8] sm:$0xff]  ;;  %v1669_v4 = vld [vmem:[%s1798_s29 + $0x40] sm:$0xff]  }
  0x1d   : > { %1601 = vmatprep.subr.bf16.mxu1 %v1658_v28  ;;  %v532_v15 = vpack.c.bf16 %v505_v6, %v504_v5  ;;  %v477_v18 = vadd.f32 %v1812_v17, %v438_v7  ;;  %v506_v22 = vmax.f32 %v474_v9, 0.0  ;;  %v440_v26 = vmul.f32 %v1805_v14, %v401_v19  ;;  %v410_v5 = vld [vmem:[%s1787_s22 + $0xc0] sm:$0xff]  ;;  %v411_v6 = vld [vmem:[%s1787_s22 + $0xc8] sm:$0xff] }
  0x1e   : > { %v507_v24 = vmax.f32 %v475_v11, 0.0  ;;  %v508_v25 = vmax.f32 %v476_v12, 0.0  ;;  %v441_v27 = vmul.f32 %v1805_v14, %v402_v20  ;;  %v478_v33 = vadd.f32 %v1812_v17, %v439_v23  ;;  %v1670_v20 = vld [vmem:[%s1798_s29 + $0x48] sm:$0xff]  }
  0x1f   : > { %1554 = vmatpush3.bf16.msra.mxu0 %v1657_v21  ;;  %v403_v21 = vld [vmem:[%s1787_s22 + $0x88] sm:$0xff]  ;;  %v509_v29 = vmax.f32 %v477_v18, 0.0  ;;  %v479_v36 = vadd.f32 %v1812_v17, %v440_v26  ;;  %v445_v56 = vmul.f32 %v1805_v14, %v406_v46  ;;  %v446_v57 = vmul.f32 %v1805_v14, %v407_v47  ;;  %v1671_v26 = vld [vmem:[%s1798_s29 + $0x50] sm:$0xff]  }
  0x20   : > { %1602 = vmatpush3.bf16.msra.mxu1 %v1658_v28  ;;  %1555 = vmatprep.subr.bf16.mxu0 %v1659_v31  ;;  %v416_v28 = vld [vmem:[%s1787_s22 + $0xf0] sm:$0xff]  ;;  %v442_v30 = vmul.f32 %v1805_v14, %v403_v21  ;;  %v533_v35 = vpack.c.bf16 %v507_v24, %v506_v22  ;;  %v480_v37 = vadd.f32 %v1812_v17, %v441_v27  ;;  %v510_v49 = vmax.f32 %v478_v33, 0.0  ;;  %v414_v27 = vld [vmem:[%s1787_s22 + $0xe0] sm:$0xff] }
  0x21   : > { %1603 = vmatprep.subr.bf16.mxu1 %v1660_v43  ;;  %v455_v32 = vmul.f32 %v1805_v14, %v416_v28  ;;  %v534_v40 = vpack.c.bf16 %v509_v29, %v508_v25  ;;  %v511_v51 = vmax.f32 %v479_v36, 0.0  ;;  %v484_v0 = vadd.f32 %v1812_v17, %v445_v56  ;;  %v412_v24 = vld [vmem:[%s1787_s22 + $0xd0] sm:$0xff]  ;;  %v413_v25 = vld [vmem:[%s1787_s22 + $0xd8] sm:$0xff]  ;;  %v415_v28 = vld [vmem:[%s1787_s22 + $0xe8] sm:$0xff] }
  0x22   : > { %v481_v41 = vadd.f32 %v1812_v17, %v442_v30  ;;  %v485_v1 = vadd.f32 %v1812_v17, %v446_v57  ;;  %v447_v9 = vmul.f32 %v1805_v14, %v408_v2  ;;  %v449_v13 = vmul.f32 %v1805_v14, %v410_v5 }
  0x23   : > { %1556 = vmatpush3.bf16.msra.mxu0 %v1659_v31  ;;  %v417_v31 = vld [vmem:[%s1787_s22 + $0xf8] sm:$0xff]  ;;  %v494_v38 = vadd.f32 %v1812_v17, %v455_v32  ;;  %v535_v59 = vpack.c.bf16 %v511_v51, %v510_v49  ;;  %v516_v11 = vmax.f32 %v484_v0, 0.0  ;;  %v452_v32 = vmul.f32 %v1805_v14, %v413_v25  ;;  %v1674_v49 = vld [vmem:[%s1798_s29 + $0x68] sm:$0xff]   ;;  %v1675_v51 = vld [vmem:[%s1798_s29 + $0x70] sm:$0xff]  }
  0x24   : > { %1604 = vmatpush3.bf16.msra.mxu1 %v1660_v43  ;;  %v456_v34 = vmul.f32 %v1805_v14, %v417_v31  ;;  %v405_v43 = vld [vmem:[%s1787_s22 + $0x98] sm:$0xff]  ;;  %v513_v55 = vmax.f32 %v481_v41, 0.0  ;;  %v517_v12 = vmax.f32 %v485_v1, 0.0  ;;  %v486_v18 = vadd.f32 %v1812_v17, %v447_v9 }
  0x25   : > { %v526_v48 = vmax.f32 %v494_v38, 0.0  ;;  %v444_v54 = vmul.f32 %v1805_v14, %v405_v43  ;;  %v488_v22 = vadd.f32 %v1812_v17, %v449_v13  ;;  %v451_v31 = vmul.f32 %v1805_v14, %v412_v24 }
  0x26   : > { %1558 = vmatmul.mubr.bf16.vlgmr.msra.gmra.mrb[0].mxu0 %v529_v52  ;;  %v495_v44 = vadd.f32 %v1812_v17, %v456_v34  ;;  %v512_v52 = vmax.f32 %v480_v37, 0.0  ;;  %v538_v21 = vpack.c.bf16 %v517_v12, %v516_v11  ;;  %v518_v29 = vmax.f32 %v486_v18, 0.0 }
  0x27   : > { %1606 = vmatmul.mubr.bf16.vlgmr.msra.gmra.mrb[0].mxu1 %v1662_v53  ;;  %1561 = vmatprep.mubr.bf16.mxu0 %v530_v58  ;;  %v443_v53 = vmul.f32 %v1805_v14, %v404_v42  ;;  %v483_v61 = vadd.f32 %v1812_v17, %v444_v54  ;;  %v520_v33 = vmax.f32 %v488_v22, 0.0  ;;  %v454_v36 = vmul.f32 %v1805_v14, %v415_v28 }
  0x28   : > { %1609 = vmatprep.mubr.bf16.mxu1 %v1663_v62  ;;  %v527_v50 = vmax.f32 %v495_v44, 0.0  ;;  %v1668_v62 = vld [vmem:[%s1798_s29 + $0x38] sm:$0xff]   ;;  %v536_v63 = vpack.c.bf16 %v513_v55, %v512_v52  ;;  %v490_v38 = vadd.f32 %v1812_v17, %v451_v31  ;;  %v1673_v44 = vld [vmem:[%s1798_s29 + $0x60] sm:$0xff]  }
  0x29   : > { %v482_v60 = vadd.f32 %v1812_v17, %v443_v53  ;;  %v493_v43 = vadd.f32 %v1812_v17, %v454_v36  ;;  %v1676_v52 = vld [vmem:[%s1798_s29 + $0x78] sm:$0xff]   ;;  %v1945_v53 = vld [vmem:[%s2135_s8] ss:$0 sm:$0xff] }
  0x2a   : > { %v1897_v58 = vpack.c.bf16 %v527_v50, %v526_v48  ;;  %v1950_v55 = vld [vmem:[%s2132_s5] ss:$0 sm:$0xff] }
  0x2b   : > { %v514_v7 = vmax.f32 %v482_v60, 0.0  ;;  %v525_v47 = vmax.f32 %v493_v43, 0.0 }
  0x2e   : > { %1562 = vmatmul.mubr.bf16.gmra.mrb[4].mxu0 %v531_v10  ;;  %v448_v10 = vmul.f32 %v1805_v14, %v409_v3 }
  0x2f   : > { %1610 = vmatmul.mubr.bf16.gmra.mrb[4].mxu1 %v1664_v8  ;;  %1565 = vmatprep.mubr.bf16.mxu0 %v532_v15  ;;  %v515_v8 = vmax.f32 %v483_v61, 0.0  ;;  %v450_v15 = vmul.f32 %v1805_v14, %v411_v6 }
  0x30   : > { %1613 = vmatprep.mubr.bf16.mxu1 %v1665_v16  ;;  %v487_v19 = vadd.f32 %v1812_v17, %v448_v10 }
  0x31   : > { %v537_v16 = vpack.c.bf16 %v515_v8, %v514_v7  ;;  %v489_v23 = vadd.f32 %v1812_v17, %v450_v15 }
  0x32   : > { %v519_v30 = vmax.f32 %v487_v19, 0.0 }
  0x33   : > { %v521_v34 = vmax.f32 %v489_v23, 0.0 }
  0x34   : > { %v539_v37 = vpack.c.bf16 %v519_v30, %v518_v29 }
  0x35   : > { %v540_v41 = vpack.c.bf16 %v521_v34, %v520_v33 }
  0x36   : > { %1566 = vmatmul.mubr.bf16.gmra.mrb[8].mxu0 %v533_v35  ;;  %v453_v35 = vmul.f32 %v1805_v14, %v414_v27 }
  0x37   : > { %1614 = vmatmul.mubr.bf16.gmra.mrb[8].mxu1 %v1666_v39  ;;  %1569 = vmatprep.mubr.bf16.mxu0 %v534_v40  ;;  %v491_v39 = vadd.f32 %v1812_v17, %v452_v32  ;;  %v1672_v40 = vld [vmem:[%s1798_s29 + $0x58] sm:$0xff]  }
  0x38   : > { %1617 = vmatprep.mubr.bf16.mxu1 %v1667_v45  ;;  %v492_v42 = vadd.f32 %v1812_v17, %v453_v35  ;;  %v522_v45 = vmax.f32 %v490_v38, 0.0  ;;  %v1940_v17 = vld [vmem:[%s2131_s4] ss:$0 sm:$0xff] }
  0x39   : > { %v523_v46 = vmax.f32 %v491_v39, 0.0 }
  0x3a   : > { %v524_v14 = vmax.f32 %v492_v42, 0.0 }
  0x3b   : > { %v541_v48 = vpack.c.bf16 %v523_v46, %v522_v45 }
  0x3c   : > { %v542_v50 = vpack.c.bf16 %v525_v47, %v524_v14 }
  0x3e   : > { %1570 = vmatmul.mubr.bf16.gmra.mrb[12].mxu0 %v535_v59 }
  0x3f   : > { %1618 = vmatmul.mubr.bf16.gmra.mrb[12].mxu1 %v1668_v62  ;;  %1573 = vmatprep.mubr.bf16.mxu0 %v536_v63 }
  0x40   : > { %1621 = vmatprep.mubr.bf16.mxu1 %v1669_v4 }
  0x46   : > { %1574 = vmatmul.mubr.bf16.gmra.mrb[16].mxu0 %v537_v16 }
  0x47   : > { %1622 = vmatmul.mubr.bf16.gmra.mrb[16].mxu1 %v1670_v20  ;;  %1577 = vmatprep.mubr.bf16.mxu0 %v538_v21 }
  0x48   : > { %1625 = vmatprep.mubr.bf16.mxu1 %v1671_v26 }
  0x4e   : > { %1578 = vmatmul.mubr.bf16.gmra.mrb[20].mxu0 %v539_v37 }
  0x4f   : > { %1626 = vmatmul.mubr.bf16.gmra.mrb[20].mxu1 %v1672_v40  ;;  %1581 = vmatprep.mubr.bf16.mxu0 %v540_v41 }
  0x50   : > { %1629 = vmatprep.mubr.bf16.mxu1 %v1673_v44 }
  0x56   : > { %1582 = vmatmul.mubr.bf16.gmra.mrb[24].mxu0 %v541_v48 }
  0x57   : > { %1630 = vmatmul.mubr.bf16.gmra.mrb[24].mxu1 %v1674_v49  ;;  %1585 = vmatprep.mubr.bf16.mxu0 %v542_v50 }
  0x58   : > { %1633 = vmatprep.mubr.bf16.mxu1 %v1675_v51 }
  0x5e   : > { %1586 = vmatmul.mubr.bf16.gmra.mrb[28].mxu0 %v1897_v58  ;;  %v1956_v58 = vld [vmem:[%s2136_s9] ss:$0 sm:$0xff] }
  0x5f   : > { %1634 = vmatmul.mubr.bf16.gmra.mrb[28].mxu1 %v1676_v52 }
  0xf9   : > { %v1559_v54 = vpop.f32.mrb[0].mxu0 }
  0xfa   : > { %v778_v56 = vmul.f32 %v1559_v54, %v1940_v17  ;;  %v1607_v57 = vpop.f32.mrb[0].mxu1  ;;  %v642_v59 = vpop.f32.mrb[1].mxu0 }
  0xfb   : > { %v1209_v60 = vmul.f32 %v1607_v57, %v1945_v53  ;;  %v776_v61 = vmul.f32 %v1940_v17, %v642_v59  ;;  %v1073_v62 = vpop.f32.mrb[1].mxu1  ;;  %v1560_v63 = vpop.f32.mrb[2].mxu0 }
  0xfc   : > { %v817_v0 = vadd.f32 %v1950_v55, %v778_v56  ;;  %v1207_v1 = vmul.f32 %v1945_v53, %v1073_v62  ;;  %v779_v2 = vmul.f32 %v1560_v63, %v1940_v17  ;;  %v1608_v3 = vpop.f32.mrb[2].mxu1  ;;  %v645_v4 = vpop.f32.mrb[3].mxu0 }
  0xfd   : > { %v1248_v5 = vadd.f32 %v1956_v58, %v1209_v60  ;;  %v815_v6 = vadd.f32 %v1950_v55, %v776_v61  ;;  %v1210_v7 = vmul.f32 %v1608_v3, %v1945_v53  ;;  %v777_v8 = vmul.f32 %v1940_v17, %v645_v4  ;;  %v1076_v9 = vpop.f32.mrb[3].mxu1 }
  0xfe   : > { %v1246_v10 = vadd.f32 %v1956_v58, %v1207_v1  ;;  %v818_v11 = vadd.f32 %v1950_v55, %v779_v2  ;;  %v1208_v12 = vmul.f32 %v1945_v53, %v1076_v9 }
  0xff   : > { %v1280_v13 = vadd.f32 %v1248_v5, %v817_v0  ;;  %v1249_v15 = vadd.f32 %v1956_v58, %v1210_v7  ;;  %v816_v16 = vadd.f32 %v1950_v55, %v777_v8 }
 0x100   : > { %v1278_v18 = vadd.f32 %v1246_v10, %v815_v6  ;;  %v1247_v19 = vadd.f32 %v1956_v58, %v1208_v12 }
 0x101   : > { %v1312_v20 = vmax.f32 %v1280_v13, 0.0  ;;  %v1281_v21 = vadd.f32 %v1249_v15, %v818_v11  ;;  %v1563_v22 = vpop.f32.mrb[4].mxu0 }
 0x102   : > { %v1310_v23 = vmax.f32 %v1278_v18, 0.0  ;;  %v1279_v24 = vadd.f32 %v1247_v19, %v816_v16  ;;  %v782_v25 = vmul.f32 %v1563_v22, %v1940_v17  ;;  %v1611_v26 = vpop.f32.mrb[4].mxu1  ;;  %v658_v27 = vpop.f32.mrb[5].mxu0 }
 0x103   : > { %1344 = vst [vmem:[%s1977_s18 + $0x10] sm:$0xff] %v1312_v20  ;;  %v1313_v28 = vmax.f32 %v1281_v21, 0.0  ;;  %v1213_v29 = vmul.f32 %v1611_v26, %v1945_v53  ;;  %v780_v30 = vmul.f32 %v1940_v17, %v658_v27  ;;  %v1089_v31 = vpop.f32.mrb[5].mxu1  ;;  %v1564_v32 = vpop.f32.mrb[6].mxu0 }
 0x104   : > { %1342 = vst [vmem:[%s1977_s18] sm:$0xff] %v1310_v23  ;;  %v1311_v33 = vmax.f32 %v1279_v24, 0.0  ;;  %v821_v34 = vadd.f32 %v1950_v55, %v782_v25  ;;  %v1211_v35 = vmul.f32 %v1945_v53, %v1089_v31  ;;  %v783_v36 = vmul.f32 %v1564_v32, %v1940_v17  ;;  %v1612_v37 = vpop.f32.mrb[6].mxu1  ;;  %v661_v38 = vpop.f32.mrb[7].mxu0 }
 0x105   : > { %1345 = vst [vmem:[%s1977_s18 + $0x18] sm:$0xff] %v1313_v28  ;;  %v1252_v39 = vadd.f32 %v1956_v58, %v1213_v29  ;;  %v819_v40 = vadd.f32 %v1950_v55, %v780_v30  ;;  %v1214_v41 = vmul.f32 %v1612_v37, %v1945_v53  ;;  %v781_v42 = vmul.f32 %v1940_v17, %v661_v38  ;;  %v1092_v43 = vpop.f32.mrb[7].mxu1 }
 0x106   : > { %1343 = vst [vmem:[%s1977_s18 + $0x8] sm:$0xff] %v1311_v33  ;;  %v1250_v44 = vadd.f32 %v1956_v58, %v1211_v35  ;;  %v822_v45 = vadd.f32 %v1950_v55, %v783_v36  ;;  %v1212_v46 = vmul.f32 %v1945_v53, %v1092_v43 }
 0x107   : > { %v1284_v14 = vadd.f32 %v1252_v39, %v821_v34  ;;  %v1253_v47 = vadd.f32 %v1956_v58, %v1214_v41  ;;  %v820_v48 = vadd.f32 %v1950_v55, %v781_v42 }
 0x108   : > { %v1282_v49 = vadd.f32 %v1250_v44, %v819_v40  ;;  %v1251_v50 = vadd.f32 %v1956_v58, %v1212_v46 }
 0x109   : > { %v1316_v51 = vmax.f32 %v1284_v14, 0.0  ;;  %v1285_v52 = vadd.f32 %v1253_v47, %v822_v45  ;;  %v1567_v54 = vpop.f32.mrb[8].mxu0 }
 0x10a   : > { %v1314_v56 = vmax.f32 %v1282_v49, 0.0  ;;  %v1283_v57 = vadd.f32 %v1251_v50, %v820_v48  ;;  %v786_v59 = vmul.f32 %v1567_v54, %v1940_v17  ;;  %v1615_v60 = vpop.f32.mrb[8].mxu1  ;;  %v674_v61 = vpop.f32.mrb[9].mxu0 }
 0x10b   : > { %1348 = vst [vmem:[%s1977_s18 + $0x30] sm:$0xff] %v1316_v51  ;;  %v1317_v62 = vmax.f32 %v1285_v52, 0.0  ;;  %v1217_v63 = vmul.f32 %v1615_v60, %v1945_v53  ;;  %v784_v0 = vmul.f32 %v1940_v17, %v674_v61  ;;  %v1105_v1 = vpop.f32.mrb[9].mxu1  ;;  %v1568_v2 = vpop.f32.mrb[10].mxu0 }
 0x10c   : > { %1346 = vst [vmem:[%s1977_s18 + $0x20] sm:$0xff] %v1314_v56  ;;  %v1315_v3 = vmax.f32 %v1283_v57, 0.0  ;;  %v825_v4 = vadd.f32 %v1950_v55, %v786_v59  ;;  %v1215_v5 = vmul.f32 %v1945_v53, %v1105_v1  ;;  %v787_v6 = vmul.f32 %v1568_v2, %v1940_v17  ;;  %v1616_v7 = vpop.f32.mrb[10].mxu1  ;;  %v677_v8 = vpop.f32.mrb[11].mxu0 }
 0x10d   : > { %1349 = vst [vmem:[%s1977_s18 + $0x38] sm:$0xff] %v1317_v62  ;;  %v1256_v9 = vadd.f32 %v1956_v58, %v1217_v63  ;;  %v823_v10 = vadd.f32 %v1950_v55, %v784_v0  ;;  %v1218_v11 = vmul.f32 %v1616_v7, %v1945_v53  ;;  %v785_v12 = vmul.f32 %v1940_v17, %v677_v8  ;;  %v1108_v13 = vpop.f32.mrb[11].mxu1 }
 0x10e   : > { %1347 = vst [vmem:[%s1977_s18 + $0x28] sm:$0xff] %v1315_v3  ;;  %v1254_v15 = vadd.f32 %v1956_v58, %v1215_v5  ;;  %v826_v16 = vadd.f32 %v1950_v55, %v787_v6  ;;  %v1216_v18 = vmul.f32 %v1945_v53, %v1108_v13 }
 0x10f   : > { %v1288_v19 = vadd.f32 %v1256_v9, %v825_v4  ;;  %v1257_v20 = vadd.f32 %v1956_v58, %v1218_v11  ;;  %v824_v21 = vadd.f32 %v1950_v55, %v785_v12 }
 0x110   : > { %v1286_v22 = vadd.f32 %v1254_v15, %v823_v10  ;;  %v1255_v23 = vadd.f32 %v1956_v58, %v1216_v18 }
 0x111   : > { %v1320_v24 = vmax.f32 %v1288_v19, 0.0  ;;  %v1289_v25 = vadd.f32 %v1257_v20, %v826_v16  ;;  %v1571_v26 = vpop.f32.mrb[12].mxu0 }
 0x112   : > { %v1318_v27 = vmax.f32 %v1286_v22, 0.0  ;;  %v1287_v28 = vadd.f32 %v1255_v23, %v824_v21  ;;  %v790_v29 = vmul.f32 %v1571_v26, %v1940_v17  ;;  %v1619_v30 = vpop.f32.mrb[12].mxu1  ;;  %v690_v31 = vpop.f32.mrb[13].mxu0 }
 0x113   : > { %1352 = vst [vmem:[%s1977_s18 + $0x50] sm:$0xff] %v1320_v24  ;;  %v1321_v32 = vmax.f32 %v1289_v25, 0.0  ;;  %v1221_v33 = vmul.f32 %v1619_v30, %v1945_v53  ;;  %v788_v34 = vmul.f32 %v1940_v17, %v690_v31  ;;  %v1121_v35 = vpop.f32.mrb[13].mxu1  ;;  %v1572_v36 = vpop.f32.mrb[14].mxu0 }
 0x114   : > { %1350 = vst [vmem:[%s1977_s18 + $0x40] sm:$0xff] %v1318_v27  ;;  %v1319_v37 = vmax.f32 %v1287_v28, 0.0  ;;  %v829_v38 = vadd.f32 %v1950_v55, %v790_v29  ;;  %v1219_v39 = vmul.f32 %v1945_v53, %v1121_v35  ;;  %v791_v40 = vmul.f32 %v1572_v36, %v1940_v17  ;;  %v1620_v41 = vpop.f32.mrb[14].mxu1  ;;  %v693_v42 = vpop.f32.mrb[15].mxu0 }
 0x115   : > { %1353 = vst [vmem:[%s1977_s18 + $0x58] sm:$0xff] %v1321_v32  ;;  %v1260_v43 = vadd.f32 %v1956_v58, %v1221_v33  ;;  %v827_v44 = vadd.f32 %v1950_v55, %v788_v34  ;;  %v1222_v45 = vmul.f32 %v1620_v41, %v1945_v53  ;;  %v789_v46 = vmul.f32 %v1940_v17, %v693_v42  ;;  %v1124_v14 = vpop.f32.mrb[15].mxu1 }
 0x116   : > { %1351 = vst [vmem:[%s1977_s18 + $0x48] sm:$0xff] %v1319_v37  ;;  %v1258_v47 = vadd.f32 %v1956_v58, %v1219_v39  ;;  %v830_v48 = vadd.f32 %v1950_v55, %v791_v40  ;;  %v1220_v49 = vmul.f32 %v1945_v53, %v1124_v14 }
 0x117   : > { %v1292_v50 = vadd.f32 %v1260_v43, %v829_v38  ;;  %v1261_v51 = vadd.f32 %v1956_v58, %v1222_v45  ;;  %v828_v52 = vadd.f32 %v1950_v55, %v789_v46 }
 0x118   : > { %v1290_v54 = vadd.f32 %v1258_v47, %v827_v44  ;;  %v1259_v56 = vadd.f32 %v1956_v58, %v1220_v49 }
 0x119   : > { %v1324_v57 = vmax.f32 %v1292_v50, 0.0  ;;  %v1293_v59 = vadd.f32 %v1261_v51, %v830_v48  ;;  %v1575_v60 = vpop.f32.mrb[16].mxu0 }
 0x11a   : > { %v1322_v61 = vmax.f32 %v1290_v54, 0.0  ;;  %v1291_v62 = vadd.f32 %v1259_v56, %v828_v52  ;;  %v794_v63 = vmul.f32 %v1575_v60, %v1940_v17  ;;  %v1623_v0 = vpop.f32.mrb[16].mxu1  ;;  %v706_v1 = vpop.f32.mrb[17].mxu0 }
 0x11b   : > { %1356 = vst [vmem:[%s1977_s18 + $0x70] sm:$0xff] %v1324_v57  ;;  %v1325_v2 = vmax.f32 %v1293_v59, 0.0  ;;  %v1225_v3 = vmul.f32 %v1623_v0, %v1945_v53  ;;  %v792_v4 = vmul.f32 %v1940_v17, %v706_v1  ;;  %v1137_v5 = vpop.f32.mrb[17].mxu1  ;;  %v1576_v6 = vpop.f32.mrb[18].mxu0 }
 0x11c   : > { %1354 = vst [vmem:[%s1977_s18 + $0x60] sm:$0xff] %v1322_v61  ;;  %v1323_v7 = vmax.f32 %v1291_v62, 0.0  ;;  %v833_v8 = vadd.f32 %v1950_v55, %v794_v63  ;;  %v1223_v9 = vmul.f32 %v1945_v53, %v1137_v5  ;;  %v795_v10 = vmul.f32 %v1576_v6, %v1940_v17  ;;  %v1624_v11 = vpop.f32.mrb[18].mxu1  ;;  %v709_v12 = vpop.f32.mrb[19].mxu0 }
 0x11d   : > { %1357 = vst [vmem:[%s1977_s18 + $0x78] sm:$0xff] %v1325_v2  ;;  %v1264_v13 = vadd.f32 %v1956_v58, %v1225_v3  ;;  %v831_v15 = vadd.f32 %v1950_v55, %v792_v4  ;;  %v1226_v16 = vmul.f32 %v1624_v11, %v1945_v53  ;;  %v793_v18 = vmul.f32 %v1940_v17, %v709_v12  ;;  %v1140_v19 = vpop.f32.mrb[19].mxu1 }
 0x11e   : > { %1355 = vst [vmem:[%s1977_s18 + $0x68] sm:$0xff] %v1323_v7  ;;  %v1262_v20 = vadd.f32 %v1956_v58, %v1223_v9  ;;  %v834_v21 = vadd.f32 %v1950_v55, %v795_v10  ;;  %v1224_v22 = vmul.f32 %v1945_v53, %v1140_v19 }
 0x11f   : > { %v1296_v23 = vadd.f32 %v1264_v13, %v833_v8  ;;  %v1265_v24 = vadd.f32 %v1956_v58, %v1226_v16  ;;  %v832_v25 = vadd.f32 %v1950_v55, %v793_v18 }
 0x120   : > { %v1294_v26 = vadd.f32 %v1262_v20, %v831_v15  ;;  %v1263_v27 = vadd.f32 %v1956_v58, %v1224_v22 }
 0x121   : > { %v1328_v28 = vmax.f32 %v1296_v23, 0.0  ;;  %v1297_v29 = vadd.f32 %v1265_v24, %v834_v21  ;;  %v1579_v30 = vpop.f32.mrb[20].mxu0 }
 0x122   : > { %v1326_v31 = vmax.f32 %v1294_v26, 0.0  ;;  %v1295_v32 = vadd.f32 %v1263_v27, %v832_v25  ;;  %v798_v33 = vmul.f32 %v1579_v30, %v1940_v17  ;;  %v1627_v34 = vpop.f32.mrb[20].mxu1  ;;  %v722_v35 = vpop.f32.mrb[21].mxu0 }
 0x123   : > { %1360 = vst [vmem:[%s1977_s18 + $0x90] sm:$0xff] %v1328_v28  ;;  %v1329_v36 = vmax.f32 %v1297_v29, 0.0  ;;  %v1229_v37 = vmul.f32 %v1627_v34, %v1945_v53  ;;  %v796_v38 = vmul.f32 %v1940_v17, %v722_v35  ;;  %v1153_v39 = vpop.f32.mrb[21].mxu1  ;;  %v1580_v40 = vpop.f32.mrb[22].mxu0 }
 0x124   : > { %1358 = vst [vmem:[%s1977_s18 + $0x80] sm:$0xff] %v1326_v31  ;;  %v1327_v41 = vmax.f32 %v1295_v32, 0.0  ;;  %v837_v42 = vadd.f32 %v1950_v55, %v798_v33  ;;  %v1227_v43 = vmul.f32 %v1945_v53, %v1153_v39  ;;  %v799_v44 = vmul.f32 %v1580_v40, %v1940_v17  ;;  %v1628_v45 = vpop.f32.mrb[22].mxu1  ;;  %v725_v46 = vpop.f32.mrb[23].mxu0 }
 0x125   : > { %1361 = vst [vmem:[%s1977_s18 + $0x98] sm:$0xff] %v1329_v36  ;;  %v1268_v14 = vadd.f32 %v1956_v58, %v1229_v37  ;;  %v835_v47 = vadd.f32 %v1950_v55, %v796_v38  ;;  %v1230_v48 = vmul.f32 %v1628_v45, %v1945_v53  ;;  %v797_v49 = vmul.f32 %v1940_v17, %v725_v46  ;;  %v1156_v50 = vpop.f32.mrb[23].mxu1 }
 0x126   : > { %1359 = vst [vmem:[%s1977_s18 + $0x88] sm:$0xff] %v1327_v41  ;;  %v1266_v51 = vadd.f32 %v1956_v58, %v1227_v43  ;;  %v838_v52 = vadd.f32 %v1950_v55, %v799_v44  ;;  %v1228_v54 = vmul.f32 %v1945_v53, %v1156_v50 }
 0x127   : > { %v1300_v56 = vadd.f32 %v1268_v14, %v837_v42  ;;  %v1269_v57 = vadd.f32 %v1956_v58, %v1230_v48  ;;  %v836_v59 = vadd.f32 %v1950_v55, %v797_v49 }
 0x128   : > { %v1298_v60 = vadd.f32 %v1266_v51, %v835_v47  ;;  %v1267_v61 = vadd.f32 %v1956_v58, %v1228_v54 }
 0x129   : > { %v1332_v62 = vmax.f32 %v1300_v56, 0.0  ;;  %v1301_v63 = vadd.f32 %v1269_v57, %v838_v52  ;;  %v1583_v0 = vpop.f32.mrb[24].mxu0 }
 0x12a   : > { %v1330_v1 = vmax.f32 %v1298_v60, 0.0  ;;  %v1299_v2 = vadd.f32 %v1267_v61, %v836_v59  ;;  %v802_v3 = vmul.f32 %v1583_v0, %v1940_v17  ;;  %v1631_v4 = vpop.f32.mrb[24].mxu1  ;;  %v738_v5 = vpop.f32.mrb[25].mxu0 }
 0x12b   : > { %1364 = vst [vmem:[%s1977_s18 + $0xb0] sm:$0xff] %v1332_v62  ;;  %v1333_v6 = vmax.f32 %v1301_v63, 0.0  ;;  %v1233_v7 = vmul.f32 %v1631_v4, %v1945_v53  ;;  %v800_v8 = vmul.f32 %v1940_v17, %v738_v5  ;;  %v1169_v9 = vpop.f32.mrb[25].mxu1  ;;  %v1584_v10 = vpop.f32.mrb[26].mxu0 }
 0x12c   : > { %1362 = vst [vmem:[%s1977_s18 + $0xa0] sm:$0xff] %v1330_v1  ;;  %v1331_v11 = vmax.f32 %v1299_v2, 0.0  ;;  %v841_v12 = vadd.f32 %v1950_v55, %v802_v3  ;;  %v1231_v13 = vmul.f32 %v1945_v53, %v1169_v9  ;;  %v803_v15 = vmul.f32 %v1584_v10, %v1940_v17  ;;  %v1632_v16 = vpop.f32.mrb[26].mxu1  ;;  %v741_v18 = vpop.f32.mrb[27].mxu0 }
 0x12d   : > { %1365 = vst [vmem:[%s1977_s18 + $0xb8] sm:$0xff] %v1333_v6  ;;  %v1272_v19 = vadd.f32 %v1956_v58, %v1233_v7  ;;  %v839_v20 = vadd.f32 %v1950_v55, %v800_v8  ;;  %v1234_v21 = vmul.f32 %v1632_v16, %v1945_v53  ;;  %v801_v22 = vmul.f32 %v1940_v17, %v741_v18  ;;  %v1172_v23 = vpop.f32.mrb[27].mxu1 }
 0x12e   : > { %1363 = vst [vmem:[%s1977_s18 + $0xa8] sm:$0xff] %v1331_v11  ;;  %v1270_v24 = vadd.f32 %v1956_v58, %v1231_v13  ;;  %v842_v25 = vadd.f32 %v1950_v55, %v803_v15  ;;  %v1232_v26 = vmul.f32 %v1945_v53, %v1172_v23 }
 0x12f   : > { %v1304_v27 = vadd.f32 %v1272_v19, %v841_v12  ;;  %v1273_v28 = vadd.f32 %v1956_v58, %v1234_v21  ;;  %v840_v29 = vadd.f32 %v1950_v55, %v801_v22 }
 0x130   : > { %v1302_v30 = vadd.f32 %v1270_v24, %v839_v20  ;;  %v1271_v31 = vadd.f32 %v1956_v58, %v1232_v26 }
 0x131   : > { %v1336_v32 = vmax.f32 %v1304_v27, 0.0  ;;  %v1305_v33 = vadd.f32 %v1273_v28, %v842_v25  ;;  %v1587_v34 = vpop.f32.mrb[28].mxu0 }
 0x132   : > { %v1334_v35 = vmax.f32 %v1302_v30, 0.0  ;;  %v1303_v36 = vadd.f32 %v1271_v31, %v840_v29  ;;  %v806_v37 = vmul.f32 %v1587_v34, %v1940_v17  ;;  %v1635_v38 = vpop.f32.mrb[28].mxu1  ;;  %v754_v39 = vpop.f32.mrb[29].mxu0 }
 0x133   : > { %1368 = vst [vmem:[%s1977_s18 + $0xd0] sm:$0xff] %v1336_v32  ;;  %v1337_v40 = vmax.f32 %v1305_v33, 0.0  ;;  %v1237_v41 = vmul.f32 %v1635_v38, %v1945_v53  ;;  %v804_v42 = vmul.f32 %v1940_v17, %v754_v39  ;;  %v1185_v43 = vpop.f32.mrb[29].mxu1  ;;  %v1588_v44 = vpop.f32.mrb[30].mxu0 }
 0x134   : > { %1366 = vst [vmem:[%s1977_s18 + $0xc0] sm:$0xff] %v1334_v35  ;;  %v1335_v45 = vmax.f32 %v1303_v36, 0.0  ;;  %v845_v46 = vadd.f32 %v1950_v55, %v806_v37  ;;  %v1235_v14 = vmul.f32 %v1945_v53, %v1185_v43  ;;  %v807_v47 = vmul.f32 %v1588_v44, %v1940_v17  ;;  %v1636_v48 = vpop.f32.mrb[30].mxu1  ;;  %v757_v49 = vpop.f32.mrb[31].mxu0 }
 0x135   : > { %1369 = vst [vmem:[%s1977_s18 + $0xd8] sm:$0xff] %v1337_v40  ;;  %v1276_v50 = vadd.f32 %v1956_v58, %v1237_v41  ;;  %v843_v51 = vadd.f32 %v1950_v55, %v804_v42  ;;  %v1238_v52 = vmul.f32 %v1636_v48, %v1945_v53  ;;  %v805_v54 = vmul.f32 %v1940_v17, %v757_v49  ;;  %v1188_v56 = vpop.f32.mrb[31].mxu1 }
 0x136   : > { %1367 = vst [vmem:[%s1977_s18 + $0xc8] sm:$0xff] %v1335_v45  ;;  %v1274_v57 = vadd.f32 %v1956_v58, %v1235_v14  ;;  %v846_v59 = vadd.f32 %v1950_v55, %v807_v47  ;;  %v1236_v60 = vmul.f32 %v1945_v53, %v1188_v56 }
 0x137   : > { %v1308_v61 = vadd.f32 %v1276_v50, %v845_v46  ;;  %v1277_v62 = vadd.f32 %v1956_v58, %v1238_v52  ;;  %v844_v63 = vadd.f32 %v1950_v55, %v805_v54 }
 0x138   : > { %v1306_v0 = vadd.f32 %v1274_v57, %v843_v51  ;;  %v1275_v1 = vadd.f32 %v1956_v58, %v1236_v60 }
 0x139   : > { %v1340_v17 = vmax.f32 %v1308_v61, 0.0  ;;  %v1309_v2 = vadd.f32 %v1277_v62, %v846_v59 }
 0x13a   : > { %v1338_v3 = vmax.f32 %v1306_v0, 0.0  ;;  %v1307_v4 = vadd.f32 %v1275_v1, %v844_v63 }
 0x13b   : > { %1372 = vst [vmem:[%s1977_s18 + $0xf0] sm:$0xff] %v1340_v17  ;;  %v1341_v5 = vmax.f32 %v1309_v2, 0.0 }
 0x13c   : > { %1370 = vst [vmem:[%s1977_s18 + $0xe0] sm:$0xff] %v1338_v3  ;;  %v1339_v6 = vmax.f32 %v1307_v4, 0.0 }
 0x13d   : > { %1373 = vst [vmem:[%s1977_s18 + $0xf8] sm:$0xff] %v1341_v5 }
 0x13e   : > { %1371 = vst [vmem:[%s1977_s18 + $0xe8] sm:$0xff] %v1339_v6 }
 0x13f PF: > { %s20_s13 = sadd.s32 1, %s1683_s13  }
 0x140   : > { %p17_p4 = scmp.ge.s32.totalorder %s20_s13, 4  }
 0x142   :  { %19 = sbr.rel (!%p17_p4) target bundleno = 1 (0x1), region = 93 }

// kernel: bottleneck_forward.5
= control target key start
LH: loop header
LB: loop body
LE: loop exit
PB: predicated region body
PF: predicated region fallthrough
CT: control target
= control target key end

     0   :  { %s5245_s18 = smov 0   ;;  %s6015_s0 = inlined_call_operand.vmem [shape: f32[2,16,16,128], index: 0, kind: input, shape index: {}]   ;;  %s6016_s1 = inlined_call_operand.vmem [shape: f32[1,128], index: 1, kind: input, shape index: {}]   ;;  %s6017_s2 = inlined_call_operand.vmem [shape: f32[1,128], index: 2, kind: input, shape index: {}]   ;;  %s6018_s3 = inlined_call_operand.vmem [shape: bf16[9,128,128], index: 3, kind: input, shape index: {}]   ;;  %s6019_s4 = inlined_call_operand.vmem [shape: f32[2,16,16,128], index: 4, kind: output, shape index: {0}]   ;;  %s6020_s5 = inlined_call_operand.vmem [shape: f32[2,8,128], index: 5, kind: output, shape index: {1}]  }
   0x1 LB: > { %s3980_s19 = sadd.s32 4294967295, %s5212_s18   ;;  %p3984_p0 = scmp.ge.s32.totalorder %s5212_s18, 1  ;;  %s5212_s18 = sphi %s5245_s18, %s16_s18  }
   0x2   : > { %p190_p1 = scmp.lt.s32.totalorder %s5212_s18, 3 }
   0x4   : > { %p191_p2 = pnand %p3984_p0, %p190_p1 }
   0x5   : > { %v5125_v0 = vld [vmem:[%s6018_s3] sm:$0xff] (!%p191_p2)   ;;  %v5214_v2 = vmov (!%p191_p2), 0.0   ;;  %v5127_v3 = vld [vmem:[%s6018_s3 + $0x8] sm:$0xff] (!%p191_p2)   ;;  %p222_p3 = scmp.lt.s32.totalorder (!%p191_p2), %s3980_s19, 1  ;;  %v5129_v5 = vld [vmem:[%s6018_s3 + $0x10] sm:$0xff] (!%p191_p2)  }
   0x6   : > { %194 = sbr.rel (%p191_p2) target bundleno = 557 (0x22d), region = 36  ;;  %v5126_v1 = vld [vmem:[%s6018_s3 + $0x100] sm:$0xff] (!%p191_p2)   ;;  %237 = vst [vmem:[#allocation2] sm:$0xff] (!%p191_p2), %v5214_v2  ;;  %238 = vst [vmem:[#allocation2 + $0x8] sm:$0xff] (!%p191_p2), %v5214_v2  ;;  %4412 = vmatprep.subr.bf16.mxu1 (!%p191_p2), %v5125_v0  ;;  %v5128_v4 = vld [vmem:[%s6018_s3 + $0x108] sm:$0xff] (!%p191_p2)  }
   0x7   : > { %239 = vst [vmem:[#allocation2 + $0x10] sm:$0x3] (!%p191_p2), %v5214_v2  ;;  %241 = vst [vmem:[#allocation2 + $0x198] sm:$0xff] (!%p191_p2), %v5214_v2  ;;  %4604 = vmatprep.subr.bf16.mxu0 (!%p191_p2), %v5126_v1  ;;  %4413 = vmatpush3.bf16.msra.mxu1 (!%p191_p2), %v5125_v0  ;;  %v5130_v6 = vld [vmem:[%s6018_s3 + $0x110] sm:$0xff] (!%p191_p2)   ;;  %v5131_v7 = vld [vmem:[%s6018_s3 + $0x18] sm:$0xff] (!%p191_p2)  }
   0x8   : > { %242 = vst [vmem:[#allocation2 + $0x1a0] sm:$0xff] (!%p191_p2), %v5214_v2  ;;  %243 = vst [vmem:[#allocation2 + $0x1a8] sm:$0x3] (!%p191_p2), %v5214_v2  ;;  %4605 = vmatpush3.bf16.msra.mxu0 (!%p191_p2), %v5126_v1  ;;  %4414 = vmatprep.subr.bf16.mxu1 (!%p191_p2), %v5127_v3  ;;  %v5132_v8 = vld [vmem:[%s6018_s3 + $0x118] sm:$0xff] (!%p191_p2)   ;;  %v5133_v9 = vld [vmem:[%s6018_s3 + $0x20] sm:$0xff] (!%p191_p2)  }
   0x9   : > { %245 = vst [vmem:[#allocation2 + $0x18] sm:$0x1] (!%p191_p2), %v5214_v2  ;;  %246 = vst [vmem:[#allocation2 + $0x30] sm:$0x1] (!%p191_p2), %v5214_v2  ;;  %4606 = vmatprep.subr.bf16.mxu0 (!%p191_p2), %v5128_v4  ;;  %v5134_v10 = vld [vmem:[%s6018_s3 + $0x120] sm:$0xff] (!%p191_p2)   ;;  %v5135_v11 = vld [vmem:[%s6018_s3 + $0x28] sm:$0xff] (!%p191_p2)  }
   0xa   : > { %247 = vst [vmem:[#allocation2 + $0x48] sm:$0x1] (!%p191_p2), %v5214_v2  ;;  %248 = vst [vmem:[#allocation2 + $0x60] sm:$0x1] (!%p191_p2), %v5214_v2  ;;  %v5136_v12 = vld [vmem:[%s6018_s3 + $0x128] sm:$0xff] (!%p191_p2)   ;;  %v5137_v24 = vld [vmem:[%s6018_s3 + $0x30] sm:$0xff] (!%p191_p2)  }
   0xb   : > { %249 = vst [vmem:[#allocation2 + $0x78] sm:$0x1] (!%p191_p2), %v5214_v2  ;;  %250 = vst [vmem:[#allocation2 + $0x90] sm:$0x1] (!%p191_p2), %v5214_v2  ;;  %4415 = vmatpush3.bf16.msra.mxu1 (!%p191_p2), %v5127_v3  ;;  %v5351_v17 = vld [vmem:[%s6016_s1] ss:$0 sm:$0xff] (!%p191_p2) }
   0xc   : > { %251 = vst [vmem:[#allocation2 + $0xa8] sm:$0x1] (!%p191_p2), %v5214_v2  ;;  %252 = vst [vmem:[#allocation2 + $0xc0] sm:$0x1] (!%p191_p2), %v5214_v2  ;;  %4607 = vmatpush3.bf16.msra.mxu0 (!%p191_p2), %v5128_v4  ;;  %4416 = vmatprep.subr.bf16.mxu1 (!%p191_p2), %v5129_v5  ;;  %v5356_v18 = vld [vmem:[%s6017_s2] ss:$0 sm:$0xff] (!%p191_p2) }
   0xd   : > { %253 = vst [vmem:[#allocation2 + $0xd8] sm:$0x1] %v5214_v2  ;;  %254 = vst [vmem:[#allocation2 + $0xf0] sm:$0x1] %v5214_v2  ;;  %s6022_s19 = smov (!%p222_p3, %s3980_s19), 1  ;;  %4608 = vmatprep.subr.bf16.mxu0 %v5130_v6  ;;  %v5138_v28 = vld [vmem:[%s6018_s3 + $0x130] sm:$0xff]  }
   0xe   : > { %255 = vst [vmem:[#allocation2 + $0x108] sm:$0x1] %v5214_v2  ;;  %256 = vst [vmem:[#allocation2 + $0x120] sm:$0x1] %v5214_v2  ;;  %s4194_s11 = sshll.u32 %s6022_s19, 8  ;;  %v5139_v40 = vld [vmem:[%s6018_s3 + $0x38] sm:$0xff]  }
   0xf   : > { %257 = vst [vmem:[#allocation2 + $0x138] sm:$0x1] %v5214_v2  ;;  %258 = vst [vmem:[#allocation2 + $0x150] sm:$0x1] %v5214_v2  ;;  %4417 = vmatpush3.bf16.msra.mxu1 %v5129_v5  ;;  %s5337_s20 = scalar_lea.vmem %s6015_s0, %s4194_s11  ;;  %v5140_v45 = vld [vmem:[%s6018_s3 + $0x138] sm:$0xff]   ;;  %v5141_v52 = vld [vmem:[%s6018_s3 + $0x40] sm:$0xff]   ;;  %s5971_s16 = scalar_lea.vmem %s6019_s4, %s4194_s11 }
  0x10   : > { %259 = vst [vmem:[#allocation2 + $0x168] sm:$0x1] %v5214_v2  ;;  %260 = vst [vmem:[#allocation2 + $0x180] sm:$0x1] %v5214_v2  ;;  %4609 = vmatpush3.bf16.msra.mxu0 %v5130_v6  ;;  %4418 = vmatprep.subr.bf16.mxu1 %v5131_v7  ;;  %v280_v14 = vld [vmem:[%s5337_s20] sm:$0xff]  ;;  %v281_v15 = vld [vmem:[%s5337_s20 + $0x8] sm:$0xff] }
  0x11   : > { %263 = vst [vmem:[#allocation2 + $0x29] sm:$0x1] %v5214_v2  ;;  %264 = vst [vmem:[#allocation2 + $0x41] sm:$0x1] %v5214_v2  ;;  %4610 = vmatprep.subr.bf16.mxu0 %v5132_v8  ;;  %v319_v19 = vmul.f32 %v5351_v17, %v280_v14  ;;  %v320_v20 = vmul.f32 %v5351_v17, %v281_v15  ;;  %v282_v21 = vld [vmem:[%s5337_s20 + $0x10] sm:$0xff]  ;;  %v283_v22 = vld [vmem:[%s5337_s20 + $0x18] sm:$0xff] }
  0x12   : > { %265 = vst [vmem:[#allocation2 + $0x59] sm:$0x1] %v5214_v2  ;;  %266 = vst [vmem:[#allocation2 + $0x71] sm:$0x1] %v5214_v2  ;;  %v321_v23 = vmul.f32 %v5351_v17, %v282_v21  ;;  %v322_v27 = vmul.f32 %v5351_v17, %v283_v22  ;;  %v284_v30 = vld [vmem:[%s5337_s20 + $0x20] sm:$0xff]  ;;  %v285_v31 = vld [vmem:[%s5337_s20 + $0x28] sm:$0xff] }
  0x13   : > { %267 = vst [vmem:[#allocation2 + $0x89] sm:$0x1] %v5214_v2  ;;  %268 = vst [vmem:[#allocation2 + $0xa1] sm:$0x1] %v5214_v2  ;;  %4419 = vmatpush3.bf16.msra.mxu1 %v5131_v7  ;;  %v358_v25 = vadd.f32 %v5356_v18, %v319_v19  ;;  %v359_v26 = vadd.f32 %v5356_v18, %v320_v20  ;;  %v323_v35 = vmul.f32 %v5351_v17, %v284_v30  ;;  %v286_v38 = vld [vmem:[%s5337_s20 + $0x30] sm:$0xff]  ;;  %v287_v39 = vld [vmem:[%s5337_s20 + $0x38] sm:$0xff] }
  0x14   : > { %269 = vst [vmem:[#allocation2 + $0xb9] sm:$0x1] %v5214_v2  ;;  %270 = vst [vmem:[#allocation2 + $0xd1] sm:$0x1] %v5214_v2  ;;  %4611 = vmatpush3.bf16.msra.mxu0 %v5132_v8  ;;  %4420 = vmatprep.subr.bf16.mxu1 %v5133_v9  ;;  %v360_v29 = vadd.f32 %v5356_v18, %v321_v23  ;;  %v361_v34 = vadd.f32 %v5356_v18, %v322_v27  ;;  %v288_v50 = vld [vmem:[%s5337_s20 + $0x40] sm:$0xff]  ;;  %v289_v51 = vld [vmem:[%s5337_s20 + $0x48] sm:$0xff] }
  0x15   : > { %271 = vst [vmem:[#allocation2 + $0xe9] sm:$0x1] %v5214_v2  ;;  %272 = vst [vmem:[#allocation2 + $0x101] sm:$0x1] %v5214_v2  ;;  %4612 = vmatprep.subr.bf16.mxu0 %v5134_v10  ;;  %v390_v32 = vmax.f32 %v358_v25, 0.0  ;;  %v391_v33 = vmax.f32 %v359_v26, 0.0  ;;  %v324_v37 = vmul.f32 %v5351_v17, %v285_v31  ;;  %v362_v43 = vadd.f32 %v5356_v18, %v323_v35 }
  0x16   : > { %273 = vst [vmem:[#allocation2 + $0x119] sm:$0x1] %v5214_v2  ;;  %274 = vst [vmem:[#allocation2 + $0x131] sm:$0x1] %v5214_v2  ;;  %v392_v36 = vmax.f32 %v360_v29, 0.0  ;;  %v393_v42 = vmax.f32 %v361_v34, 0.0  ;;  %v325_v44 = vmul.f32 %v5351_v17, %v286_v38  ;;  %v326_v47 = vmul.f32 %v5351_v17, %v287_v39 }
  0x17   : > { %275 = vst [vmem:[#allocation2 + $0x149] sm:$0x1] %v5214_v2  ;;  %276 = vst [vmem:[#allocation2 + $0x161] sm:$0x1] %v5214_v2  ;;  %4421 = vmatpush3.bf16.msra.mxu1 %v5133_v9  ;;  %v5383_v41 = vpack.c.bf16 %v391_v33, %v390_v32  ;;  %v363_v46 = vadd.f32 %v5356_v18, %v324_v37  ;;  %v394_v48 = vmax.f32 %v362_v43, 0.0  ;;  %v290_v57 = vld [vmem:[%s5337_s20 + $0x50] sm:$0xff] }
  0x18   : > { %277 = vst [vmem:[#allocation2 + $0x179] sm:$0x1] %v5214_v2  ;;  %278 = vst [vmem:[#allocation2 + $0x191] sm:$0x1] %v5214_v2  ;;  %4613 = vmatpush3.bf16.msra.mxu0 %v5134_v10  ;;  %4422 = vmatprep.subr.bf16.mxu1 %v5135_v11  ;;  %v5394_v49 = vadd.f32 %v5356_v18, %v325_v44  ;;  %v5402_v54 = vadd.f32 %v5356_v18, %v326_v47  ;;  %v291_v59 = vld [vmem:[%s5337_s20 + $0x58] sm:$0xff]  ;;  %v5142_v61 = vld [vmem:[%s6018_s3 + $0x140] sm:$0xff]  }
  0x19   : > { %244 = vst [vmem:[#allocation2] sm:$0x1] %v5214_v2  ;;  %261 = vst [vmem:[#allocation2 + $0x198] sm:$0x1] %v5214_v2  ;;  %4614 = vmatprep.subr.bf16.mxu0 %v5136_v12  ;;  %4620 = vmatprep.mubr.bf16.mxu0 %v5383_v41  ;;  %v395_v53 = vmax.f32 %v363_v46, 0.0  ;;  %v327_v55 = vmul.f32 %v5351_v17, %v288_v50  ;;  %v328_v56 = vmul.f32 %v5351_v17, %v289_v51  ;;  %v292_v3 = vld [vmem:[%s5337_s20 + $0x60] sm:$0xff] }
  0x1a   : > { %262 = vst [vmem:[#allocation2 + $0x11] sm:$0x1] %v5214_v2  ;;  %279 = vst [vmem:[#allocation2 + $0x1a9] sm:$0x1] %v5214_v2  ;;  %v396_v58 = vmax.f32 %v5394_v49, 0.0  ;;  %v329_v60 = vmul.f32 %v5351_v17, %v290_v57  ;;  %v397_v62 = vmax.f32 %v5402_v54, 0.0  ;;  %v330_v1 = vmul.f32 %v5351_v17, %v291_v59 }
  0x1b   : > { %4423 = vmatpush3.bf16.msra.mxu1 %v5135_v11  ;;  %423 = vst [vmem:[#allocation2 + $0x19] sm:$0xff] %v390_v32  ;;  %424 = vst [vmem:[#allocation2 + $0x21] sm:$0xff] %v391_v33  ;;  %v5415_v63 = vadd.f32 %v5356_v18, %v327_v55  ;;  %v5418_v0 = vadd.f32 %v5356_v18, %v328_v56  ;;  %v293_v4 = vld [vmem:[%s5337_s20 + $0x68] sm:$0xff]  ;;  %v5428_v7 = vpack.c.bf16 %v393_v42, %v392_v36  ;;  %v294_v22 = vld [vmem:[%s5337_s20 + $0x70] sm:$0xff]  ;;  %s3989_s10 = sshll.u32 %s6022_s19, 3 }
  0x1c   : > { %4615 = vmatpush3.bf16.msra.mxu0 %v5136_v12  ;;  %4424 = vmatprep.subr.bf16.mxu1 %v5137_v24  ;;  %425 = vst [vmem:[#allocation2 + $0x31] sm:$0xff] %v392_v36  ;;  %426 = vst [vmem:[#allocation2 + $0x39] sm:$0xff] %v393_v42  ;;  %v331_v10 = vmul.f32 %v5351_v17, %v292_v3  ;;  %v5143_v12 = vld [vmem:[%s6018_s3 + $0x148] sm:$0xff]   ;;  %v5439_v14 = vadd.f32 %v5356_v18, %v330_v1  ;;  %v295_v23 = vld [vmem:[%s5337_s20 + $0x78] sm:$0xff]  ;;  %s5952_s14 = scalar_lea.vmem %s6020_s5, %s3989_s10 }
  0x1d   : > { %4616 = vmatprep.subr.bf16.mxu0 %v5138_v28  ;;  %427 = vst [vmem:[#allocation2 + $0x49] sm:$0xff] %v394_v48  ;;  %428 = vst [vmem:[#allocation2 + $0x51] sm:$0xff] %v395_v53  ;;  %v398_v8 = vmax.f32 %v5415_v63, 0.0  ;;  %v399_v9 = vmax.f32 %v5418_v0, 0.0  ;;  %v5443_v20 = vpack.c.bf16 %v395_v53, %v394_v48  ;;  %v5144_v25 = vld [vmem:[%s6018_s3 + $0x48] sm:$0xff]   ;;  %v334_v31 = vmul.f32 %v5351_v17, %v295_v23  ;;  %v5147_v33 = vld [vmem:[%s6018_s3 + $0x50] sm:$0xff]  }
  0x1e   : > { %429 = vst [vmem:[#allocation2 + $0x61] sm:$0xff] %v396_v58  ;;  %430 = vst [vmem:[#allocation2 + $0x69] sm:$0xff] %v397_v62  ;;  %v5446_v21 = vadd.f32 %v5356_v18, %v331_v10  ;;  %v401_v26 = vmax.f32 %v5439_v14, 0.0  ;;  %v5145_v36 = vld [vmem:[%s6018_s3 + $0x150] sm:$0xff]   ;;  %v296_v39 = vld [vmem:[%s5337_s20 + $0x80] sm:$0xff]  ;;  %v5496_v46 = vpack.c.bf16 %v397_v62, %v396_v58 }
  0x1f   : > { %4425 = vmatpush3.bf16.msra.mxu1 %v5137_v24  ;;  %431 = vst [vmem:[#allocation2 + $0x79] sm:$0xff] %v398_v8  ;;  %432 = vst [vmem:[#allocation2 + $0x81] sm:$0xff] %v399_v9  ;;  %v5482_v38 = vadd.f32 %v5356_v18, %v334_v31  ;;  %v297_v44 = vld [vmem:[%s5337_s20 + $0x88] sm:$0xff]  ;;  %v5502_v51 = vpack.c.bf16 %v399_v9, %v398_v8  ;;  %v5150_v54 = vld [vmem:[%s6018_s3 + $0x58] sm:$0xff]  }
  0x20   : > { %v455_v13 = vld [vmem:[#allocation2] sm:$0xff]  ;;  %4617 = vmatpush3.bf16.msra.mxu0 %v5138_v28  ;;  %4426 = vmatprep.subr.bf16.mxu1 %v5139_v40  ;;  %v333_v28 = vmul.f32 %v5351_v17, %v294_v22  ;;  %v402_v30 = vmax.f32 %v5446_v21, 0.0  ;;  %434 = vst [vmem:[#allocation2 + $0x99] sm:$0xff] %v401_v26  ;;  %v336_v50 = vmul.f32 %v5351_v17, %v297_v44  ;;  %v298_v56 = vld [vmem:[%s5337_s20 + $0x90] sm:$0xff]  ;;  %v299_v57 = vld [vmem:[%s5337_s20 + $0x98] sm:$0xff] }
  0x21   : > { %v487_v16 = vpack.c.bf16 %v5214_v2, %v455_v13  ;;  %4618 = vmatprep.subr.bf16.mxu0 %v5140_v45  ;;  %v5424_v2 = vadd.f32 %v5356_v18, %v329_v60  ;;  %v405_v48 = vmax.f32 %v5482_v38, 0.0  ;;  %v337_v62 = vmul.f32 %v5351_v17, %v298_v56  ;;  %v300_v1 = vld [vmem:[%s5337_s20 + $0xa0] sm:$0xff]  ;;  %v301_v3 = vld [vmem:[%s5337_s20 + $0xa8] sm:$0xff]  ;;  %v303_v31 = vld [vmem:[%s5337_s20 + $0xb8] sm:$0xff] }
  0x22   : > { %v457_v5 = vld [vmem:[#allocation2 + $0x18] sm:$0xff]  ;;  %v458_v6 = vld [vmem:[#allocation2 + $0x20] sm:$0xff]  ;;  %v5473_v35 = vadd.f32 %v5356_v18, %v333_v28  ;;  %435 = vst [vmem:[#allocation2 + $0xa9] sm:$0xff] %v402_v30  ;;  %v375_v53 = vadd.f32 %v5356_v18, %v336_v50  ;;  %v338_v63 = vmul.f32 %v5351_v17, %v299_v57  ;;  %v339_v8 = vmul.f32 %v5351_v17, %v300_v1  ;;  %v5149_v14 = vld [vmem:[%s6018_s3 + $0x168] sm:$0xff]  }
  0x23   : > { %4428 = vmatprep.mubr.bf16.mxu1 %v487_v16  ;;  %4427 = vmatpush3.bf16.msra.mxu1 %v5139_v40  ;;  %v488_v11 = vpack.c.bf16 %v458_v6, %v457_v5  ;;  %v459_v13 = vld [vmem:[#allocation2 + $0x30] sm:$0xff]  ;;  %v400_v15 = vmax.f32 %v5424_v2, 0.0  ;;  %v332_v16 = vmul.f32 %v5351_v17, %v293_v4  ;;  %v460_v19 = vld [vmem:[#allocation2 + $0x38] sm:$0xff]  ;;  %438 = vst [vmem:[#allocation2 + $0xc9] sm:$0xff] %v405_v48  ;;  %v5148_v4 = vld [vmem:[%s6018_s3 + $0x160] sm:$0xff]  }
  0x24   : > { %4619 = vmatpush3.bf16.msra.mxu0 %v5140_v45  ;;  %4460 = vmatprep.subr.bf16.mxu1 %v5141_v52  ;;  %v5450_v24 = vpack.c.bf16 %v460_v19, %v459_v13  ;;  %v461_v29 = vld [vmem:[#allocation2 + $0x48] sm:$0xff]  ;;  %v462_v32 = vld [vmem:[#allocation2 + $0x50] sm:$0xff]  ;;  %v404_v43 = vmax.f32 %v5473_v35, 0.0  ;;  %v335_v45 = vmul.f32 %v5351_v17, %v296_v39  ;;  %v376_v5 = vadd.f32 %v5356_v18, %v337_v62  ;;  %v308_v38 = vld [vmem:[%s5337_s20 + $0xe0] sm:$0xff] }
  0x25   : > { %4652 = vmatprep.subr.bf16.mxu0 %v5142_v61  ;;  %433 = vst [vmem:[#allocation2 + $0x91] sm:$0xff] %v400_v15  ;;  %v5459_v27 = vadd.f32 %v5356_v18, %v332_v16  ;;  %v463_v37 = vld [vmem:[#allocation2 + $0x60] sm:$0xff]  ;;  %v5485_v40 = vpack.c.bf16 %v462_v32, %v461_v29  ;;  %v464_v42 = vld [vmem:[#allocation2 + $0x68] sm:$0xff]  ;;  %v377_v6 = vadd.f32 %v5356_v18, %v338_v63  ;;  %v5151_v50 = vld [vmem:[%s6018_s3 + $0x170] sm:$0xff]  }
  0x26   : > { %4429 = vmatmul.mubr.bf16.vlgmr.msra.gmra.mrb[0].mxu1 %v488_v11  ;;  %v5498_v47 = vpack.c.bf16 %v464_v42, %v463_v37  ;;  %437 = vst [vmem:[#allocation2 + $0xc1] sm:$0xff] %v404_v43  ;;  %v374_v49 = vadd.f32 %v5356_v18, %v335_v45  ;;  %v465_v58 = vld [vmem:[#allocation2 + $0x78] sm:$0xff]  ;;  %v466_v59 = vld [vmem:[#allocation2 + $0x80] sm:$0xff]  ;;  %v5538_v10 = vpack.c.bf16 %v401_v26, %v400_v15  ;;  %v408_v19 = vmax.f32 %v376_v5, 0.0  ;;  %v5155_v21 = vld [vmem:[%s6018_s3 + $0x68] sm:$0xff]  }
  0x27   : > { %4621 = vmatmul.mubr.bf16.vlgmr.msra.gmra.mrb[0].mxu0 %v5428_v7  ;;  %4461 = vmatpush3.bf16.msra.mxu1 %v5141_v52  ;;  %v403_v34 = vmax.f32 %v5459_v27, 0.0  ;;  %v5146_v52 = vld [vmem:[%s6018_s3 + $0x158] sm:$0xff]   ;;  %v5532_v9 = vpack.c.bf16 %v466_v59, %v465_v58  ;;  %v5153_v11 = vld [vmem:[%s6018_s3 + $0x60] sm:$0xff]   ;;  %v409_v22 = vmax.f32 %v377_v6, 0.0  ;;  %v378_v2 = vadd.f32 %v5356_v18, %v339_v8  ;;  %v5157_v62 = vld [vmem:[%s6018_s3 + $0x70] sm:$0xff]  }
  0x28   : > { %4653 = vmatpush3.bf16.msra.mxu0 %v5142_v61  ;;  %4432 = vmatprep.mubr.bf16.mxu1 %v5450_v24  ;;  %v406_v55 = vmax.f32 %v374_v49, 0.0  ;;  %v407_v61 = vmax.f32 %v375_v53, 0.0  ;;  %441 = vst [vmem:[#allocation2 + $0xf1] sm:$0xff] %v408_v19  ;;  %v2240_v49 = vld [vmem:[#allocation2 + $0x1a] sm:$0xff]  ;;  %v5591_v59 = vpack.c.bf16 %v405_v48, %v404_v43  ;;  %v306_v63 = vld [vmem:[%s5337_s20 + $0xd0] sm:$0xff]  ;;  %v309_v43 = vld [vmem:[%s5337_s20 + $0xe8] sm:$0xff]  ;;  %v347_v5 = vmul.f32 %v5351_v17, %v308_v38 }
  0x29   : > { %4654 = vmatprep.subr.bf16.mxu0 %v5143_v12  ;;  %4624 = vmatprep.mubr.bf16.mxu0 %v5443_v20  ;;  %436 = vst [vmem:[#allocation2 + $0xb1] sm:$0xff] %v403_v34  ;;  %v5556_v15 = vpack.c.bf16 %v403_v34, %v402_v30  ;;  %v469_v26 = vld [vmem:[#allocation2 + $0xa8] sm:$0xff]  ;;  %442 = vst [vmem:[#allocation2 + $0xf9] sm:$0xff] %v409_v22  ;;  %v410_v29 = vmax.f32 %v378_v2, 0.0  ;;  %v5565_v30 = vpack.c.bf16 %v409_v22, %v408_v19  ;;  %v304_v34 = vld [vmem:[%s5337_s20 + $0xc0] sm:$0xff] }
  0x2a   : > { %4462 = vmatprep.subr.bf16.mxu1 %v5144_v25  ;;  %439 = vst [vmem:[#allocation2 + $0xd9] sm:$0xff] %v406_v55  ;;  %440 = vst [vmem:[#allocation2 + $0xe1] sm:$0xff] %v407_v61  ;;  %v5544_v13 = vpack.c.bf16 %v407_v61, %v406_v55  ;;  %v343_v44 = vmul.f32 %v5351_v17, %v304_v34  ;;  %v348_v6 = vmul.f32 %v5351_v17, %v309_v43  ;;  %v2242_v22 = vld [vmem:[#allocation2 + $0x32] sm:$0xff]  ;;  %v2243_v2 = vld [vmem:[#allocation2 + $0x3a] sm:$0xff] }
  0x2b   : > { %4463 = vmatpush3.bf16.msra.mxu1 %v5144_v25  ;;  %v302_v25 = vld [vmem:[%s5337_s20 + $0xb0] sm:$0xff]  ;;  %443 = vst [vmem:[#allocation2 + $0x109] sm:$0xff] %v410_v29 }
  0x2c   : > { %4655 = vmatpush3.bf16.msra.mxu0 %v5143_v12  ;;  %4464 = vmatprep.subr.bf16.mxu1 %v5147_v33  ;;  %v467_v60 = vld [vmem:[#allocation2 + $0x90] sm:$0xff]  ;;  %v468_v0 = vld [vmem:[#allocation2 + $0x98] sm:$0xff]  ;;  %v340_v12 = vmul.f32 %v5351_v17, %v301_v3  ;;  %v341_v27 = vmul.f32 %v5351_v17, %v302_v25  ;;  %v382_v56 = vadd.f32 %v5356_v18, %v343_v44 }
  0x2d   : > { %4656 = vmatprep.subr.bf16.mxu0 %v5145_v36  ;;  %v5546_v16 = vpack.c.bf16 %v468_v0, %v467_v60  ;;  %v471_v37 = vld [vmem:[#allocation2 + $0xc0] sm:$0xff]  ;;  %v472_v39 = vld [vmem:[#allocation2 + $0xc8] sm:$0xff]  ;;  %v307_v0 = vld [vmem:[%s5337_s20 + $0xd8] sm:$0xff] }
  0x2e   : > { %4433 = vmatmul.mubr.bf16.gmra.mrb[4].mxu1 %v5485_v40  ;;  %v379_v23 = vadd.f32 %v5356_v18, %v340_v12  ;;  %v380_v42 = vadd.f32 %v5356_v18, %v341_v27  ;;  %v5593_v60 = vpack.c.bf16 %v472_v39, %v471_v37  ;;  %v414_v1 = vmax.f32 %v382_v56, 0.0  ;;  %v5159_v25 = vld [vmem:[%s6018_s3 + $0x78] sm:$0xff]   ;;  %v2244_v34 = vld [vmem:[#allocation2 + $0x4a] sm:$0xff]  ;;  %v2246_v56 = vld [vmem:[#allocation2 + $0x62] sm:$0xff] }
  0x2f   : > { %4625 = vmatmul.mubr.bf16.gmra.mrb[4].mxu0 %v5496_v46  ;;  %4436 = vmatprep.mubr.bf16.mxu1 %v5498_v47  ;;  %v346_v35 = vmul.f32 %v5351_v17, %v307_v0  ;;  %v2245_v39 = vld [vmem:[#allocation2 + $0x52] sm:$0xff] }
  0x30   : > { %4657 = vmatpush3.bf16.msra.mxu0 %v5145_v36  ;;  %4628 = vmatprep.mubr.bf16.mxu0 %v5502_v51  ;;  %v470_v28 = vld [vmem:[#allocation2 + $0xb0] sm:$0xff]  ;;  %v411_v32 = vmax.f32 %v379_v23, 0.0  ;;  %v305_v36 = vld [vmem:[%s5337_s20 + $0xc8] sm:$0xff]  ;;  %v412_v55 = vmax.f32 %v380_v42, 0.0  ;;  %447 = vst [vmem:[#allocation2 + $0x139] sm:$0xff] %v414_v1  ;;  %v387_v23 = vadd.f32 %v5356_v18, %v348_v6 }
  0x31   : > { %4658 = vmatprep.subr.bf16.mxu0 %v5146_v52  ;;  %4465 = vmatpush3.bf16.msra.mxu1 %v5147_v33  ;;  %v342_v33 = vmul.f32 %v5351_v17, %v303_v31  ;;  %v344_v45 = vmul.f32 %v5351_v17, %v305_v36  ;;  %v5585_v58 = vpack.c.bf16 %v470_v28, %v469_v26  ;;  %v473_v28 = vld [vmem:[#allocation2 + $0xd8] sm:$0xff] }
  0x32   : > { %4466 = vmatprep.subr.bf16.mxu1 %v5150_v54  ;;  %444 = vst [vmem:[#allocation2 + $0x111] sm:$0xff] %v411_v32  ;;  %v5581_v53 = vpack.c.bf16 %v411_v32, %v410_v29  ;;  %445 = vst [vmem:[#allocation2 + $0x121] sm:$0xff] %v412_v55  ;;  %v385_v19 = vadd.f32 %v5356_v18, %v346_v35  ;;  %v474_v29 = vld [vmem:[#allocation2 + $0xe0] sm:$0xff]  ;;  %v475_v32 = vld [vmem:[#allocation2 + $0xf0] sm:$0xff]  ;;  %v419_v37 = vmax.f32 %v387_v23, 0.0 }
  0x33   : > { %v383_v57 = vadd.f32 %v5356_v18, %v344_v45  ;;  %v5631_v44 = vpack.c.bf16 %v474_v29, %v473_v28  ;;  %v5636_v45 = vld [vmem:[%s6018_s3 + $0x80] sm:$0xff]   ;;  %v2253_v23 = vld [vmem:[#allocation2 + $0xb2] sm:$0xff] }
  0x34   : > { %4659 = vmatpush3.bf16.msra.mxu0 %v5146_v52  ;;  %v381_v52 = vadd.f32 %v5356_v18, %v342_v33  ;;  %v417_v27 = vmax.f32 %v385_v19, 0.0  ;;  %v476_v33 = vld [vmem:[#allocation2 + $0xf8] sm:$0xff]  ;;  %452 = vst [vmem:[#allocation2 + $0x171] sm:$0xff] %v419_v37 }
  0x35   : > { %4660 = vmatprep.subr.bf16.mxu0 %v5148_v4  ;;  %4467 = vmatpush3.bf16.msra.mxu1 %v5150_v54  ;;  %v2241_v54 = vld [vmem:[#allocation2 + $0x22] sm:$0xff]  ;;  %v415_v3 = vmax.f32 %v383_v57, 0.0  ;;  %v2247_v57 = vld [vmem:[#allocation2 + $0x6a] sm:$0xff]  ;;  %v2250_v19 = vld [vmem:[#allocation2 + $0x92] sm:$0xff] }
  0x36   : > { %4437 = vmatmul.mubr.bf16.gmra.mrb[8].mxu1 %v5532_v9  ;;  %4468 = vmatprep.subr.bf16.mxu1 %v5153_v11  ;;  %v413_v61 = vmax.f32 %v381_v52, 0.0  ;;  %v5604_v48 = vpack.c.bf16 %v2241_v54, %v2240_v49  ;;  %450 = vst [vmem:[#allocation2 + $0x159] sm:$0xff] %v417_v27  ;;  %v5640_v49 = vpack.c.bf16 %v2243_v2, %v2242_v22  ;;  %v2251_v22 = vld [vmem:[#allocation2 + $0x9a] sm:$0xff] }
  0x37   : > { %4629 = vmatmul.mubr.bf16.gmra.mrb[8].mxu0 %v5538_v10  ;;  %4440 = vmatprep.mubr.bf16.mxu1 %v5546_v16  ;;  %448 = vst [vmem:[#allocation2 + $0x141] sm:$0xff] %v415_v3  ;;  %v5621_v26 = vpack.c.bf16 %v415_v3, %v414_v1  ;;  %v5642_v52 = vpack.c.bf16 %v476_v33, %v475_v32  ;;  %v2248_v1 = vld [vmem:[#allocation2 + $0x7a] sm:$0xff]  ;;  %v2249_v3 = vld [vmem:[#allocation2 + $0x82] sm:$0xff] }
  0x38   : > { %4661 = vmatpush3.bf16.msra.mxu0 %v5148_v4  ;;  %4632 = vmatprep.mubr.bf16.mxu0 %v5556_v15  ;;  %v345_v4 = vmul.f32 %v5351_v17, %v306_v63  ;;  %446 = vst [vmem:[#allocation2 + $0x129] sm:$0xff] %v413_v61  ;;  %v5608_v8 = vpack.c.bf16 %v413_v61, %v412_v55  ;;  %v5156_v55 = vld [vmem:[%s6018_s3 + $0x188] sm:$0xff]   ;;  %v481_v6 = vld [vmem:[#allocation2 + $0x138] sm:$0xff] }
  0x39   : > { %4662 = vmatprep.subr.bf16.mxu0 %v5149_v14  ;;  %4469 = vmatpush3.bf16.msra.mxu1 %v5153_v11  ;;  %v5152_v11 = vld [vmem:[%s6018_s3 + $0x178] sm:$0xff]   ;;  %v5644_v54 = vpack.c.bf16 %v2245_v39, %v2244_v34  ;;  %v477_v61 = vld [vmem:[#allocation2 + $0x108] sm:$0xff]  ;;  %v479_v63 = vld [vmem:[#allocation2 + $0x120] sm:$0xff]  ;;  %v5659_v38 = vpack.c.bf16 %v2247_v57, %v2246_v56 }
  0x3a   : > { %4470 = vmatprep.subr.bf16.mxu1 %v5155_v21  ;;  %v384_v12 = vadd.f32 %v5356_v18, %v345_v4  ;;  %v5158_v4 = vld [vmem:[%s6018_s3 + $0x190] sm:$0xff]   ;;  %v311_v28 = vld [vmem:[%s5337_s20 + $0xf8] sm:$0xff]  ;;  %v2254_v57 = vld [vmem:[#allocation2 + $0xc2] sm:$0xff] }
  0x3c   : > { %4663 = vmatpush3.bf16.msra.mxu0 %v5149_v14  ;;  %v386_v14 = vadd.f32 %v5356_v18, %v347_v5  ;;  %v416_v31 = vmax.f32 %v384_v12, 0.0  ;;  %v5663_v5 = vpack.c.bf16 %v2249_v3, %v2248_v1  ;;  %v5160_v12 = vld [vmem:[%s6018_s3 + $0x198] sm:$0xff]   ;;  %v2257_v3 = vld [vmem:[#allocation2 + $0xe2] sm:$0xff] }
  0x3d   : > { %4664 = vmatprep.subr.bf16.mxu0 %v5151_v50  ;;  %4471 = vmatpush3.bf16.msra.mxu1 %v5155_v21  ;;  %v5154_v21 = vld [vmem:[%s6018_s3 + $0x180] sm:$0xff]  }
  0x3e   : > { %4441 = vmatmul.mubr.bf16.gmra.mrb[12].mxu1 %v5585_v58  ;;  %4472 = vmatprep.subr.bf16.mxu1 %v5157_v62  ;;  %v418_v36 = vmax.f32 %v386_v14, 0.0  ;;  %449 = vst [vmem:[#allocation2 + $0x151] sm:$0xff] %v416_v31  ;;  %v5629_v42 = vpack.c.bf16 %v417_v27, %v416_v31  ;;  %v2252_v14 = vld [vmem:[#allocation2 + $0xaa] sm:$0xff]  ;;  %v350_v31 = vmul.f32 %v5351_v17, %v311_v28  ;;  %v5162_v27 = vld [vmem:[%s6018_s3 + $0x1a0] sm:$0xff]  }
  0x3f   : > { %4633 = vmatmul.mubr.bf16.gmra.mrb[12].mxu0 %v5591_v59  ;;  %4444 = vmatprep.mubr.bf16.mxu1 %v5593_v60  ;;  %v480_v0 = vld [vmem:[#allocation2 + $0x128] sm:$0xff]  ;;  %v5691_v39 = vpack.c.bf16 %v2253_v23, %v2252_v14  ;;  %v2256_v1 = vld [vmem:[#allocation2 + $0xda] sm:$0xff] }
  0x40   : > { %4665 = vmatpush3.bf16.msra.mxu0 %v5151_v50  ;;  %4668 = vmatprep.mubr.bf16.mxu0 %v5604_v48  ;;  %451 = vst [vmem:[#allocation2 + $0x169] sm:$0xff] %v418_v36  ;;  %v5638_v50 = vpack.c.bf16 %v419_v37, %v418_v36  ;;  %v5661_v43 = vpack.c.bf16 %v480_v0, %v479_v63  ;;  %v761_v63 = vld [vmem:[#allocation2 + $0x9] sm:$0xff]  ;;  %v2259_v14 = vld [vmem:[#allocation2 + $0xfa] sm:$0xff] }
  0x41   : > { %4666 = vmatprep.subr.bf16.mxu0 %v5152_v11  ;;  %4473 = vmatpush3.bf16.msra.mxu1 %v5157_v62  ;;  %v478_v62 = vld [vmem:[#allocation2 + $0x110] sm:$0xff]  ;;  %v5685_v34 = vadd.f32 %v5356_v18, %v350_v31  ;;  %v5687_v36 = vpack.c.bf16 %v2251_v22, %v2250_v19  ;;  %v5713_v19 = vpack.c.bf16 %v2257_v3, %v2256_v1  ;;  %v5168_v22 = vld [vmem:[%s6018_s3 + $0x1b8] sm:$0xff]   ;;  %v5724_v28 = vld [vmem:[%s6018_s3 + $0x1c0] sm:$0xff]  }
  0x42   : > { %4474 = vmatprep.subr.bf16.mxu1 %v5159_v25  ;;  %v5657_v35 = vpack.c.bf16 %v478_v62, %v477_v61  ;;  %v2255_v61 = vld [vmem:[#allocation2 + $0xca] sm:$0xff]  ;;  %v760_v62 = vld [vmem:[#allocation2 + $0x1] sm:$0xff]  ;;  %v2269_v1 = vld [vmem:[#allocation2 + $0x172] sm:$0xff] }
  0x43   : > { %v421_v56 = vmax.f32 %v5685_v34, 0.0  ;;  %v2260_v23 = vld [vmem:[#allocation2 + $0x10a] sm:$0xff]  ;;  %v5169_v3 = vld [vmem:[%s6018_s3 + $0xa0] sm:$0xff]  }
  0x44   : > { %4667 = vmatpush3.bf16.msra.mxu0 %v5152_v11  ;;  %v482_v11 = vld [vmem:[#allocation2 + $0x140] sm:$0xff]  ;;  %v5163_v31 = vld [vmem:[%s6018_s3 + $0x88] sm:$0xff]  }
  0x45   : > { %4700 = vmatprep.subr.bf16.mxu0 %v5154_v21  ;;  %4475 = vmatpush3.bf16.msra.mxu1 %v5159_v25  ;;  %v483_v2 = vld [vmem:[#allocation2 + $0x150] sm:$0xff]  ;;  %v484_v29 = vld [vmem:[#allocation2 + $0x158] sm:$0xff]  ;;  %v5679_v32 = vpack.c.bf16 %v482_v11, %v481_v6  ;;  %454 = vst [vmem:[#allocation2 + $0x189] sm:$0xff] %v421_v56  ;;  %v5711_v11 = vpack.c.bf16 %v2255_v61, %v2254_v57  ;;  %v2265_v61 = vld [vmem:[#allocation2 + $0x142] sm:$0xff] }
  0x46   : > { %4445 = vmatmul.mubr.bf16.gmra.mrb[16].mxu1 %v5631_v44  ;;  %4508 = vmatprep.subr.bf16.mxu1 %v5636_v45  ;;  %v310_v25 = vld [vmem:[%s5337_s20 + $0xf0] sm:$0xff]  ;;  %v5689_v37 = vpack.c.bf16 %v484_v29, %v483_v2  ;;  %v2264_v57 = vld [vmem:[#allocation2 + $0x13a] sm:$0xff]  ;;  %v5172_v34 = vld [vmem:[%s6018_s3 + $0x1c8] sm:$0xff]  }
  0x47   : > { %4669 = vmatmul.mubr.bf16.vlgmr.msra.gmra.mrb[0].mxu0 %v5640_v49  ;;  %4448 = vmatprep.mubr.bf16.mxu1 %v5642_v52  ;;  %v486_v0 = vld [vmem:[#allocation2 + $0x170] sm:$0xff] }
  0x48   : > { %4701 = vmatpush3.bf16.msra.mxu0 %v5154_v21  ;;  %4672 = vmatprep.mubr.bf16.mxu0 %v5644_v54  ;;  %v349_v21 = vmul.f32 %v5351_v17, %v310_v25  ;;  %v5164_v17 = vld [vmem:[%s6018_s3 + $0x1a8] sm:$0xff]   ;;  %v2258_v2 = vld [vmem:[#allocation2 + $0xf2] sm:$0xff] }
  0x49   : > { %4702 = vmatprep.subr.bf16.mxu0 %v5156_v55  ;;  %v2261_v25 = vld [vmem:[#allocation2 + $0x112] sm:$0xff]  ;;  %v5726_v29 = vpack.c.bf16 %v2259_v14, %v2258_v2 }
  0x4a   : > { %v5682_v33 = vadd.f32 %v5356_v18, %v349_v21  ;;  %v485_v18 = vld [vmem:[#allocation2 + $0x168] sm:$0xff]  ;;  %v5728_v21 = vpack.c.bf16 %v2261_v25, %v2260_v23 }
  0x4b   : > { %v5709_v6 = vpack.c.bf16 %v486_v0, %v485_v18  ;;  %v5165_v18 = vld [vmem:[%s6018_s3 + $0x90] sm:$0xff]  }
  0x4c   : > { %4703 = vmatpush3.bf16.msra.mxu0 %v5156_v55  ;;  %v420_v55 = vmax.f32 %v5682_v33, 0.0  ;;  %v2268_v0 = vld [vmem:[#allocation2 + $0x16a] sm:$0xff]  ;;  %v5177_v33 = vld [vmem:[%s6018_s3 + $0xc0] sm:$0xff]  }
  0x4d   : > { %4704 = vmatprep.subr.bf16.mxu0 %v5158_v4  ;;  %v2271_v2 = vld [vmem:[#allocation2 + $0x18a] sm:$0xff] }
  0x4e   : > { %4449 = vmatmul.mubr.bf16.gmra.mrb[20].mxu1 %v5657_v35  ;;  %453 = vst [vmem:[#allocation2 + $0x181] sm:$0xff] %v420_v55 }
  0x4f   : > { %4673 = vmatmul.mubr.bf16.gmra.mrb[4].mxu0 %v5659_v38  ;;  %4452 = vmatprep.mubr.bf16.mxu1 %v5661_v43 }
  0x50   : > { %4676 = vmatprep.mubr.bf16.mxu0 %v5663_v5  ;;  %4705 = vmatpush3.bf16.msra.mxu0 %v5158_v4  ;;  %v5166_v4 = vld [vmem:[%s6018_s3 + $0x1b0] sm:$0xff]  }
  0x51   : > { %4706 = vmatprep.subr.bf16.mxu0 %v5160_v12 }
  0x54   : > { %4707 = vmatpush3.bf16.msra.mxu0 %v5160_v12  ;;  %v792_v12 = vpack.c.bf16 %v761_v63, %v760_v62  ;;  %v2267_v63 = vld [vmem:[#allocation2 + $0x15a] sm:$0xff] }
  0x55   : > { %4708 = vmatprep.subr.bf16.mxu0 %v5162_v27 }
  0x56   : > { %4453 = vmatmul.mubr.bf16.gmra.mrb[24].mxu1 %v5679_v32 }
  0x57   : > { %4677 = vmatmul.mubr.bf16.gmra.mrb[8].mxu0 %v5687_v36  ;;  %4456 = vmatprep.mubr.bf16.mxu1 %v5689_v37 }
  0x58   : > { %4680 = vmatprep.mubr.bf16.mxu0 %v5691_v39  ;;  %4709 = vmatpush3.bf16.msra.mxu0 %v5162_v27  ;;  %v2262_v27 = vld [vmem:[#allocation2 + $0x122] sm:$0xff] }
  0x59   : > { %4710 = vmatprep.subr.bf16.mxu0 %v5164_v17 }
  0x5c   : > { %4711 = vmatpush3.bf16.msra.mxu0 %v5164_v17  ;;  %v2263_v17 = vld [vmem:[#allocation2 + $0x12a] sm:$0xff] }
  0x5d   : > { %4712 = vmatprep.subr.bf16.mxu0 %v5166_v4  ;;  %v5742_v62 = vpack.c.bf16 %v2263_v17, %v2262_v27  ;;  %v2989_v27 = vld [vmem:[#allocation2 + $0x91] sm:$0xff]  ;;  %v2990_v17 = vld [vmem:[#allocation2 + $0x99] sm:$0xff] }
  0x5e   : > { %4457 = vmatmul.mubr.bf16.gmra.mrb[28].mxu1 %v5709_v6 }
  0x5f   : > { %4681 = vmatmul.mubr.bf16.gmra.mrb[12].mxu0 %v5711_v11  ;;  %4476 = vmatprep.mubr.bf16.mxu1 %v792_v12  ;;  %v5758_v12 = vpack.c.bf16 %v2269_v1, %v2268_v0  ;;  %v5193_v0 = vld [vmem:[%s6018_s3 + $0x220] sm:$0xff]  }
  0x60   : > { %4684 = vmatprep.mubr.bf16.mxu0 %v5713_v19  ;;  %4713 = vmatpush3.bf16.msra.mxu0 %v5166_v4 }
  0x61   : > { %4714 = vmatprep.subr.bf16.mxu0 %v5168_v22 }
  0x64   : > { %4715 = vmatpush3.bf16.msra.mxu0 %v5168_v22  ;;  %v2270_v22 = vld [vmem:[#allocation2 + $0x182] sm:$0xff] }
  0x65   : > { %4748 = vmatprep.subr.bf16.mxu0 %v5724_v28  ;;  %v2287_v14 = vpack.c.bf16 %v2271_v2, %v2270_v22  ;;  %v1500_v22 = vld [vmem:[#allocation2 + $0x18] sm:$0xff]  ;;  %v1501_v2 = vld [vmem:[#allocation2 + $0x20] sm:$0xff] }
  0x66   : > { %4477 = vmatmul.mubr.bf16.vlgmr.msra.gmra.mrb[0].mxu1 %v5383_v41  ;;  %v5744_v41 = vpack.c.bf16 %v2265_v61, %v2264_v57  ;;  %v3017_v61 = vpack.c.bf16 %v2990_v17, %v2989_v27  ;;  %v1515_v27 = vld [vmem:[#allocation2 + $0xc8] sm:$0xff]  ;;  %v3011_v17 = vld [vmem:[#allocation2 + $0x199] sm:$0xff] }
  0x67   : > { %4685 = vmatmul.mubr.bf16.gmra.mrb[16].mxu0 %v5726_v29  ;;  %4509 = vmatpush3.bf16.msra.mxu1 %v5636_v45  ;;  %v2266_v45 = vld [vmem:[#allocation2 + $0x152] sm:$0xff] }
  0x68   : > { %4480 = vmatprep.mubr.bf16.mxu1 %v5428_v7  ;;  %4688 = vmatprep.mubr.bf16.mxu0 %v5728_v21  ;;  %v5167_v7 = vld [vmem:[%s6018_s3 + $0x98] sm:$0xff]   ;;  %v5756_v4 = vpack.c.bf16 %v2267_v63, %v2266_v45  ;;  %v2993_v45 = vld [vmem:[#allocation2 + $0xc1] sm:$0xff]  ;;  %v2994_v63 = vld [vmem:[#allocation2 + $0xc9] sm:$0xff] }
  0x69   : > { %4510 = vmatprep.subr.bf16.mxu1 %v5163_v31 }
  0x6b   : > { %4511 = vmatpush3.bf16.msra.mxu1 %v5163_v31  ;;  %v2988_v31 = vld [vmem:[#allocation2 + $0x81] sm:$0xff] }
  0x6c   : > { %4512 = vmatprep.subr.bf16.mxu1 %v5165_v18 }
  0x6e   : > { %4481 = vmatmul.mubr.bf16.gmra.mrb[4].mxu1 %v5443_v20  ;;  %v5171_v20 = vld [vmem:[%s6018_s3 + $0xa8] sm:$0xff]  }
  0x6f   : > { %4689 = vmatmul.mubr.bf16.gmra.mrb[20].mxu0 %v5742_v62  ;;  %4484 = vmatprep.mubr.bf16.mxu1 %v5496_v46  ;;  %v5770_v46 = vpack.c.bf16 %v421_v56, %v420_v55  ;;  %v2984_v55 = vld [vmem:[#allocation2 + $0x51] sm:$0xff]  ;;  %v2985_v56 = vld [vmem:[#allocation2 + $0x61] sm:$0xff] }
  0x70   : > { %4692 = vmatprep.mubr.bf16.mxu0 %v5744_v41  ;;  %4513 = vmatpush3.bf16.msra.mxu1 %v5165_v18  ;;  %v5190_v18 = vld [vmem:[%s6018_s3 + $0x210] sm:$0xff]  }
  0x71   : > { %4514 = vmatprep.subr.bf16.mxu1 %v5167_v7 }
  0x74   : > { %4515 = vmatpush3.bf16.msra.mxu1 %v5167_v7  ;;  %v2992_v7 = vld [vmem:[#allocation2 + $0xb1] sm:$0xff] }
  0x75   : > { %4516 = vmatprep.subr.bf16.mxu1 %v5169_v3 }
  0x76   : > { %4485 = vmatmul.mubr.bf16.gmra.mrb[8].mxu1 %v5502_v51  ;;  %v5173_v51 = vld [vmem:[%s6018_s3 + $0xb0] sm:$0xff]  }
  0x77   : > { %4693 = vmatmul.mubr.bf16.gmra.mrb[24].mxu0 %v5756_v4  ;;  %4488 = vmatprep.mubr.bf16.mxu1 %v5538_v10  ;;  %v5175_v10 = vld [vmem:[%s6018_s3 + $0xb8] sm:$0xff]  }
  0x78   : > { %4696 = vmatprep.mubr.bf16.mxu0 %v5758_v12  ;;  %4517 = vmatpush3.bf16.msra.mxu1 %v5169_v3  ;;  %v3019_v3 = vpack.c.bf16 %v2994_v63, %v2993_v45 }
  0x79   : > { %4518 = vmatprep.subr.bf16.mxu1 %v5171_v20 }
  0x7c   : > { %4519 = vmatpush3.bf16.msra.mxu1 %v5171_v20  ;;  %v2996_v20 = vld [vmem:[#allocation2 + $0xe1] sm:$0xff] }
  0x7d   : > { %4520 = vmatprep.subr.bf16.mxu1 %v5173_v51 }
  0x7e   : > { %4489 = vmatmul.mubr.bf16.gmra.mrb[12].mxu1 %v5556_v15  ;;  %v5176_v15 = vld [vmem:[%s6018_s3 + $0x1d8] sm:$0xff]  }
  0x7f   : > { %4697 = vmatmul.mubr.bf16.gmra.mrb[28].mxu0 %v2287_v14  ;;  %4492 = vmatprep.mubr.bf16.mxu1 %v5591_v59  ;;  %v5179_v59 = vld [vmem:[%s6018_s3 + $0xc8] sm:$0xff]   ;;  %v2998_v14 = vld [vmem:[#allocation2 + $0xf9] sm:$0xff] }
  0x80   : > { %4716 = vmatprep.mubr.bf16.mxu0 %v5450_v24  ;;  %4521 = vmatpush3.bf16.msra.mxu1 %v5173_v51  ;;  %v5174_v24 = vld [vmem:[%s6018_s3 + $0x1d0] sm:$0xff]  }
  0x81   : > { %4522 = vmatprep.subr.bf16.mxu1 %v5175_v10  ;;  %v2997_v51 = vld [vmem:[#allocation2 + $0xf1] sm:$0xff] }
  0x84   : > { %4523 = vmatpush3.bf16.msra.mxu1 %v5175_v10  ;;  %v5195_v10 = vld [vmem:[%s6018_s3 + $0x230] sm:$0xff]  }
  0x85   : > { %4556 = vmatprep.subr.bf16.mxu1 %v5177_v33 }
  0x86   : > { %4493 = vmatmul.mubr.bf16.gmra.mrb[16].mxu1 %v5544_v13  ;;  %v1131_v13 = vld [vmem:[#allocation2 + $0xa] sm:$0xff] }
  0x87   : > { %4717 = vmatmul.mubr.bf16.vlgmr.msra.gmra.mrb[0].mxu0 %v5485_v40  ;;  %4496 = vmatprep.mubr.bf16.mxu1 %v5565_v30  ;;  %v5178_v40 = vld [vmem:[%s6018_s3 + $0x1e0] sm:$0xff]  }
  0x88   : > { %4749 = vmatpush3.bf16.msra.mxu0 %v5724_v28  ;;  %4720 = vmatprep.mubr.bf16.mxu0 %v5498_v47  ;;  %v5180_v47 = vld [vmem:[%s6018_s3 + $0x1e8] sm:$0xff]  }
  0x89   : > { %4750 = vmatprep.subr.bf16.mxu0 %v5172_v34  ;;  %v5188_v28 = vld [vmem:[%s6018_s3 + $0x208] sm:$0xff]  }
  0x8c   : > { %4751 = vmatpush3.bf16.msra.mxu0 %v5172_v34  ;;  %v1532_v34 = vpack.c.bf16 %v1501_v2, %v1500_v22  ;;  %v1521_v22 = vld [vmem:[#allocation2 + $0x110] sm:$0xff]  ;;  %v3355_v2 = vld [vmem:[#allocation2 + $0x62] sm:$0xff] }
  0x8d   : > { %4752 = vmatprep.subr.bf16.mxu0 %v5174_v24 }
  0x8e   : > { %4497 = vmatmul.mubr.bf16.gmra.mrb[20].mxu1 %v5581_v53  ;;  %v5184_v53 = vld [vmem:[%s6018_s3 + $0x1f8] sm:$0xff]  }
  0x8f   : > { %4721 = vmatmul.mubr.bf16.gmra.mrb[4].mxu0 %v5532_v9  ;;  %4500 = vmatprep.mubr.bf16.mxu1 %v5608_v8  ;;  %v1130_v9 = vld [vmem:[#allocation2 + $0x2] sm:$0xff]  ;;  %v5183_v8 = vld [vmem:[%s6018_s3 + $0xd8] sm:$0xff]  }
  0x90   : > { %4724 = vmatprep.mubr.bf16.mxu0 %v5546_v16  ;;  %4753 = vmatpush3.bf16.msra.mxu0 %v5174_v24  ;;  %v5182_v16 = vld [vmem:[%s6018_s3 + $0x1f0] sm:$0xff]   ;;  %v1162_v30 = vpack.c.bf16 %v1131_v13, %v1130_v9  ;;  %v1504_v9 = vld [vmem:[#allocation2 + $0x48] sm:$0xff] }
  0x91   : > { %4754 = vmatprep.subr.bf16.mxu0 %v5176_v15  ;;  %v1502_v24 = vld [vmem:[#allocation2 + $0x30] sm:$0xff] }
  0x92   : > { %v1505_v13 = vld [vmem:[#allocation2 + $0x50] sm:$0xff] }
  0x94   : > { %4755 = vmatpush3.bf16.msra.mxu0 %v5176_v15  ;;  %v1503_v15 = vld [vmem:[#allocation2 + $0x38] sm:$0xff] }
  0x95   : > { %4756 = vmatprep.subr.bf16.mxu0 %v5178_v40 }
  0x96   : > { %4501 = vmatmul.mubr.bf16.gmra.mrb[24].mxu1 %v5621_v26  ;;  %v2640_v26 = vld [vmem:[#allocation2 + $0x188] sm:$0xff] }
  0x97   : > { %4725 = vmatmul.mubr.bf16.gmra.mrb[8].mxu0 %v5585_v58  ;;  %4504 = vmatprep.mubr.bf16.mxu1 %v5629_v42  ;;  %v5186_v58 = vld [vmem:[%s6018_s3 + $0x200] sm:$0xff]  }
  0x98   : > { %4728 = vmatprep.mubr.bf16.mxu0 %v5593_v60  ;;  %4757 = vmatpush3.bf16.msra.mxu0 %v5178_v40  ;;  %v5181_v60 = vld [vmem:[%s6018_s3 + $0xd0] sm:$0xff]   ;;  %v5185_v42 = vld [vmem:[%s6018_s3 + $0xe0] sm:$0xff]  }
  0x99   : > { %4758 = vmatprep.subr.bf16.mxu0 %v5180_v47  ;;  %v2999_v40 = vld [vmem:[#allocation2 + $0x109] sm:$0xff] }
  0x9c   : > { %4759 = vmatpush3.bf16.msra.mxu0 %v5180_v47  ;;  %v3000_v47 = vld [vmem:[#allocation2 + $0x111] sm:$0xff] }
  0x9d   : > { %4760 = vmatprep.subr.bf16.mxu0 %v5182_v16 }
  0x9e   : > { %4505 = vmatmul.mubr.bf16.gmra.mrb[28].mxu1 %v5638_v50 }
  0x9f   : > { %4729 = vmatmul.mubr.bf16.gmra.mrb[12].mxu0 %v5631_v44  ;;  %4524 = vmatprep.mubr.bf16.mxu1 %v1162_v30  ;;  %v3002_v30 = vld [vmem:[#allocation2 + $0x129] sm:$0xff] }
  0xa0   : > { %4732 = vmatprep.mubr.bf16.mxu0 %v5642_v52  ;;  %4761 = vmatpush3.bf16.msra.mxu0 %v5182_v16  ;;  %v2641_v52 = vld [vmem:[#allocation2 + $0x198] sm:$0xff]  ;;  %v3001_v16 = vld [vmem:[#allocation2 + $0x121] sm:$0xff] }
  0xa1   : > { %4762 = vmatprep.subr.bf16.mxu0 %v5184_v53 }
  0xa4   : > { %4763 = vmatpush3.bf16.msra.mxu0 %v5184_v53  ;;  %v1533_v53 = vpack.c.bf16 %v1503_v15, %v1502_v24  ;;  %v1522_v15 = vld [vmem:[#allocation2 + $0x120] sm:$0xff] }
  0xa5   : > { %4796 = vmatprep.subr.bf16.mxu0 %v5186_v58 }
  0xa6   : > { %4525 = vmatmul.mubr.bf16.vlgmr.msra.gmra.mrb[0].mxu1 %v5604_v48  ;;  %v2639_v48 = vld [vmem:[#allocation2 + $0x180] sm:$0xff] }
  0xa7   : > { %4733 = vmatmul.mubr.bf16.gmra.mrb[16].mxu0 %v5657_v35  ;;  %4557 = vmatpush3.bf16.msra.mxu1 %v5177_v33  ;;  %v5845_v44 = vpack.c.bf16 %v2640_v26, %v2639_v48  ;;  %v2982_v35 = vld [vmem:[#allocation2 + $0x39] sm:$0xff]  ;;  %v3004_v26 = vld [vmem:[#allocation2 + $0x141] sm:$0xff] }
  0xa8   : > { %4528 = vmatprep.mubr.bf16.mxu1 %v5640_v49  ;;  %4736 = vmatprep.mubr.bf16.mxu0 %v5661_v43  ;;  %v5187_v49 = vld [vmem:[%s6018_s3 + $0xe8] sm:$0xff]   ;;  %v3003_v48 = vld [vmem:[#allocation2 + $0x139] sm:$0xff] }
  0xa9   : > { %4558 = vmatprep.subr.bf16.mxu1 %v5179_v59  ;;  %v5857_v43 = vld [vmem:[#allocation2 + $0x8] sm:$0xff] }
  0xaa   : > { %3893 = vst [vmem:[%s5952_s14 + $0x2] sm:$0x3f] %v5857_v43 }
  0xab   : > { %4559 = vmatpush3.bf16.msra.mxu1 %v5179_v59  ;;  %v1534_v59 = vpack.c.bf16 %v1505_v13, %v1504_v9  ;;  %v3358_v9 = vld [vmem:[#allocation2 + $0x82] sm:$0xff]  ;;  %v1524_v13 = vld [vmem:[#allocation2 + $0x138] sm:$0xff] }
  0xac   : > { %4560 = vmatprep.subr.bf16.mxu1 %v5181_v60 }
  0xae   : > { %4529 = vmatmul.mubr.bf16.gmra.mrb[4].mxu1 %v5644_v54  ;;  %v2981_v54 = vld [vmem:[#allocation2 + $0x31] sm:$0xff] }
  0xaf   : > { %4737 = vmatmul.mubr.bf16.gmra.mrb[20].mxu0 %v5679_v32  ;;  %4532 = vmatprep.mubr.bf16.mxu1 %v5659_v38  ;;  %v5189_v38 = vld [vmem:[%s6018_s3 + $0xf0] sm:$0xff]   ;;  %v2658_v32 = vpack.c.bf16 %v5857_v43, %v2641_v52  ;;  %v5199_v52 = vld [vmem:[%s6018_s3 + $0x108] sm:$0xff]  }
  0xb0   : > { %4740 = vmatprep.mubr.bf16.mxu0 %v5689_v37  ;;  %4561 = vmatpush3.bf16.msra.mxu1 %v5181_v60  ;;  %v2983_v37 = vld [vmem:[#allocation2 + $0x49] sm:$0xff]  ;;  %v1506_v60 = vld [vmem:[#allocation2 + $0x60] sm:$0xff] }
  0xb1   : > { %4562 = vmatprep.subr.bf16.mxu1 %v5183_v8  ;;  %v3014_v23 = vpack.c.bf16 %v2984_v55, %v2983_v37  ;;  %v5200_v37 = vld [vmem:[%s6018_s3 + $0x110] sm:$0xff]  }
  0xb2   : > { %v1510_v55 = vld [vmem:[#allocation2 + $0x90] sm:$0xff] }
  0xb4   : > { %4563 = vmatpush3.bf16.msra.mxu1 %v5183_v8  ;;  %v1507_v8 = vld [vmem:[#allocation2 + $0x68] sm:$0xff] }
  0xb5   : > { %4564 = vmatprep.subr.bf16.mxu1 %v5185_v42 }
  0xb6   : > { %4533 = vmatmul.mubr.bf16.gmra.mrb[8].mxu1 %v5663_v5  ;;  %v3013_v5 = vpack.c.bf16 %v2982_v35, %v2981_v54  ;;  %v3005_v54 = vld [vmem:[#allocation2 + $0x151] sm:$0xff]  ;;  %v3006_v35 = vld [vmem:[#allocation2 + $0x159] sm:$0xff] }
  0xb7   : > { %4741 = vmatmul.mubr.bf16.gmra.mrb[24].mxu0 %v5709_v6  ;;  %4536 = vmatprep.mubr.bf16.mxu1 %v5687_v36  ;;  %v5191_v36 = vld [vmem:[%s6018_s3 + $0xf8] sm:$0xff]   ;;  %v2986_v6 = vld [vmem:[#allocation2 + $0x69] sm:$0xff] }
  0xb8   : > { %4744 = vmatprep.mubr.bf16.mxu0 %v5845_v44  ;;  %4565 = vmatpush3.bf16.msra.mxu1 %v5185_v42  ;;  %v3015_v25 = vpack.c.bf16 %v2986_v6, %v2985_v56  ;;  %v1508_v42 = vld [vmem:[#allocation2 + $0x78] sm:$0xff]  ;;  %v1512_v6 = vld [vmem:[#allocation2 + $0xa8] sm:$0xff] }
  0xb9   : > { %4566 = vmatprep.subr.bf16.mxu1 %v5187_v49  ;;  %v1511_v56 = vld [vmem:[#allocation2 + $0x98] sm:$0xff] }
  0xbc   : > { %4567 = vmatpush3.bf16.msra.mxu1 %v5187_v49  ;;  %v1509_v49 = vld [vmem:[#allocation2 + $0x80] sm:$0xff] }
  0xbd   : > { %4568 = vmatprep.subr.bf16.mxu1 %v5189_v38 }
  0xbe   : > { %4537 = vmatmul.mubr.bf16.gmra.mrb[12].mxu1 %v5691_v39  ;;  %v5871_v39 = vld [vmem:[%s6018_s3 + $0x100] sm:$0xff]  }
  0xbf   : > { %4745 = vmatmul.mubr.bf16.gmra.mrb[28].mxu0 %v2658_v32  ;;  %4540 = vmatprep.mubr.bf16.mxu1 %v5711_v11  ;;  %v2987_v11 = vld [vmem:[#allocation2 + $0x79] sm:$0xff]  ;;  %v5915_v32 = vpack.c.bf16 %v3004_v26, %v3003_v48  ;;  %v1526_v26 = vld [vmem:[#allocation2 + $0x150] sm:$0xff] }
  0xc0   : > { %4764 = vmatprep.mubr.bf16.mxu0 %v3013_v5  ;;  %4569 = vmatpush3.bf16.msra.mxu1 %v5189_v38  ;;  %v3016_v57 = vpack.c.bf16 %v2988_v31, %v2987_v11  ;;  %v1535_v38 = vpack.c.bf16 %v1507_v8, %v1506_v60  ;;  %v1536_v5 = vpack.c.bf16 %v1509_v49, %v1508_v42  ;;  %v5202_v11 = vld [vmem:[%s6018_s3 + $0x120] sm:$0xff]   ;;  %v1527_v42 = vld [vmem:[#allocation2 + $0x158] sm:$0xff]  ;;  %v3361_v49 = vld [vmem:[#allocation2 + $0xaa] sm:$0xff] }
  0xc1   : > { %4570 = vmatprep.subr.bf16.mxu1 %v5191_v36  ;;  %v1514_v31 = vld [vmem:[#allocation2 + $0xc0] sm:$0xff] }
  0xc2   : > { %v1539_v45 = vpack.c.bf16 %v1515_v27, %v1514_v31  ;;  %v3369_v27 = vld [vmem:[#allocation2 + $0x10a] sm:$0xff] }
  0xc4   : > { %4571 = vmatpush3.bf16.msra.mxu1 %v5191_v36  ;;  %v5917_v36 = vpack.c.bf16 %v3006_v35, %v3005_v54  ;;  %v1528_v54 = vld [vmem:[#allocation2 + $0x168] sm:$0xff]  ;;  %v1529_v35 = vld [vmem:[#allocation2 + $0x170] sm:$0xff] }
  0xc5   : > { %4844 = vmatprep.subr.bf16.mxu1 %v5871_v39 }
  0xc6   : > { %4541 = vmatmul.mubr.bf16.gmra.mrb[16].mxu1 %v5713_v19  ;;  %v5192_v19 = vld [vmem:[%s6018_s3 + $0x218] sm:$0xff]  }
  0xc7   : > { %4765 = vmatmul.mubr.bf16.vlgmr.msra.gmra.mrb[0].mxu0 %v3014_v23  ;;  %4544 = vmatprep.mubr.bf16.mxu1 %v5726_v29  ;;  %v2991_v29 = vld [vmem:[#allocation2 + $0xa9] sm:$0xff] }
  0xc8   : > { %4797 = vmatpush3.bf16.msra.mxu0 %v5186_v58  ;;  %4768 = vmatprep.mubr.bf16.mxu0 %v3015_v25  ;;  %v3018_v1 = vpack.c.bf16 %v2992_v7, %v2991_v29  ;;  %v5905_v58 = vpack.c.bf16 %v3000_v47, %v2999_v40  ;;  %v1513_v23 = vld [vmem:[#allocation2 + $0xb0] sm:$0xff]  ;;  %v5201_v25 = vld [vmem:[%s6018_s3 + $0x118] sm:$0xff]   ;;  %v5203_v7 = vld [vmem:[%s6018_s3 + $0x128] sm:$0xff]  }
  0xc9   : > { %4798 = vmatprep.subr.bf16.mxu0 %v5188_v28  ;;  %v3352_v29 = vld [vmem:[#allocation2 + $0x3a] sm:$0xff]  ;;  %v1523_v40 = vld [vmem:[#allocation2 + $0x128] sm:$0xff] }
  0xca   : > { %v3357_v47 = vld [vmem:[#allocation2 + $0x7a] sm:$0xff] }
  0xcb   : > { %v3386_v60 = vpack.c.bf16 %v3358_v9, %v3357_v47 }
  0xcc   : > { %4799 = vmatpush3.bf16.msra.mxu0 %v5188_v28  ;;  %v1537_v28 = vpack.c.bf16 %v1511_v56, %v1510_v55  ;;  %v1546_v56 = vpack.c.bf16 %v1529_v35, %v1528_v54 }
  0xcd   : > { %4800 = vmatprep.subr.bf16.mxu0 %v5190_v18 }
  0xce   : > { %4545 = vmatmul.mubr.bf16.gmra.mrb[20].mxu1 %v5728_v21  ;;  %v5194_v21 = vld [vmem:[%s6018_s3 + $0x228] sm:$0xff]  }
  0xcf   : > { %4769 = vmatmul.mubr.bf16.gmra.mrb[4].mxu0 %v3016_v57  ;;  %4548 = vmatprep.mubr.bf16.mxu1 %v5742_v62  ;;  %v2995_v62 = vld [vmem:[#allocation2 + $0xd9] sm:$0xff] }
  0xd0   : > { %4772 = vmatprep.mubr.bf16.mxu0 %v3017_v61  ;;  %4801 = vmatpush3.bf16.msra.mxu0 %v5190_v18  ;;  %v5895_v33 = vpack.c.bf16 %v2996_v20, %v2995_v62  ;;  %v3012_v18 = vld [vmem:[#allocation2 + $0x1a1] sm:$0xff]  ;;  %v1516_v57 = vld [vmem:[#allocation2 + $0xd8] sm:$0xff] }
  0xd1   : > { %4802 = vmatprep.subr.bf16.mxu0 %v5192_v19  ;;  %v1517_v61 = vld [vmem:[#allocation2 + $0xe0] sm:$0xff]  ;;  %v3028_v63 = vpack.c.bf16 %v3012_v18, %v3011_v17  ;;  %v3354_v62 = vld [vmem:[#allocation2 + $0x52] sm:$0xff]  ;;  %v1520_v20 = vld [vmem:[#allocation2 + $0x108] sm:$0xff] }
  0xd2   : > { %v3370_v17 = vld [vmem:[#allocation2 + $0x112] sm:$0xff]  ;;  %v3371_v18 = vld [vmem:[#allocation2 + $0x122] sm:$0xff] }
  0xd4   : > { %4803 = vmatpush3.bf16.msra.mxu0 %v5192_v19  ;;  %v3351_v19 = vld [vmem:[#allocation2 + $0x32] sm:$0xff] }
  0xd5   : > { %4804 = vmatprep.subr.bf16.mxu0 %v5193_v0 }
  0xd6   : > { %4549 = vmatmul.mubr.bf16.gmra.mrb[24].mxu1 %v5744_v41  ;;  %v5897_v41 = vpack.c.bf16 %v2998_v14, %v2997_v51  ;;  %v3356_v51 = vld [vmem:[#allocation2 + $0x6a] sm:$0xff]  ;;  %v5205_v14 = vld [vmem:[%s6018_s3 + $0x138] sm:$0xff]  }
  0xd7   : > { %4773 = vmatmul.mubr.bf16.gmra.mrb[8].mxu0 %v3018_v1  ;;  %4552 = vmatprep.mubr.bf16.mxu1 %v5756_v4  ;;  %v5196_v4 = vld [vmem:[%s6018_s3 + $0x238] sm:$0xff]   ;;  %v1518_v1 = vld [vmem:[#allocation2 + $0xf0] sm:$0xff]  ;;  %v3385_v24 = vpack.c.bf16 %v3356_v51, %v3355_v2 }
  0xd8   : > { %4776 = vmatprep.mubr.bf16.mxu0 %v3019_v3  ;;  %4805 = vmatpush3.bf16.msra.mxu0 %v5193_v0  ;;  %v3383_v0 = vpack.c.bf16 %v3352_v29, %v3351_v19  ;;  %v1519_v3 = vld [vmem:[#allocation2 + $0xf8] sm:$0xff] }
  0xd9   : > { %4806 = vmatprep.subr.bf16.mxu0 %v5194_v21  ;;  %v3373_v29 = vld [vmem:[#allocation2 + $0x13a] sm:$0xff] }
  0xdc   : > { %4807 = vmatpush3.bf16.msra.mxu0 %v5194_v21  ;;  %v3353_v21 = vld [vmem:[#allocation2 + $0x4a] sm:$0xff] }
  0xdd   : > { %4808 = vmatprep.subr.bf16.mxu0 %v5195_v10 }
  0xde   : > { %4553 = vmatmul.mubr.bf16.gmra.mrb[28].mxu1 %v5758_v12  ;;  %v5907_v12 = vpack.c.bf16 %v3002_v30, %v3001_v16  ;;  %v1525_v16 = vld [vmem:[#allocation2 + $0x140] sm:$0xff]  ;;  %v3359_v30 = vld [vmem:[#allocation2 + $0x92] sm:$0xff] }
  0xdf   : > { %4777 = vmatmul.mubr.bf16.gmra.mrb[12].mxu0 %v5895_v33  ;;  %4572 = vmatprep.mubr.bf16.mxu1 %v1532_v34  ;;  %v3384_v34 = vpack.c.bf16 %v3354_v62, %v3353_v21  ;;  %v1544_v8 = vpack.c.bf16 %v1525_v16, %v1524_v13 }
  0xe0   : > { %4780 = vmatprep.mubr.bf16.mxu0 %v5897_v41  ;;  %4809 = vmatpush3.bf16.msra.mxu0 %v5195_v10  ;;  %v1541_v10 = vpack.c.bf16 %v1519_v3, %v1518_v1  ;;  %v3379_v1 = vld [vmem:[#allocation2 + $0x182] sm:$0xff]  ;;  %v3380_v3 = vld [vmem:[#allocation2 + $0x18a] sm:$0xff] }
  0xe1   : > { %4810 = vmatprep.subr.bf16.mxu0 %v5196_v4  ;;  %v3397_v62 = vpack.c.bf16 %v3380_v3, %v3379_v1 }
  0xe4   : > { %4811 = vmatpush3.bf16.msra.mxu0 %v5196_v4  ;;  %v1542_v4 = vpack.c.bf16 %v1521_v22, %v1520_v20  ;;  %v1900_v20 = vld [vmem:[#allocation2 + $0x181] sm:$0xff] }
  0xe5   : > { %v3381_v22 = vld [vmem:[#allocation2 + $0x19a] sm:$0xff] }
  0xe6   : > { %4573 = vmatmul.mubr.bf16.vlgmr.msra.gmra.mrb[0].mxu1 %v1533_v53  ;;  %v3360_v53 = vld [vmem:[#allocation2 + $0x9a] sm:$0xff] }
  0xe7   : > { %4781 = vmatmul.mubr.bf16.gmra.mrb[16].mxu0 %v5905_v58  ;;  %4852 = vmatpush3.bf16.msra.mxu1 %v5871_v39  ;;  %v1538_v39 = vpack.c.bf16 %v1513_v23, %v1512_v6  ;;  %v3387_v48 = vpack.c.bf16 %v3360_v53, %v3359_v30  ;;  %v3365_v23 = vld [vmem:[#allocation2 + $0xda] sm:$0xff] }
  0xe8   : > { %4576 = vmatprep.mubr.bf16.mxu1 %v1534_v59  ;;  %4784 = vmatprep.mubr.bf16.mxu0 %v5907_v12  ;;  %v1543_v59 = vpack.c.bf16 %v1523_v40, %v1522_v15 }
  0xe9   : > { %4845 = vmatprep.subr.bf16.mxu1 %v5199_v52 }
  0xeb   : > { %4853 = vmatpush3.bf16.msra.mxu1 %v5199_v52  ;;  %v3362_v52 = vld [vmem:[#allocation2 + $0xb2] sm:$0xff] }
  0xec   : > { %4846 = vmatprep.subr.bf16.mxu1 %v5200_v37  ;;  %v3388_v55 = vpack.c.bf16 %v3362_v52, %v3361_v49 }
  0xee   : > { %4577 = vmatmul.mubr.bf16.gmra.mrb[4].mxu1 %v1535_v38  ;;  %v3363_v38 = vld [vmem:[#allocation2 + $0xc2] sm:$0xff] }
  0xef   : > { %4785 = vmatmul.mubr.bf16.gmra.mrb[20].mxu0 %v5915_v32  ;;  %4580 = vmatprep.mubr.bf16.mxu1 %v1536_v5  ;;  %v3364_v5 = vld [vmem:[#allocation2 + $0xca] sm:$0xff] }
  0xf0   : > { %4788 = vmatprep.mubr.bf16.mxu0 %v5917_v36  ;;  %4854 = vmatpush3.bf16.msra.mxu1 %v5200_v37  ;;  %v1545_v37 = vpack.c.bf16 %v1527_v42, %v1526_v26  ;;  %v3389_v6 = vpack.c.bf16 %v3364_v5, %v3363_v38 }
  0xf1   : > { %4847 = vmatprep.subr.bf16.mxu1 %v5201_v25 }
  0xf4   : > { %4855 = vmatpush3.bf16.msra.mxu1 %v5201_v25  ;;  %v3366_v25 = vld [vmem:[#allocation2 + $0xe2] sm:$0xff] }
  0xf5   : > { %4848 = vmatprep.subr.bf16.mxu1 %v5202_v11 }
  0xf6   : > { %4581 = vmatmul.mubr.bf16.gmra.mrb[8].mxu1 %v1537_v28  ;;  %v3367_v28 = vld [vmem:[#allocation2 + $0xf2] sm:$0xff] }
  0xf7   : > { %4789 = vmatmul.mubr.bf16.gmra.mrb[24].mxu0 %v5638_v50  ;;  %4584 = vmatprep.mubr.bf16.mxu1 %v1538_v39  ;;  %v1540_v50 = vpack.c.bf16 %v1517_v61, %v1516_v57  ;;  %v3368_v39 = vld [vmem:[#allocation2 + $0xfa] sm:$0xff]  ;;  %v3372_v57 = vld [vmem:[#allocation2 + $0x12a] sm:$0xff]  ;;  %v3392_v61 = vpack.c.bf16 %v3370_v17, %v3369_v27 }
  0xf8   : > { %4792 = vmatprep.mubr.bf16.mxu0 %v5770_v46  ;;  %4856 = vmatpush3.bf16.msra.mxu1 %v5202_v11  ;;  %v5204_v46 = vld [vmem:[%s6018_s3 + $0x130] sm:$0xff]   ;;  %v3390_v11 = vpack.c.bf16 %v3366_v25, %v3365_v23  ;;  %v3391_v31 = vpack.c.bf16 %v3368_v39, %v3367_v28  ;;  %v3393_v19 = vpack.c.bf16 %v3372_v57, %v3371_v18 }
  0xf9   : > { %4849 = vmatprep.subr.bf16.mxu1 %v5203_v7 }
  0xfc   : > { %4857 = vmatpush3.bf16.msra.mxu1 %v5203_v7  ;;  %v3374_v7 = vld [vmem:[#allocation2 + $0x142] sm:$0xff] }
  0xfd   : > { %4850 = vmatprep.subr.bf16.mxu1 %v5204_v46 }
  0xfe   : > { %4585 = vmatmul.mubr.bf16.gmra.mrb[12].mxu1 %v1539_v45  ;;  %v3375_v45 = vld [vmem:[#allocation2 + $0x152] sm:$0xff] }
  0xff   : > { %4793 = vmatmul.mubr.bf16.gmra.mrb[28].mxu0 %v3028_v63  ;;  %4588 = vmatprep.mubr.bf16.mxu1 %v1540_v50  ;;  %v3394_v63 = vpack.c.bf16 %v3374_v7, %v3373_v29 }
 0x100   : > { %4812 = vmatprep.mubr.bf16.mxu0 %v3383_v0  ;;  %4858 = vmatpush3.bf16.msra.mxu1 %v5204_v46  ;;  %v3378_v0 = vld [vmem:[#allocation2 + $0x172] sm:$0xff]  ;;  %v1898_v46 = vld [vmem:[#allocation2 + $0x169] sm:$0xff] }
 0x101   : > { %4851 = vmatprep.subr.bf16.mxu1 %v5205_v14 }
 0x104   : > { %4859 = vmatpush3.bf16.msra.mxu1 %v5205_v14 }
 0x106   : > { %4589 = vmatmul.mubr.bf16.gmra.mrb[16].mxu1 %v1541_v10 }
 0x107   : > { %4813 = vmatmul.mubr.bf16.vlgmr.msra.gmra.mrb[0].mxu0 %v3384_v34  ;;  %4592 = vmatprep.mubr.bf16.mxu1 %v1542_v4 }
 0x108   : > { %4816 = vmatprep.mubr.bf16.mxu0 %v3385_v24 }
 0x10e   : > { %4593 = vmatmul.mubr.bf16.gmra.mrb[20].mxu1 %v1543_v59 }
 0x10f   : > { %4817 = vmatmul.mubr.bf16.gmra.mrb[4].mxu0 %v3386_v60  ;;  %4596 = vmatprep.mubr.bf16.mxu1 %v1544_v8 }
 0x110   : > { %4820 = vmatprep.mubr.bf16.mxu0 %v3387_v48 }
 0x116   : > { %4597 = vmatmul.mubr.bf16.gmra.mrb[24].mxu1 %v1545_v37 }
 0x117   : > { %4821 = vmatmul.mubr.bf16.gmra.mrb[8].mxu0 %v3388_v55  ;;  %4600 = vmatprep.mubr.bf16.mxu1 %v1546_v56 }
 0x118   : > { %4824 = vmatprep.mubr.bf16.mxu0 %v3389_v6 }
 0x11e   : > { %4601 = vmatmul.mubr.bf16.gmra.mrb[28].mxu1 %v5845_v44  ;;  %v3376_v44 = vld [vmem:[#allocation2 + $0x15a] sm:$0xff] }
 0x11f   : > { %4825 = vmatmul.mubr.bf16.gmra.mrb[12].mxu0 %v3390_v11  ;;  %4636 = vmatprep.mubr.bf16.mxu1 %v5895_v33  ;;  %v3395_v50 = vpack.c.bf16 %v3376_v44, %v3375_v45  ;;  %v3377_v33 = vld [vmem:[#allocation2 + $0x16a] sm:$0xff] }
 0x120   : > { %4828 = vmatprep.mubr.bf16.mxu0 %v3391_v31 }
 0x126   : > { %4637 = vmatmul.mubr.bf16.vlgmr.msra.gmra.mrb[16].mxu1 %v5897_v41  ;;  %v1899_v41 = vld [vmem:[#allocation2 + $0x171] sm:$0xff] }
 0x127   : > { %4829 = vmatmul.mubr.bf16.gmra.mrb[16].mxu0 %v3392_v61  ;;  %4640 = vmatprep.mubr.bf16.mxu1 %v5905_v58  ;;  %v3396_v58 = vpack.c.bf16 %v3378_v0, %v3377_v33  ;;  %v1916_v21 = vpack.c.bf16 %v1899_v41, %v1898_v46 }
 0x128   : > { %4832 = vmatprep.mubr.bf16.mxu0 %v3393_v19 }
 0x12e   : > { %4641 = vmatmul.mubr.bf16.gmra.mrb[20].mxu1 %v5907_v12  ;;  %v1901_v12 = vld [vmem:[#allocation2 + $0x189] sm:$0xff] }
 0x12f   : > { %4833 = vmatmul.mubr.bf16.gmra.mrb[20].mxu0 %v3394_v63  ;;  %4644 = vmatprep.mubr.bf16.mxu1 %v5915_v32  ;;  %v3382_v32 = vld [vmem:[#allocation2 + $0x1a2] sm:$0xff]  ;;  %v1917_v2 = vpack.c.bf16 %v1901_v12, %v1900_v20 }
 0x130   : > { %4836 = vmatprep.mubr.bf16.mxu0 %v3395_v50  ;;  %v3398_v51 = vpack.c.bf16 %v3382_v32, %v3381_v22 }
 0x136   : > { %4645 = vmatmul.mubr.bf16.gmra.mrb[24].mxu1 %v5917_v36 }
 0x137   : > { %4837 = vmatmul.mubr.bf16.gmra.mrb[24].mxu0 %v3396_v58  ;;  %4648 = vmatprep.mubr.bf16.mxu1 %v1916_v21 }
 0x138   : > { %4840 = vmatprep.mubr.bf16.mxu0 %v3397_v62 }
 0x13e   : > { %4649 = vmatmul.mubr.bf16.gmra.mrb[28].mxu1 %v1917_v2 }
 0x13f   : > { %4841 = vmatmul.mubr.bf16.gmra.mrb[28].mxu0 %v3398_v51 }
 0x1b9   : > { %v4574_v36 = vpop.f32.mrb[0].mxu1 }
 0x1ba   : > { %v1647_v14 = vpop.f32.mrb[1].mxu1 }
 0x1bb   : > { %v4575_v10 = vpop.f32.mrb[2].mxu1 }
 0x1bc   : > { %v1650_v34 = vpop.f32.mrb[3].mxu1 }
 0x1c1   : > { %v4578_v4 = vpop.f32.mrb[4].mxu1 }
 0x1c2   : > { %v1663_v24 = vpop.f32.mrb[5].mxu1 }
 0x1c3   : > { %v4579_v15 = vpop.f32.mrb[6].mxu1 }
 0x1c4   : > { %v1666_v40 = vpop.f32.mrb[7].mxu1 }
 0x1c9   : > { %v4582_v47 = vpop.f32.mrb[8].mxu1 }
 0x1ca   : > { %v1679_v9 = vpop.f32.mrb[9].mxu1 }
 0x1cb   : > { %v4583_v13 = vpop.f32.mrb[10].mxu1 }
 0x1cc   : > { %v5956_v16 = vpop.f32.mrb[11].mxu1 }
 0x1d1   : > { %v5958_v30 = vpop.f32.mrb[12].mxu1 }
 0x1d2   : > { %v5960_v53 = vpop.f32.mrb[13].mxu1 }
 0x1d3   : > { %v5962_v59 = vpop.f32.mrb[14].mxu1 }
 0x1d4   : > { %v5964_v43 = vpop.f32.mrb[15].mxu1 }
 0x1da   : > { %v4814_v60 = vpop.f32.mrb[0].mxu0 }
 0x1db   : > { %v4860_v8 = vadd.f32 %v4814_v60, %v4574_v36  ;;  %v3498_v48 = vpop.f32.mrb[1].mxu0 }
 0x1dc   : > { %v4861_v26 = vadd.f32 %v3498_v48, %v1647_v14  ;;  %v4815_v42 = vpop.f32.mrb[2].mxu0 }
 0x1dd   : > { %3755 = vst [vmem:[%s5971_s16 + $0x10] sm:$0xff] %v4860_v8  ;;  %v4862_v49 = vadd.f32 %v4815_v42, %v4575_v10  ;;  %v3501_v52 = vpop.f32.mrb[3].mxu0  ;;  %v3825_v37 = vmul.f32 %v4860_v8, %v4860_v8 }
 0x1de   : > { %3753 = vst [vmem:[%s5971_s16] sm:$0xff] %v4861_v26  ;;  %v4863_v54 = vadd.f32 %v3501_v52, %v1650_v34  ;;  %v3823_v35 = vmul.f32 %v4861_v26, %v4861_v26 }
 0x1df   : > { %3756 = vst [vmem:[%s5971_s16 + $0x18] sm:$0xff] %v4862_v49  ;;  %v3826_v28 = vmul.f32 %v4862_v49, %v4862_v49 }
 0x1e0   : > { %3754 = vst [vmem:[%s5971_s16 + $0x8] sm:$0xff] %v4863_v54  ;;  %v3785_v38 = vadd.f32 %v4863_v54, %v4861_v26  ;;  %v3824_v5 = vmul.f32 %v4863_v54, %v4863_v54 }
 0x1e2   : > { %v3786_v55 = vadd.f32 %v4860_v8, %v3785_v38  ;;  %v3855_v56 = vadd.f32 %v3824_v5, %v3823_v35  ;;  %v4818_v6 = vpop.f32.mrb[4].mxu0 }
 0x1e3   : > { %v4864_v23 = vadd.f32 %v4818_v6, %v4578_v4  ;;  %v3514_v25 = vpop.f32.mrb[5].mxu0 }
 0x1e4   : > { %v3856_v39 = vadd.f32 %v3855_v56, %v3825_v37  ;;  %v4865_v11 = vadd.f32 %v3514_v25, %v1663_v24  ;;  %v3787_v31 = vadd.f32 %v4862_v49, %v3786_v55  ;;  %v4819_v27 = vpop.f32.mrb[6].mxu0 }
 0x1e5   : > { %3759 = vst [vmem:[%s5971_s16 + $0x30] sm:$0xff] %v4864_v23  ;;  %v4866_v17 = vadd.f32 %v4819_v27, %v4579_v15  ;;  %v3517_v18 = vpop.f32.mrb[7].mxu0  ;;  %v3829_v63 = vmul.f32 %v4864_v23, %v4864_v23 }
 0x1e6   : > { %3757 = vst [vmem:[%s5971_s16 + $0x20] sm:$0xff] %v4865_v11  ;;  %v3788_v57 = vadd.f32 %v4865_v11, %v3787_v31  ;;  %v3827_v61 = vmul.f32 %v4865_v11, %v4865_v11  ;;  %v3857_v19 = vadd.f32 %v3856_v39, %v3826_v28  ;;  %v4867_v29 = vadd.f32 %v3517_v18, %v1666_v40 }
 0x1e7   : > { %3760 = vst [vmem:[%s5971_s16 + $0x38] sm:$0xff] %v4866_v17  ;;  %v3830_v1 = vmul.f32 %v4866_v17, %v4866_v17 }
 0x1e8   : > { %v3858_v7 = vadd.f32 %v3857_v19, %v3827_v61  ;;  %3758 = vst [vmem:[%s5971_s16 + $0x28] sm:$0xff] %v4867_v29  ;;  %v3789_v45 = vadd.f32 %v4867_v29, %v3788_v57  ;;  %v3828_v44 = vmul.f32 %v4867_v29, %v4867_v29 }
 0x1ea   : > { %v3790_v50 = vadd.f32 %v4864_v23, %v3789_v45  ;;  %v3859_v33 = vadd.f32 %v3858_v7, %v3828_v44  ;;  %v4822_v0 = vpop.f32.mrb[8].mxu0 }
 0x1eb   : > { %v4868_v46 = vadd.f32 %v4822_v0, %v4582_v47  ;;  %v3530_v41 = vpop.f32.mrb[9].mxu0 }
 0x1ec   : > { %v3860_v3 = vadd.f32 %v3859_v33, %v3829_v63  ;;  %v4869_v58 = vadd.f32 %v3530_v41, %v1679_v9  ;;  %v3791_v21 = vadd.f32 %v4866_v17, %v3790_v50  ;;  %v4823_v62 = vpop.f32.mrb[10].mxu0 }
 0x1ed   : > { %3763 = vst [vmem:[%s5971_s16 + $0x50] sm:$0xff] %v4868_v46  ;;  %v4870_v20 = vadd.f32 %v4823_v62, %v4583_v13  ;;  %v3533_v12 = vpop.f32.mrb[11].mxu0  ;;  %v3833_v34 = vmul.f32 %v4868_v46, %v4868_v46 }
 0x1ee   : > { %3761 = vst [vmem:[%s5971_s16 + $0x40] sm:$0xff] %v4869_v58  ;;  %v3792_v22 = vadd.f32 %v4869_v58, %v3791_v21  ;;  %v3831_v32 = vmul.f32 %v4869_v58, %v4869_v58  ;;  %v3861_v2 = vadd.f32 %v3860_v3, %v3830_v1  ;;  %v4871_v51 = vadd.f32 %v3533_v12, %v5956_v16 }
 0x1ef   : > { %3764 = vst [vmem:[%s5971_s16 + $0x58] sm:$0xff] %v4870_v20  ;;  %v3834_v9 = vmul.f32 %v4870_v20, %v4870_v20 }
 0x1f0   : > { %v3862_v36 = vadd.f32 %v3861_v2, %v3831_v32  ;;  %3762 = vst [vmem:[%s5971_s16 + $0x48] sm:$0xff] %v4871_v51  ;;  %v3793_v14 = vadd.f32 %v4871_v51, %v3792_v22  ;;  %v3832_v10 = vmul.f32 %v4871_v51, %v4871_v51 }
 0x1f2   : > { %v3794_v4 = vadd.f32 %v4868_v46, %v3793_v14  ;;  %v3863_v24 = vadd.f32 %v3862_v36, %v3832_v10  ;;  %v4826_v15 = vpop.f32.mrb[12].mxu0 }
 0x1f3   : > { %v4872_v40 = vadd.f32 %v4826_v15, %v5958_v30  ;;  %v3546_v47 = vpop.f32.mrb[13].mxu0 }
 0x1f4   : > { %v3864_v13 = vadd.f32 %v3863_v24, %v3833_v34  ;;  %v4873_v16 = vadd.f32 %v3546_v47, %v5960_v53  ;;  %v3795_v60 = vadd.f32 %v4870_v20, %v3794_v4  ;;  %v4827_v8 = vpop.f32.mrb[14].mxu0 }
 0x1f5   : > { %3767 = vst [vmem:[%s5971_s16 + $0x70] sm:$0xff] %v4872_v40  ;;  %v4874_v48 = vadd.f32 %v4827_v8, %v5962_v59  ;;  %v3549_v26 = vpop.f32.mrb[15].mxu0  ;;  %v3837_v53 = vmul.f32 %v4872_v40, %v4872_v40 }
 0x1f6   : > { %3765 = vst [vmem:[%s5971_s16 + $0x60] sm:$0xff] %v4873_v16  ;;  %v3796_v42 = vadd.f32 %v4873_v16, %v3795_v60  ;;  %v3835_v49 = vmul.f32 %v4873_v16, %v4873_v16  ;;  %v3865_v52 = vadd.f32 %v3864_v13, %v3834_v9  ;;  %v4875_v54 = vadd.f32 %v3549_v26, %v5964_v43 }
 0x1f7   : > { %3768 = vst [vmem:[%s5971_s16 + $0x78] sm:$0xff] %v4874_v48  ;;  %v3838_v28 = vmul.f32 %v4874_v48, %v4874_v48 }
 0x1f8   : > { %v3866_v30 = vadd.f32 %v3865_v52, %v3835_v49  ;;  %3766 = vst [vmem:[%s5971_s16 + $0x68] sm:$0xff] %v4875_v54  ;;  %v3797_v35 = vadd.f32 %v4875_v54, %v3796_v42  ;;  %v3836_v38 = vmul.f32 %v4875_v54, %v4875_v54 }
 0x1f9   : > { %v4638_v5 = vpop.f32.mrb[16].mxu1 }
 0x1fa   : > { %v3798_v37 = vadd.f32 %v4872_v40, %v3797_v35  ;;  %v3867_v55 = vadd.f32 %v3866_v30, %v3836_v38  ;;  %v4830_v56 = vpop.f32.mrb[16].mxu0  ;;  %v2081_v59 = vpop.f32.mrb[17].mxu1 }
 0x1fb   : > { %v4876_v6 = vadd.f32 %v4830_v56, %v4638_v5  ;;  %v3562_v23 = vpop.f32.mrb[17].mxu0  ;;  %v4639_v25 = vpop.f32.mrb[18].mxu1 }
 0x1fc   : > { %v3868_v43 = vadd.f32 %v3867_v55, %v3837_v53  ;;  %v4877_v39 = vadd.f32 %v3562_v23, %v2081_v59  ;;  %v3799_v11 = vadd.f32 %v4874_v48, %v3798_v37  ;;  %v4831_v31 = vpop.f32.mrb[18].mxu0  ;;  %v2084_v27 = vpop.f32.mrb[19].mxu1 }
 0x1fd   : > { %3771 = vst [vmem:[%s5971_s16 + $0x90] sm:$0xff] %v4876_v6  ;;  %v4878_v17 = vadd.f32 %v4831_v31, %v4639_v25  ;;  %v3565_v18 = vpop.f32.mrb[19].mxu0  ;;  %v3841_v50 = vmul.f32 %v4876_v6, %v4876_v6 }
 0x1fe   : > { %3769 = vst [vmem:[%s5971_s16 + $0x80] sm:$0xff] %v4877_v39  ;;  %v3800_v57 = vadd.f32 %v4877_v39, %v3799_v11  ;;  %v3839_v61 = vmul.f32 %v4877_v39, %v4877_v39  ;;  %v3869_v19 = vadd.f32 %v3868_v43, %v3838_v28  ;;  %v4879_v29 = vadd.f32 %v3565_v18, %v2084_v27 }
 0x1ff   : > { %3772 = vst [vmem:[%s5971_s16 + $0x98] sm:$0xff] %v4878_v17  ;;  %v3842_v21 = vmul.f32 %v4878_v17, %v4878_v17 }
 0x200   : > { %v3870_v7 = vadd.f32 %v3869_v19, %v3839_v61  ;;  %3770 = vst [vmem:[%s5971_s16 + $0x88] sm:$0xff] %v4879_v29  ;;  %v3801_v45 = vadd.f32 %v4879_v29, %v3800_v57  ;;  %v3840_v44 = vmul.f32 %v4879_v29, %v4879_v29 }
 0x201   : > { %v4642_v63 = vpop.f32.mrb[20].mxu1 }
 0x202   : > { %v3802_v33 = vadd.f32 %v4876_v6, %v3801_v45  ;;  %v3871_v0 = vadd.f32 %v3870_v7, %v3840_v44  ;;  %v4834_v46 = vpop.f32.mrb[20].mxu0  ;;  %v2097_v41 = vpop.f32.mrb[21].mxu1 }
 0x203   : > { %v4880_v1 = vadd.f32 %v4834_v46, %v4642_v63  ;;  %v3578_v3 = vpop.f32.mrb[21].mxu0  ;;  %v4643_v58 = vpop.f32.mrb[22].mxu1 }
 0x204   : > { %v3872_v62 = vadd.f32 %v3871_v0, %v3841_v50  ;;  %v4881_v20 = vadd.f32 %v3578_v3, %v2097_v41  ;;  %v3803_v12 = vadd.f32 %v4878_v17, %v3802_v33  ;;  %v4835_v22 = vpop.f32.mrb[22].mxu0  ;;  %v2100_v32 = vpop.f32.mrb[23].mxu1 }
 0x205   : > { %3775 = vst [vmem:[%s5971_s16 + $0xb0] sm:$0xff] %v4880_v1  ;;  %v4882_v2 = vadd.f32 %v4835_v22, %v4643_v58  ;;  %v3581_v51 = vpop.f32.mrb[23].mxu0  ;;  %v3845_v47 = vmul.f32 %v4880_v1, %v4880_v1 }
 0x206   : > { %3773 = vst [vmem:[%s5971_s16 + $0xa0] sm:$0xff] %v4881_v20  ;;  %v3804_v36 = vadd.f32 %v4881_v20, %v3803_v12  ;;  %v3843_v14 = vmul.f32 %v4881_v20, %v4881_v20  ;;  %v3873_v10 = vadd.f32 %v3872_v62, %v3842_v21  ;;  %v4883_v34 = vadd.f32 %v3581_v51, %v2100_v32 }
 0x207   : > { %3776 = vst [vmem:[%s5971_s16 + $0xb8] sm:$0xff] %v4882_v2  ;;  %v3846_v42 = vmul.f32 %v4882_v2, %v4882_v2 }
 0x208   : > { %v3874_v4 = vadd.f32 %v3873_v10, %v3843_v14  ;;  %3774 = vst [vmem:[%s5971_s16 + $0xa8] sm:$0xff] %v4883_v34  ;;  %v3805_v24 = vadd.f32 %v4883_v34, %v3804_v36  ;;  %v3844_v15 = vmul.f32 %v4883_v34, %v4883_v34 }
 0x209   : > { %v4646_v40 = vpop.f32.mrb[24].mxu1 }
 0x20a   : > { %v3806_v9 = vadd.f32 %v4880_v1, %v3805_v24  ;;  %v3875_v13 = vadd.f32 %v3874_v4, %v3844_v15  ;;  %v4838_v16 = vpop.f32.mrb[24].mxu0  ;;  %v2113_v60 = vpop.f32.mrb[25].mxu1 }
 0x20b   : > { %v4884_v8 = vadd.f32 %v4838_v16, %v4646_v40  ;;  %v3594_v48 = vpop.f32.mrb[25].mxu0  ;;  %v4647_v26 = vpop.f32.mrb[26].mxu1 }
 0x20c   : > { %v3876_v49 = vadd.f32 %v3875_v13, %v3845_v47  ;;  %v4885_v52 = vadd.f32 %v3594_v48, %v2113_v60  ;;  %v3807_v54 = vadd.f32 %v4882_v2, %v3806_v9  ;;  %v4839_v30 = vpop.f32.mrb[26].mxu0  ;;  %v2116_v35 = vpop.f32.mrb[27].mxu1 }
 0x20d   : > { %3779 = vst [vmem:[%s5971_s16 + $0xd0] sm:$0xff] %v4884_v8  ;;  %v4886_v38 = vadd.f32 %v4839_v30, %v4647_v26  ;;  %v3597_v5 = vpop.f32.mrb[27].mxu0  ;;  %v3849_v28 = vmul.f32 %v4884_v8, %v4884_v8 }
 0x20e   : > { %3777 = vst [vmem:[%s5971_s16 + $0xc0] sm:$0xff] %v4885_v52  ;;  %v3808_v53 = vadd.f32 %v4885_v52, %v3807_v54  ;;  %v3847_v37 = vmul.f32 %v4885_v52, %v4885_v52  ;;  %v3877_v55 = vadd.f32 %v3876_v49, %v3846_v42  ;;  %v4887_v56 = vadd.f32 %v3597_v5, %v2116_v35 }
 0x20f   : > { %3780 = vst [vmem:[%s5971_s16 + $0xd8] sm:$0xff] %v4886_v38  ;;  %v3850_v57 = vmul.f32 %v4886_v38, %v4886_v38 }
 0x210   : > { %v3878_v59 = vadd.f32 %v3877_v55, %v3847_v37  ;;  %3778 = vst [vmem:[%s5971_s16 + $0xc8] sm:$0xff] %v4887_v56  ;;  %v3809_v6 = vadd.f32 %v4887_v56, %v3808_v53  ;;  %v3848_v23 = vmul.f32 %v4887_v56, %v4887_v56 }
 0x211   : > { %v4650_v25 = vpop.f32.mrb[28].mxu1 }
 0x212   : > { %v3810_v43 = vadd.f32 %v4884_v8, %v3809_v6  ;;  %v3879_v39 = vadd.f32 %v3878_v59, %v3848_v23  ;;  %v4842_v11 = vpop.f32.mrb[28].mxu0  ;;  %v2129_v31 = vpop.f32.mrb[29].mxu1 }
 0x213   : > { %v4888_v27 = vadd.f32 %v4842_v11, %v4650_v25  ;;  %v3610_v17 = vpop.f32.mrb[29].mxu0  ;;  %v4651_v18 = vpop.f32.mrb[30].mxu1 }
 0x214   : > { %v3880_v61 = vadd.f32 %v3879_v39, %v3849_v28  ;;  %v4889_v19 = vadd.f32 %v3610_v17, %v2129_v31  ;;  %v3811_v29 = vadd.f32 %v4886_v38, %v3810_v43  ;;  %v4843_v7 = vpop.f32.mrb[30].mxu0  ;;  %v2132_v45 = vpop.f32.mrb[31].mxu1 }
 0x215   : > { %3783 = vst [vmem:[%s5971_s16 + $0xf0] sm:$0xff] %v4888_v27  ;;  %v4890_v44 = vadd.f32 %v4843_v7, %v4651_v18  ;;  %v3613_v63 = vpop.f32.mrb[31].mxu0  ;;  %v3853_v58 = vmul.f32 %v4888_v27, %v4888_v27 }
 0x216   : > { %3781 = vst [vmem:[%s5971_s16 + $0xe0] sm:$0xff] %v4889_v19  ;;  %v3812_v50 = vadd.f32 %v4889_v19, %v3811_v29  ;;  %v3851_v33 = vmul.f32 %v4889_v19, %v4889_v19  ;;  %v3881_v0 = vadd.f32 %v3880_v61, %v3850_v57  ;;  %v4891_v46 = vadd.f32 %v3613_v63, %v2132_v45 }
 0x217   : > { %3784 = vst [vmem:[%s5971_s16 + $0xf8] sm:$0xff] %v4890_v44  ;;  %v3854_v20 = vmul.f32 %v4890_v44, %v4890_v44 }
 0x218   : > { %v3882_v41 = vadd.f32 %v3881_v0, %v3851_v33  ;;  %3782 = vst [vmem:[%s5971_s16 + $0xe8] sm:$0xff] %v4891_v46  ;;  %v3813_v1 = vadd.f32 %v4891_v46, %v3812_v50  ;;  %v3852_v3 = vmul.f32 %v4891_v46, %v4891_v46 }
 0x21a   : > { %v3814_v21 = vadd.f32 %v4888_v27, %v3813_v1  ;;  %v3883_v62 = vadd.f32 %v3882_v41, %v3852_v3 }
 0x21c   : > { %v3815_v12 = vadd.f32 %v4890_v44, %v3814_v21  ;;  %v3884_v22 = vadd.f32 %v3883_v62, %v3853_v58 }
 0x21e   : > { %v3816_v32 = vrot.slane %v3815_v12, 4  ;;  %v3885_v2 = vadd.f32 %v3884_v22, %v3854_v20 }
 0x220   : > { %v3817_v51 = vadd.f32 %v3816_v32, %v3815_v12  ;;  %v3886_v36 = vrot.slane %v3885_v2, 4 }
 0x222   : > { %v3818_v14 = vrot.slane %v3817_v51, 2  ;;  %v3887_v10 = vadd.f32 %v3886_v36, %v3885_v2 }
 0x224   : > { %v3819_v34 = vadd.f32 %v3818_v14, %v3817_v51  ;;  %v3888_v4 = vrot.slane %v3887_v10, 2 }
 0x226   : > { %v3820_v24 = vrot.slane %v3819_v34, 1  ;;  %v3889_v15 = vadd.f32 %v3888_v4, %v3887_v10 }
 0x228   : > { %v3821_v40 = vadd.f32 %v3820_v24, %v3819_v34  ;;  %v3890_v47 = vrot.slane %v3889_v15, 1 }
 0x22a   : > { %3822 = vst [vmem:[%s5952_s14] sm:$0x1] %v3821_v40  ;;  %v3891_v9 = vadd.f32 %v3890_v47, %v3889_v15 }
 0x22c   : > { %3892 = vst [vmem:[%s5952_s14 + $0x1] sm:$0x1] %v3891_v9 }
 0x22d PF: > { %s16_s18 = sadd.s32 1, %s5212_s18  }
 0x22e   : > { %p13_p4 = scmp.ge.s32.totalorder %s16_s18, 4  }
 0x230   :  { %15 = sbr.rel (!%p13_p4) target bundleno = 1 (0x1), region = 89 }

</bundles_post_ra>
